<compile_context>
chip_gen: v7x
topology: tpu7x:2x2x1
jax: 0.10.0
libtpu: 0.0.40
codegen_flags: <defaults>
</compile_context>

<pallas_src>
import warnings

import jax
import jax.numpy as jnp
from jax.experimental import pallas as pl
from jax.experimental.pallas import tpu as pltpu


def _round_up(n, m):
    return ((n + m - 1) // m) * m


def _const_spec(arr):
    """Whole-array block, same block for every grid step; single-buffered."""
    idx = lambda i: (0,) * arr.ndim
    try:
        return pl.BlockSpec(arr.shape, idx, pipeline_mode=pl.Buffered(1))
    except TypeError:
        warnings.warn("pl.Buffered/pipeline_mode unavailable; constant operands "
                      "will be double-buffered (2x VMEM footprint).")
        return pl.BlockSpec(arr.shape, idx)


# --------------------------------------------------------------------------
# Kernels
# --------------------------------------------------------------------------

def _mlp_kernel_resident(x_ref, w1_ref, b1_ref, w2_ref, b2_ref, w3_ref, b3_ref,
                         w4_ref, b4_ref, o_ref):
    """Multi-step path: all weights VMEM-resident via BlockSpec."""
    h = jnp.dot(x_ref[...], w1_ref[...], preferred_element_type=jnp.float32)
    h = jnp.maximum(h + b1_ref[...], 0.0).astype(jnp.bfloat16)
    h = jnp.dot(h, w2_ref[...], preferred_element_type=jnp.float32)
    h = jnp.maximum(h + b2_ref[...], 0.0).astype(jnp.bfloat16)
    h = jnp.dot(h, w3_ref[...], preferred_element_type=jnp.float32)
    h = jnp.maximum(h + b3_ref[...], 0.0)            # stays f32 for the final layer
    o = jnp.dot(h, w4_ref[...], preferred_element_type=jnp.float32) + b4_ref[...]
    o_ref[...] = o.astype(o_ref.dtype)


def _mlp_kernel_streamed(x_ref, w1_ref, b1_ref, b2_ref, b3_ref, b4_ref,
                         w2_hbm, w3_hbm, w4_hbm, o_ref,
                         w2_vmem, w3_vmem, w4_vmem, sem):
    """Single-step path: stream w2/w3/w4 HBM->VMEM behind earlier layers."""
    cp2 = pltpu.make_async_copy(w2_hbm, w2_vmem, sem.at[0])
    cp3 = pltpu.make_async_copy(w3_hbm, w3_vmem, sem.at[1])
    cp4 = pltpu.make_async_copy(w4_hbm, w4_vmem, sem.at[2])
    cp2.start()
    cp3.start()
    cp4.start()

    h = jnp.dot(x_ref[...], w1_ref[...], preferred_element_type=jnp.float32)
    h = jnp.maximum(h + b1_ref[...], 0.0).astype(jnp.bfloat16)

    cp2.wait()
    h = jnp.dot(h, w2_vmem[...], preferred_element_type=jnp.float32)
    h = jnp.maximum(h + b2_ref[...], 0.0).astype(jnp.bfloat16)

    cp3.wait()
    h = jnp.dot(h, w3_vmem[...], preferred_element_type=jnp.float32)
    h = jnp.maximum(h + b3_ref[...], 0.0)            # stays f32 for the final layer

    cp4.wait()
    o = jnp.dot(h, w4_vmem[...], preferred_element_type=jnp.float32) + b4_ref[...]
    o_ref[...] = o.astype(o_ref.dtype)


# --------------------------------------------------------------------------
# Wrapper
# --------------------------------------------------------------------------

def prepare_dexp_params(params, *, compute_dtype=jnp.bfloat16):
    """One-time weight preparation (do NOT redo per forward call).

    Accepts w1..w4 of shape (in, out) and b1..b4 of shape (out,) or (1, out),
    all float32. Pads the input/output feature dims to lane multiples, casts
    the hidden-layer weights to the MXU input dtype and keeps the final layer
    in f32.
    """
    w1, w2, w3, w4 = (jnp.asarray(params[k]) for k in ("w1", "w2", "w3", "w4"))
    b1, b2, b3, b4 = (jnp.asarray(params[k]).reshape(1, -1).astype(jnp.float32)
                      for k in ("b1", "b2", "b3", "b4"))

    Fin, H1 = w1.shape
    H2, H3 = w2.shape[1], w3.shape[1]
    action_size = w4.shape[1]
    assert H1 % 128 == 0 and H2 % 128 == 0 and H3 % 128 == 0, (H1, H2, H3)

    Fin_p = _round_up(Fin, 128)
    Nout_p = _round_up(action_size, 128)

    return {
        "w1": jnp.pad(w1, ((0, Fin_p - Fin), (0, 0))).astype(compute_dtype),
        "w2": w2.astype(compute_dtype),
        "w3": w3.astype(compute_dtype),
        # Final layer stays f32 (argmax-deciding logits).
        "w4": jnp.pad(w4, ((0, 0), (0, Nout_p - action_size))).astype(jnp.float32),
        "b1": b1, "b2": b2, "b3": b3,
        "b4": jnp.pad(b4, ((0, 0), (0, Nout_p - action_size))),
        "meta": dict(Fin=Fin, Fin_p=Fin_p, H1=H1, H2=H2, H3=H3,
                     action_size=action_size, Nout_p=Nout_p,
                     compute_dtype=compute_dtype),
    }


def _choose_tiling(B, batch_tile, *, megacore_min_rows=64):
    """16-aligned, padding-balanced batch tiling.

    Splits mid-size batches into >= 2 steps so v7x's second TensorCore has
    work; tiny batches (< megacore_min_rows rows) stay single-step (they are
    weight-DMA bound anyway).
    """
    Bp16 = _round_up(max(B, 1), 16)
    steps = max(1, -(-Bp16 // batch_tile))            # ceil div
    if steps == 1 and Bp16 >= megacore_min_rows:
        steps = 2
    tile = _round_up(-(-Bp16 // steps), 16)
    return tile, tile * steps, steps


def dexp_forward(x, prepared, *, batch_tile=512):
    """DExpNetwork MLP forward pass.

    x:        (B, flat_in) float32
    prepared: output of prepare_dexp_params()
    returns   (B, action_size) float32
    """
    meta = prepared["meta"]
    Fin, Fin_p = meta["Fin"], meta["Fin_p"]
    H1, H2, H3 = meta["H1"], meta["H2"], meta["H3"]
    Nout_p, action_size = meta["Nout_p"], meta["action_size"]
    cd = meta["compute_dtype"]
    w1, w2, w3, w4 = prepared["w1"], prepared["w2"], prepared["w3"], prepared["w4"]
    b1, b2, b3, b4 = prepared["b1"], prepared["b2"], prepared["b3"], prepared["b4"]

    B = x.shape[0]
    assert x.shape[1] == Fin, (x.shape, Fin)

    tile, Bp, steps = _choose_tiling(B, batch_tile)
    xp = jnp.pad(x.astype(cd), ((0, Bp - B), (0, Fin_p - Fin)))

    # Advisory cost estimate for XLA's scheduler.
    flops = 2 * Bp * (Fin_p * H1 + H1 * H2 + H2 * H3 + H3 * Nout_p)
    weight_bytes = sum(int(a.size) * a.dtype.itemsize
                       for a in (w1, b1, w2, b2, w3, b3, w4, b4))
    cost = pl.CostEstimate(
        flops=flops, transcendentals=0,
        bytes_accessed=weight_bytes + int(xp.size) * xp.dtype.itemsize
                       + Bp * Nout_p * 4)

    x_spec = pl.BlockSpec((tile, Fin_p), lambda i: (i, 0))
    out_spec = pl.BlockSpec((tile, Nout_p), lambda i: (i, 0))
    out_shape = jax.ShapeDtypeStruct((Bp, Nout_p), jnp.float32)
    vmem_limit = 32 * 1024 * 1024

    if steps == 1:
        # Small-batch latency path: w2/w3/w4 streamed behind layer compute.
        out = pl.pallas_call(
            _mlp_kernel_streamed,
            out_shape=out_shape,
            grid_spec=pltpu.PrefetchScalarGridSpec(
                num_scalar_prefetch=0,
                grid=(1,),
                in_specs=[
                    x_spec,
                    _const_spec(w1), _const_spec(b1),
                    _const_spec(b2), _const_spec(b3), _const_spec(b4),
                    pl.BlockSpec(memory_space=pl.ANY),   # w2 stays in HBM
                    pl.BlockSpec(memory_space=pl.ANY),   # w3 stays in HBM
                    pl.BlockSpec(memory_space=pl.ANY),   # w4 stays in HBM
                ],
                out_specs=out_spec,
                scratch_shapes=[
                    pltpu.VMEM((H1, H2), w2.dtype),
                    pltpu.VMEM((H2, H3), w3.dtype),
                    pltpu.VMEM((H3, Nout_p), w4.dtype),
                    pltpu.SemaphoreType.DMA((3,)),
                ],
            ),
            compiler_params=pltpu.CompilerParams(
                dimension_semantics=("arbitrary",),
                vmem_limit_bytes=vmem_limit),
            cost_estimate=cost,
        )(xp, w1, b1, b2, b3, b4, w2, w3, w4)
    else:
        # Throughput path: weights VMEM-resident, batch tiles sharded across
        # cores ("parallel" grid axis).
        out = pl.pallas_call(
            _mlp_kernel_resident,
            out_shape=out_shape,
            grid_spec=pltpu.PrefetchScalarGridSpec(
                num_scalar_prefetch=0,
                grid=(steps,),
                in_specs=[
                    x_spec,
                    _const_spec(w1), _const_spec(b1),
                    _const_spec(w2), _const_spec(b2),
                    _const_spec(w3), _const_spec(b3),
                    _const_spec(w4), _const_spec(b4),
                ],
                out_specs=out_spec,
            ),
            compiler_params=pltpu.CompilerParams(
                dimension_semantics=("parallel",),
                vmem_limit_bytes=vmem_limit),
            cost_estimate=cost,
        )(xp, w1, b1, w2, b2, w3, b3, w4, b4)

    return out[:B, :action_size]


# --------------------------------------------------------------------------
# Reference / init
# --------------------------------------------------------------------------

def init_dexp_params(key, flat_input_size, action_size):
    """Deterministic init mimicking nn.Linear's U(-1/sqrt(fan_in), 1/sqrt(fan_in))."""
    dims = [flat_input_size, 1024, 1024, 512, action_size]
    params = {}
    for idx in range(4):
        fan_in, fan_out = dims[idx], dims[idx + 1]
        key, kw, kb = jax.random.split(key, 3)
        bound = 1.0 / jnp.sqrt(jnp.float32(fan_in))
        params[f"w{idx + 1}"] = jax.random.uniform(
            kw, (fan_in, fan_out), jnp.float32, -bound, bound)
        params[f"b{idx + 1}"] = jax.random.uniform(
            kb, (1, fan_out), jnp.float32, -bound, bound)
    return params


def dexp_reference(x, params, *, compute_dtype=jnp.bfloat16):
    """Pure-JAX reference with the same arithmetic as the kernel:
    layers 1-3 bf16-in / f32-accumulate, final layer fully f32."""
    def lin(h, w, b):
        return jnp.dot(h.astype(compute_dtype), w.astype(compute_dtype),
                       preferred_element_type=jnp.float32) + b.reshape(1, -1)
    h = jnp.maximum(lin(x, params["w1"], params["b1"]), 0.0)
    h = jnp.maximum(lin(h, params["w2"], params["b2"]), 0.0)
    h = jnp.maximum(lin(h, params["w3"], params["b3"]), 0.0)
    return (jnp.dot(h, params["w4"], preferred_element_type=jnp.float32)
            + params["b4"].reshape(1, -1))


if __name__ == "__main__":
    # Quoridor config: board_size=5, split_board=True, include_turn=True
    board_size = 5
    split_board = True
    include_turn = True
    board_input_size = board_size * board_size * (2 if split_board else 1)       # 50
    walls_input_size = (board_size - 1) * (board_size - 1) * 2                   # 32
    flat_input_size = board_input_size + walls_input_size + (3 if include_turn else 2)  # 85
    action_size = board_size * board_size + 2 * (board_size - 1) * (board_size - 1)     # 57

    key = jax.random.PRNGKey(0)
    key, kx_small, kx_mid = jax.random.split(key, 3)
    params = init_dexp_params(key, flat_input_size, action_size)
    prepared = prepare_dexp_params(params)     # one-time weight prep (hoisted)

    # batch=8  -> single-step streamed-weights path
    # batch=96 -> 2-step VMEM-resident path (exercises the "parallel" grid)
    for batch, kx in ((8, kx_small), (96, kx_mid)):
        x = jax.random.normal(kx, (batch, flat_input_size), jnp.float32)
        out = jax.block_until_ready(dexp_forward(x, prepared))
        ref = dexp_reference(x, params)
        assert out.shape == (batch, action_size), out.shape
        max_err = float(jnp.max(jnp.abs(out - ref)))
        assert jnp.allclose(out, ref, atol=1e-2, rtol=1e-2), (batch, max_err)

    print("KERNEL_OK")
</pallas_src>

<mosaic_0001>
module attributes {stable_mosaic.version = 11 : i64} {
  func.func @_mlp_kernel_streamed(%arg0: i32, %arg1: memref<16x128xbf16, #tpu.memory_space<vmem>>, %arg2: memref<128x1024xbf16, #tpu.memory_space<vmem>>, %arg3: memref<1x1024xf32, #tpu.memory_space<vmem>>, %arg4: memref<1x1024xf32, #tpu.memory_space<vmem>>, %arg5: memref<1x512xf32, #tpu.memory_space<vmem>>, %arg6: memref<1x128xf32, #tpu.memory_space<vmem>>, %arg7: memref<1024x1024xbf16, #tpu.memory_space<any>>, %arg8: memref<1024x512xbf16, #tpu.memory_space<any>>, %arg9: memref<512x128xf32, #tpu.memory_space<any>>, %arg10: memref<16x128xf32, #tpu.memory_space<vmem>>, %arg11: memref<1024x1024xbf16, #tpu.memory_space<vmem>>, %arg12: memref<1024x512xbf16, #tpu.memory_space<vmem>>, %arg13: memref<512x128xf32, #tpu.memory_space<vmem>>, %arg14: memref<3x!tpu.dma_semaphore, #tpu.memory_space<semaphore_mem>>) attributes {dimension_semantics = [#tpu.dimension_semantics<arbitrary>], iteration_bounds = array<i64: 1>, scalar_prefetch = 0 : i64, scratch_operands = 4 : i64, tpu.core_type = #tpu.core_type<tc>, window_params = [{transform_indices = @transform_0, window_bounds = array<i64: 16, 128>}, {pipeline_mode = #tpu.pipeline_mode<synchronous>, transform_indices = @transform_1, window_bounds = array<i64: 128, 1024>}, {pipeline_mode = #tpu.pipeline_mode<synchronous>, transform_indices = @transform_2, window_bounds = array<i64: 1, 1024>}, {pipeline_mode = #tpu.pipeline_mode<synchronous>, transform_indices = @transform_3, window_bounds = array<i64: 1, 1024>}, {pipeline_mode = #tpu.pipeline_mode<synchronous>, transform_indices = @transform_4, window_bounds = array<i64: 1, 512>}, {pipeline_mode = #tpu.pipeline_mode<synchronous>, transform_indices = @transform_5, window_bounds = array<i64: 1, 128>}, {}, {}, {}, {transform_indices = @transform_9, window_bounds = array<i64: 16, 128>}]} {
    %c0_i32 = arith.constant 0 : i32
    %0 = tpu.memref_slice %arg14[%c0_i32] : memref<3x!tpu.dma_semaphore, #tpu.memory_space<semaphore_mem>> -> memref<1x!tpu.dma_semaphore, #tpu.memory_space<semaphore_mem>>
    %1 = tpu.memref_squeeze %0 : memref<1x!tpu.dma_semaphore, #tpu.memory_space<semaphore_mem>> -> memref<!tpu.dma_semaphore, #tpu.memory_space<semaphore_mem>>
    tpu.enqueue_dma source(%arg7 : memref<1024x1024xbf16, #tpu.memory_space<any>>) target(%arg11 : memref<1024x1024xbf16, #tpu.memory_space<vmem>>) target_semaphore(%1 : memref<!tpu.dma_semaphore, #tpu.memory_space<semaphore_mem>>)
    %c1_i32 = arith.constant 1 : i32
    %2 = tpu.memref_slice %arg14[%c1_i32] : memref<3x!tpu.dma_semaphore, #tpu.memory_space<semaphore_mem>> -> memref<1x!tpu.dma_semaphore, #tpu.memory_space<semaphore_mem>>
    %3 = tpu.memref_squeeze %2 : memref<1x!tpu.dma_semaphore, #tpu.memory_space<semaphore_mem>> -> memref<!tpu.dma_semaphore, #tpu.memory_space<semaphore_mem>>
    tpu.enqueue_dma source(%arg8 : memref<1024x512xbf16, #tpu.memory_space<any>>) target(%arg12 : memref<1024x512xbf16, #tpu.memory_space<vmem>>) target_semaphore(%3 : memref<!tpu.dma_semaphore, #tpu.memory_space<semaphore_mem>>)
    %c2_i32 = arith.constant 2 : i32
    %4 = tpu.memref_slice %arg14[%c2_i32] : memref<3x!tpu.dma_semaphore, #tpu.memory_space<semaphore_mem>> -> memref<1x!tpu.dma_semaphore, #tpu.memory_space<semaphore_mem>>
    %5 = tpu.memref_squeeze %4 : memref<1x!tpu.dma_semaphore, #tpu.memory_space<semaphore_mem>> -> memref<!tpu.dma_semaphore, #tpu.memory_space<semaphore_mem>>
    tpu.enqueue_dma source(%arg9 : memref<512x128xf32, #tpu.memory_space<any>>) target(%arg13 : memref<512x128xf32, #tpu.memory_space<vmem>>) target_semaphore(%5 : memref<!tpu.dma_semaphore, #tpu.memory_space<semaphore_mem>>)
    %c0 = arith.constant 0 : index
    %c0_0 = arith.constant 0 : index
    %6 = vector.load %arg1[%c0, %c0_0] : memref<16x128xbf16, #tpu.memory_space<vmem>>, vector<16x128xbf16>
    %c0_1 = arith.constant 0 : index
    %c0_2 = arith.constant 0 : index
    %7 = vector.load %arg2[%c0_1, %c0_2] : memref<128x1024xbf16, #tpu.memory_space<vmem>>, vector<128x1024xbf16>
    %cst = arith.constant dense<0.000000e+00> : vector<16x1024xf32>
    %8 = tpu.matmul %6, %7, %cst {dimension_numbers = #tpu.dot_dimension_numbers<[1], [0], [0], [1], [0, 0, 1, 1], [], []>} : vector<16x128xbf16>, vector<128x1024xbf16>, vector<16x1024xf32> -> vector<16x1024xf32>
    %c0_3 = arith.constant 0 : index
    %c0_4 = arith.constant 0 : index
    %9 = vector.load %arg3[%c0_3, %c0_4] : memref<1x1024xf32, #tpu.memory_space<vmem>>, vector<1x1024xf32>
    %10 = vector.broadcast %9 : vector<1x1024xf32> to vector<16x1024xf32>
    %11 = arith.addf %8, %10 : vector<16x1024xf32>
    %cst_5 = arith.constant 0.000000e+00 : f32
    %12 = vector.broadcast %cst_5 : f32 to vector<16x1024xf32>
    %13 = arith.maximumf %11, %12 : vector<16x1024xf32>
    %14 = arith.truncf %13 : vector<16x1024xf32> to vector<16x1024xbf16>
    %c0_i32_6 = arith.constant 0 : i32
    %15 = tpu.memref_slice %arg14[%c0_i32_6] : memref<3x!tpu.dma_semaphore, #tpu.memory_space<semaphore_mem>> -> memref<1x!tpu.dma_semaphore, #tpu.memory_space<semaphore_mem>>
    %16 = tpu.memref_squeeze %15 : memref<1x!tpu.dma_semaphore, #tpu.memory_space<semaphore_mem>> -> memref<!tpu.dma_semaphore, #tpu.memory_space<semaphore_mem>>
    tpu.wait_dma2 semaphore(%16 : memref<!tpu.dma_semaphore, #tpu.memory_space<semaphore_mem>>) src(%arg7 : memref<1024x1024xbf16, #tpu.memory_space<any>>) dst(%arg11 : memref<1024x1024xbf16, #tpu.memory_space<vmem>>)
    %c0_7 = arith.constant 0 : index
    %c0_8 = arith.constant 0 : index
    %17 = vector.load %arg11[%c0_7, %c0_8] : memref<1024x1024xbf16, #tpu.memory_space<vmem>>, vector<1024x1024xbf16>
    %cst_9 = arith.constant dense<0.000000e+00> : vector<16x1024xf32>
    %18 = tpu.matmul %14, %17, %cst_9 {dimension_numbers = #tpu.dot_dimension_numbers<[1], [0], [0], [1], [0, 0, 1, 1], [], []>} : vector<16x1024xbf16>, vector<1024x1024xbf16>, vector<16x1024xf32> -> vector<16x1024xf32>
    %c0_10 = arith.constant 0 : index
    %c0_11 = arith.constant 0 : index
    %19 = vector.load %arg4[%c0_10, %c0_11] : memref<1x1024xf32, #tpu.memory_space<vmem>>, vector<1x1024xf32>
    %20 = vector.broadcast %19 : vector<1x1024xf32> to vector<16x1024xf32>
    %21 = arith.addf %18, %20 : vector<16x1024xf32>
    %cst_12 = arith.constant 0.000000e+00 : f32
    %22 = vector.broadcast %cst_12 : f32 to vector<16x1024xf32>
    %23 = arith.maximumf %21, %22 : vector<16x1024xf32>
    %24 = arith.truncf %23 : vector<16x1024xf32> to vector<16x1024xbf16>
    %c1_i32_13 = arith.constant 1 : i32
    %25 = tpu.memref_slice %arg14[%c1_i32_13] : memref<3x!tpu.dma_semaphore, #tpu.memory_space<semaphore_mem>> -> memref<1x!tpu.dma_semaphore, #tpu.memory_space<semaphore_mem>>
    %26 = tpu.memref_squeeze %25 : memref<1x!tpu.dma_semaphore, #tpu.memory_space<semaphore_mem>> -> memref<!tpu.dma_semaphore, #tpu.memory_space<semaphore_mem>>
    tpu.wait_dma2 semaphore(%26 : memref<!tpu.dma_semaphore, #tpu.memory_space<semaphore_mem>>) src(%arg8 : memref<1024x512xbf16, #tpu.memory_space<any>>) dst(%arg12 : memref<1024x512xbf16, #tpu.memory_space<vmem>>)
    %c0_14 = arith.constant 0 : index
    %c0_15 = arith.constant 0 : index
    %27 = vector.load %arg12[%c0_14, %c0_15] : memref<1024x512xbf16, #tpu.memory_space<vmem>>, vector<1024x512xbf16>
    %cst_16 = arith.constant dense<0.000000e+00> : vector<16x512xf32>
    %28 = tpu.matmul %24, %27, %cst_16 {dimension_numbers = #tpu.dot_dimension_numbers<[1], [0], [0], [1], [0, 0, 1, 1], [], []>} : vector<16x1024xbf16>, vector<1024x512xbf16>, vector<16x512xf32> -> vector<16x512xf32>
    %c0_17 = arith.constant 0 : index
    %c0_18 = arith.constant 0 : index
    %29 = vector.load %arg5[%c0_17, %c0_18] : memref<1x512xf32, #tpu.memory_space<vmem>>, vector<1x512xf32>
    %30 = vector.broadcast %29 : vector<1x512xf32> to vector<16x512xf32>
    %31 = arith.addf %28, %30 : vector<16x512xf32>
    %cst_19 = arith.constant 0.000000e+00 : f32
    %32 = vector.broadcast %cst_19 : f32 to vector<16x512xf32>
    %33 = arith.maximumf %31, %32 : vector<16x512xf32>
    %c2_i32_20 = arith.constant 2 : i32
    %34 = tpu.memref_slice %arg14[%c2_i32_20] : memref<3x!tpu.dma_semaphore, #tpu.memory_space<semaphore_mem>> -> memref<1x!tpu.dma_semaphore, #tpu.memory_space<semaphore_mem>>
    %35 = tpu.memref_squeeze %34 : memref<1x!tpu.dma_semaphore, #tpu.memory_space<semaphore_mem>> -> memref<!tpu.dma_semaphore, #tpu.memory_space<semaphore_mem>>
    tpu.wait_dma2 semaphore(%35 : memref<!tpu.dma_semaphore, #tpu.memory_space<semaphore_mem>>) src(%arg9 : memref<512x128xf32, #tpu.memory_space<any>>) dst(%arg13 : memref<512x128xf32, #tpu.memory_space<vmem>>)
    %c0_21 = arith.constant 0 : index
    %c0_22 = arith.constant 0 : index
    %36 = vector.load %arg13[%c0_21, %c0_22] : memref<512x128xf32, #tpu.memory_space<vmem>>, vector<512x128xf32>
    %cst_23 = arith.constant dense<0.000000e+00> : vector<16x128xf32>
    %37 = tpu.matmul %33, %36, %cst_23 {dimension_numbers = #tpu.dot_dimension_numbers<[1], [0], [0], [1], [0, 0, 1, 1], [], []>} : vector<16x512xf32>, vector<512x128xf32>, vector<16x128xf32> -> vector<16x128xf32>
    %c0_24 = arith.constant 0 : index
    %c0_25 = arith.constant 0 : index
    %38 = vector.load %arg6[%c0_24, %c0_25] : memref<1x128xf32, #tpu.memory_space<vmem>>, vector<1x128xf32>
    %39 = vector.broadcast %38 : vector<1x128xf32> to vector<16x128xf32>
    %40 = arith.addf %37, %39 : vector<16x128xf32>
    %c0_26 = arith.constant 0 : index
    %c0_27 = arith.constant 0 : index
    %41 = vector.load %arg10[%c0_26, %c0_27] : memref<16x128xf32, #tpu.memory_space<vmem>>, vector<16x128xf32>
    tpu.vector_store %arg10[%c0_26, %c0_27], %40 {strides = array<i32>} : memref<16x128xf32, #tpu.memory_space<vmem>>, vector<16x128xf32>,
    return
  }
  func.func @transform_0(%arg0: i32) -> (i32, i32) {
    %c0_i32 = arith.constant 0 : i32
    %c0_i32_0 = arith.constant 0 : i32
    return %arg0, %c0_i32 : i32, i32
  }
  func.func @transform_1(%arg0: i32) -> (i32, i32) {
    %c0_i32 = arith.constant 0 : i32
    %c0_i32_0 = arith.constant 0 : i32
    %c0_i32_1 = arith.constant 0 : i32
    return %c0_i32, %c0_i32_0 : i32, i32
  }
  func.func @transform_2(%arg0: i32) -> (i32, i32) {
    %c0_i32 = arith.constant 0 : i32
    %c0_i32_0 = arith.constant 0 : i32
    %c0_i32_1 = arith.constant 0 : i32
    return %c0_i32, %c0_i32_0 : i32, i32
  }
  func.func @transform_3(%arg0: i32) -> (i32, i32) {
    %c0_i32 = arith.constant 0 : i32
    %c0_i32_0 = arith.constant 0 : i32
    %c0_i32_1 = arith.constant 0 : i32
    return %c0_i32, %c0_i32_0 : i32, i32
  }
  func.func @transform_4(%arg0: i32) -> (i32, i32) {
    %c0_i32 = arith.constant 0 : i32
    %c0_i32_0 = arith.constant 0 : i32
    %c0_i32_1 = arith.constant 0 : i32
    return %c0_i32, %c0_i32_0 : i32, i32
  }
  func.func @transform_5(%arg0: i32) -> (i32, i32) {
    %c0_i32 = arith.constant 0 : i32
    %c0_i32_0 = arith.constant 0 : i32
    %c0_i32_1 = arith.constant 0 : i32
    return %c0_i32, %c0_i32_0 : i32, i32
  }
  func.func @transform_9(%arg0: i32) -> (i32, i32) {
    %c0_i32 = arith.constant 0 : i32
    %c0_i32_0 = arith.constant 0 : i32
    return %arg0, %c0_i32 : i32, i32
  }
}

</mosaic_0001>

<bundles_post_ra>
// kernel: tpu_custom_call.1
= control target key start
LH: loop header
LB: loop body
LE: loop exit
PB: predicated region body
PF: predicated region fallthrough
CT: control target
= control target key end

     0   :  { %14 = vsyncpa [#allocation7], 0  ;;  %s3882_s0 = inlined_call_operand.hbm [shape: bf16[16,128], index: 0, kind: input, shape index: {}]   ;;  %s3883_s1 = inlined_call_operand.hbm [shape: bf16[128,1024], index: 1, kind: input, shape index: {}]   ;;  %s3884_s2 = inlined_call_operand.hbm [shape: f32[1,1024], index: 2, kind: input, shape index: {}]   ;;  %s3885_s3 = inlined_call_operand.hbm [shape: f32[1,1024], index: 3, kind: input, shape index: {}]   ;;  %s3886_s4 = inlined_call_operand.hbm [shape: f32[1,512], index: 4, kind: input, shape index: {}]   ;;  %s3887_s5 = inlined_call_operand.hbm [shape: f32[1,128], index: 5, kind: input, shape index: {}]   ;;  %s3888_s6 = inlined_call_operand.hbm [shape: bf16[1024,1024], index: 6, kind: input, shape index: {}]   ;;  %s3889_s7 = inlined_call_operand.hbm [shape: bf16[1024,512], index: 7, kind: input, shape index: {}]   ;;  %s3890_s8 = inlined_call_operand.hbm [shape: f32[512,128], index: 8, kind: input, shape index: {}]   ;;  %s3891_s9 = inlined_call_operand.hbm [shape: f32[16,128], index: 9, kind: output, shape index: {}]  }
   0x1   :  { %15 = vsyncpa [#allocation10], 0 }
   0x2   :  { %16 = vsyncpa [#allocation13], 0 }
   0x3   :  { %17 = vsyncpa [#allocation16], 0 }
   0x4   :  { %18 = vsyncpa [#allocation8], 0  ;;  %s3509_s30 = smov [#allocation9]   ;;  %s3317_s13 = scalar_lea.hbm %s3883_s1, 8192 }
   0x5   :  { %s36_s10 = sshll.u32 %s3509_s30, 4  ;;  %p3318_p0 = scmp.ne.s32.totalorder %s3883_s1, %s3317_s13  ;;  %s37_s10 = int_to_ptr.vmem [resolvable:$true] %s36_s10 }
   0x6   :  { %p3321_p1 = scmp.lt.u32.totalorder %s3317_s13, %s3883_s1 }
   0x8   :  { %p3323_p2 = pnand %p3321_p1, %p3318_p0 }
   0xa   :  { %3326 = shalt.err (!%p3323_p2)
}
   0xb   :  { %s3327_s18 = scalar_lea.vmem %s37_s10, 8192  ;;  %p3332_p4 = scmp.lt.s32.totalorder %s37_s10, %s37_s10 }
   0xc   :  { %p3328_p3 = scmp.ne.s32.totalorder %s37_s10, %s3327_s18  ;;  %p3333_p5 = scmp.lt.s32.totalorder %s3327_s18, %s3327_s18 }
   0xe   :  { %p3334_p6 = por %p3333_p5, %p3332_p4 }
  0x10   :  { %p3335_p7 = pnand %p3334_p6, %p3328_p3 }
  0x12   :  { %3338 = shalt.err (!%p3335_p7)
}
  0x13   :  { %s3510_s19 = smov 512   ;;  %s3511_s20 = smov 32  }
  0x14   :  { %42 = dma.hbm_to_vmem [thread:$0]  %s3883_s1, 8192, %s37_s10, [#allocation10], %s3510_s19, %s3510_s19, %s3511_s20  }
  0x15   :  { %s3512_s23 = smov [#allocation12]   ;;  %s3513_s25 = smov [#allocation6]  }
  0x16   :  { %s59_s24 = sshll.u32 %s3512_s23, 4  ;;  %s24_s26 = sshll.u32 %s3513_s25, 4  ;;  %s60_s24 = int_to_ptr.vmem [resolvable:$true] %s59_s24  ;;  %s25_s26 = int_to_ptr.vmem [resolvable:$true] %s24_s26 }
  0x17   :  { %s3339_s29 = scalar_lea.hbm %s3885_s3, 128 }
  0x18   :  { %p3340_p8 = scmp.ne.s32.totalorder %s3885_s3, %s3339_s29  ;;  %p3343_p9 = scmp.lt.u32.totalorder %s3339_s29, %s3885_s3 }
  0x1a   :  { %p3345_p10 = pnand %p3343_p9, %p3340_p8 }
  0x1c   :  { %3348 = shalt.err (!%p3345_p10)
}
  0x1d   :  { %s3349_s1 = scalar_lea.vmem %s60_s24, 128  ;;  %p3354_p12 = scmp.lt.s32.totalorder %s60_s24, %s60_s24 }
  0x1e   :  { %p3350_p11 = scmp.ne.s32.totalorder %s60_s24, %s3349_s1  ;;  %p3355_p13 = scmp.lt.s32.totalorder %s3349_s1, %s3349_s1 }
  0x20   :  { %p3356_p0 = por %p3355_p13, %p3354_p12 }
  0x22   :  { %p3357_p1 = pnand %p3356_p0, %p3350_p11 }
  0x24   :  { %3360 = shalt.err (!%p3357_p1)
}
  0x25   :  { %62 = dma.hbm_to_vmem [thread:$0]  %s3885_s3, 128, %s60_s24, [#allocation13]  }
  0x26   :  { %s3361_s17 = scalar_lea.hbm %s3882_s0, 128 }
  0x27   :  { %p3362_p2 = scmp.ne.s32.totalorder %s3882_s0, %s3361_s17  ;;  %p3365_p3 = scmp.lt.u32.totalorder %s3361_s17, %s3882_s0 }
  0x29   :  { %p3367_p4 = pnand %p3365_p3, %p3362_p2 }
  0x2b   :  { %3370 = shalt.err (!%p3367_p4)
}
  0x2c   :  { %s3371_s23 = scalar_lea.vmem %s25_s26, 128  ;;  %p3376_p6 = scmp.lt.s32.totalorder %s25_s26, %s25_s26 }
  0x2d   :  { %p3372_p5 = scmp.ne.s32.totalorder %s25_s26, %s3371_s23  ;;  %p3377_p7 = scmp.lt.s32.totalorder %s3371_s23, %s3371_s23 }
  0x2f   :  { %p3378_p8 = por %p3377_p7, %p3376_p6 }
  0x31   :  { %p3379_p9 = pnand %p3378_p8, %p3372_p5 }
  0x33   :  { %3382 = shalt.err (!%p3379_p9)
}
  0x34   :  { %s3514_s3 = smov 64   ;;  %s3515_s24 = smov 4  }
  0x35   :  { %30 = dma.hbm_to_vmem [thread:$0]  %s3882_s0, 128, %s25_s26, [#allocation7], %s3514_s3, %s3514_s3, %s3515_s24  }
  0x36   :  { %s3516_s28 = smov [#allocation11]   ;;  %s3517_s30 = smov [#allocation14]  }
  0x37   :  { %s49_s29 = sshll.u32 %s3516_s28, 4  ;;  %s69_s11 = sshll.u32 %s3517_s30, 4  ;;  %s50_s29 = int_to_ptr.vmem [resolvable:$true] %s49_s29  ;;  %s70_s11 = int_to_ptr.vmem [resolvable:$true] %s69_s11 }
  0x38   :  { %s3383_s1 = scalar_lea.hbm %s3884_s2, 128 }
  0x39   :  { %p3384_p10 = scmp.ne.s32.totalorder %s3884_s2, %s3383_s1  ;;  %p3387_p11 = scmp.lt.u32.totalorder %s3383_s1, %s3884_s2 }
  0x3b   :  { %p3389_p12 = pnand %p3387_p11, %p3384_p10 }
  0x3d   :  { %3392 = shalt.err (!%p3389_p12)
}
  0x3e   :  { %s3393_s0 = scalar_lea.vmem %s50_s29, 128  ;;  %p3398_p0 = scmp.lt.s32.totalorder %s50_s29, %s50_s29 }
  0x3f   :  { %p3394_p13 = scmp.ne.s32.totalorder %s50_s29, %s3393_s0  ;;  %p3399_p1 = scmp.lt.s32.totalorder %s3393_s0, %s3393_s0 }
  0x41   :  { %p3400_p2 = por %p3399_p1, %p3398_p0 }
  0x43   :  { %p3401_p3 = pnand %p3400_p2, %p3394_p13 }
  0x45   :  { %3404 = shalt.err (!%p3401_p3)
}
  0x46   :  { %52 = dma.hbm_to_vmem [thread:$0]  %s3884_s2, 128, %s50_s29, [#allocation10]  }
  0x47   :  { %s3405_s21 = scalar_lea.hbm %s3886_s4, 64 }
  0x48   :  { %p3406_p4 = scmp.ne.s32.totalorder %s3886_s4, %s3405_s21  ;;  %p3409_p5 = scmp.lt.u32.totalorder %s3405_s21, %s3886_s4 }
  0x4a   :  { %p3411_p6 = pnand %p3409_p5, %p3406_p4 }
  0x4c   :  { %3414 = shalt.err (!%p3411_p6)
}
  0x4d   :  { %s3415_s28 = scalar_lea.vmem %s70_s11, 64  ;;  %p3420_p8 = scmp.lt.s32.totalorder %s70_s11, %s70_s11 }
  0x4e   :  { %p3416_p7 = scmp.ne.s32.totalorder %s70_s11, %s3415_s28  ;;  %p3421_p9 = scmp.lt.s32.totalorder %s3415_s28, %s3415_s28 }
  0x50   :  { %p3422_p10 = por %p3421_p9, %p3420_p8 }
  0x52   :  { %p3423_p11 = pnand %p3422_p10, %p3416_p7 }
  0x54   :  { %3426 = shalt.err (!%p3423_p11)
}
  0x55   :  { %72 = dma.hbm_to_vmem [thread:$0]  %s3886_s4, 64, %s70_s11, [#allocation13]  }
  0x56   :  { %s3518_s30 = smov [#allocation15]   ;;  %s3427_s10 = scalar_lea.hbm %s3887_s5, 16 }
  0x57   :  { %s79_s12 = sshll.u32 %s3518_s30, 4  ;;  %p3428_p12 = scmp.ne.s32.totalorder %s3887_s5, %s3427_s10  ;;  %s80_s12 = int_to_ptr.vmem [resolvable:$true] %s79_s12 }
  0x58   :  { %p3431_p13 = scmp.lt.u32.totalorder %s3427_s10, %s3887_s5 }
  0x5a   :  { %p3433_p0 = pnand %p3431_p13, %p3428_p12 }
  0x5c   :  { %3436 = shalt.err (!%p3433_p0)
}
  0x5d   :  { %s3437_s26 = scalar_lea.vmem %s80_s12, 16  ;;  %s3441_s4 = scalar_lea.vmem %s80_s12, 32 }
  0x5e   :  { %p3438_p1 = scmp.ne.s32.totalorder %s80_s12, %s3437_s26  ;;  %p3442_p2 = scmp.lt.s32.totalorder %s80_s12, %s80_s12 }
  0x5f   :  { %p3443_p3 = scmp.lt.s32.totalorder %s3441_s4, %s3437_s26 }
  0x61   :  { %p3444_p4 = por %p3443_p3, %p3442_p2 }
  0x63   :  { %p3445_p5 = pnand %p3444_p4, %p3438_p1 }
  0x65   :  { %3448 = shalt.err (!%p3445_p5)
}
  0x66   :  { %82 = dma.hbm_to_vmem [thread:$0]  %s3887_s5, 16, %s80_s12, [#allocation16]  }
  0x67   :  { %3493 = dma.done.wait [#allocation7], 128  }
  0x68   :  { %3494 = vsyncadd [#allocation7], 4294967168 }
  0x69   :  { %3495 = dma.done.wait [#allocation10], 8320  }
  0x6a   :  { %3496 = vsyncadd [#allocation10], 4294958976 }
  0x6b   :  { %3497 = dma.done.wait [#allocation13], 192  }
  0x6c   :  { %3498 = vsyncadd [#allocation13], 4294967104 }
  0x6d   :  { %3499 = dma.done.wait [#allocation16], 16  }
  0x6e   :  { %3500 = vsyncadd [#allocation16], 4294967280  ;;  %s106_s18 = sld [smem:[#allocation0]]   ;;  %s3519_s20 = smov 1024   ;;  %v3520_v0 = vmov 0  }
  0x6f   :  { %118 = sst [smem:[#allocation19]] %s3519_s20  ;;  %650 = vmatprep.mubr.bf16.mxu0 %v3520_v0  ;;  %693 = vmatprep.mubr.bf16.mxu1 %v3520_v0  ;;  %s3521_s21 = smov 8  }
  0x70   :  { %120 = sst [smem:[#allocation19 + $0x1]] %s3519_s20  ;;  %s3522_s5 = smov [#allocation2]  }
  0x71   :  { %122 = sst [smem:[#allocation19 + $0x2]] %s3521_s21  ;;  %s114_s22 = sshll.u32 %s3522_s5, 4  ;;  %s115_s22 = int_to_ptr.vmem [resolvable:$true] %s114_s22 }
  0x72   :  { %124 = sst [smem:[#allocation19 + $0x3]] %s3514_s3  ;;  %s3523_s27 = smov 128  }
  0x73   :  { %130 = sst [smem:[#allocation19 + $0x6]] %s3510_s19  ;;  %s3524_s28 = smov 2  }
  0x74   :  { %132 = sst [smem:[#allocation19 + $0x7]] %s3514_s3  ;;  %s2983_s23 = sshll.u32 %s106_s18, 26 }
  0x75   :  { %134 = sst [smem:[#allocation19 + $0x8]] %s3515_s24  ;;  %s2984_s25 = sadd.s32 134217728, %s2983_s23 }
  0x76   :  { %126 = sst [smem:[#allocation19 + $0x4]] %s3523_s27  ;;  %s3525_s2 = smov [#allocation5]  }
  0x77   :  { %128 = sst [smem:[#allocation19 + $0x5]] %s3524_s28  ;;  %s3526_s29 = smov [#allocation18]  }
  0x78   :  { %136 = dma.general %s3888_s6, 65536, %s115_s22, %s3525_s2, %s3526_s29, [#allocation19], %s2984_s25, 0  }
  0x79   :  { %153 = sst [smem:[#allocation21]] %s3510_s19  ;;  %s3527_s13 = smov [#allocation3]  }
  0x7a   :  { %155 = sst [smem:[#allocation21 + $0x1]] %s3510_s19  ;;  %s149_s1 = sshll.u32 %s3527_s13, 4  ;;  %s150_s1 = int_to_ptr.vmem [resolvable:$true] %s149_s1 }
  0x7b   :  { %157 = sst [smem:[#allocation21 + $0x2]] %s3515_s24  ;;  %s3528_s10 = smov 256  }
  0x7c   :  { %159 = sst [smem:[#allocation21 + $0x3]] %s3514_s3  ;;  %s3529_s6 = smov [#allocation5 + $0x1]  }
  0x7d   :  { %161 = sst [smem:[#allocation21 + $0x4]] %s3523_s27  ;;  %s3530_s14 = smov [#allocation20]  }
  0x7e   :  { %163 = sst [smem:[#allocation21 + $0x5]] %s3524_s28  ;;  %s3449_s0 = scalar_lea.hbm %s3890_s8, 8192 }
  0x7f   :  { %165 = sst [smem:[#allocation21 + $0x6]] %s3528_s10  ;;  %p3450_p6 = scmp.ne.s32.totalorder %s3890_s8, %s3449_s0 }
  0x80   :  { %167 = sst [smem:[#allocation21 + $0x7]] %s3514_s3  ;;  %p3453_p7 = scmp.lt.u32.totalorder %s3449_s0, %s3890_s8 }
  0x81   :  { %169 = sst [smem:[#allocation21 + $0x8]] %s3515_s24 }
  0x82   :  { %171 = dma.general %s3889_s7, 32768, %s150_s1, %s3529_s6, %s3530_s14, [#allocation21], %s2984_s25, 0  }
  0x83   :  { %v186_v1 = vld [vmem:[#allocation9] sm:$0xff]  ;;  %v187_v3 = vld [vmem:[#allocation9 + $0x8] sm:$0xff]  ;;  %v188_v63 = vld [vmem:[#allocation9 + $0x10] sm:$0xff]  ;;  %s3531_s7 = smov [#allocation4]   ;;  %p3455_p8 = pnand %p3453_p7, %p3450_p6 }
  0x84   :  { %v190_v2 = vld [vmem:[#allocation9 + $0x20] sm:$0xff]  ;;  %v191_v5 = vld [vmem:[#allocation9 + $0x28] sm:$0xff]  ;;  %s180_s3 = sshll.u32 %s3531_s7, 4  ;;  %s181_s3 = int_to_ptr.vmem [resolvable:$true] %s180_s3 }
  0x85   :  { %v2989_v4 = vcombine.high %v186_v1, %v190_v2  ;;  %v2988_v6 = vcombine.low %v186_v1, %v190_v2  ;;  %v194_v7 = vld [vmem:[#allocation9 + $0x40] sm:$0xff]  ;;  %v2991_v9 = vcombine.high %v187_v3, %v191_v5  ;;  %v2990_v10 = vcombine.low %v187_v3, %v191_v5  ;;  %v195_v12 = vld [vmem:[#allocation9 + $0x48] sm:$0xff]  ;;  %v192_v1 = vld [vmem:[#allocation9 + $0x30] sm:$0xff] }
  0x86   :  { %v198_v8 = vld [vmem:[#allocation9 + $0x60] sm:$0xff]  ;;  %v199_v13 = vld [vmem:[#allocation9 + $0x68] sm:$0xff]  ;;  %v189_v2 = vld [vmem:[#allocation9 + $0x18] sm:$0xff] }
  0x87   :  { %v2997_v11 = vcombine.high %v194_v7, %v198_v8  ;;  %v202_v14 = vld [vmem:[#allocation9 + $0x80] sm:$0xff]  ;;  %618 = vmatprep.subr.bf16.mxu0 %v2989_v4  ;;  %v2999_v15 = vcombine.high %v195_v12, %v199_v13  ;;  %v203_v17 = vld [vmem:[#allocation9 + $0x88] sm:$0xff]  ;;  %661 = vmatprep.subr.bf16.mxu1 %v2991_v9  ;;  %v2996_v19 = vcombine.low %v194_v7, %v198_v8  ;;  %v193_v3 = vld [vmem:[#allocation9 + $0x38] sm:$0xff] }
  0x88   :  { %v206_v16 = vld [vmem:[#allocation9 + $0xa0] sm:$0xff]  ;;  %v207_v18 = vld [vmem:[#allocation9 + $0xa8] sm:$0xff]  ;;  %619 = vmatpush1.bf16.msra.mxu0 %v2988_v6  ;;  %662 = vmatpush1.bf16.msra.mxu1 %v2990_v10  ;;  %v2998_v20 = vcombine.low %v195_v12, %v199_v13  ;;  %v2993_v6 = vcombine.high %v188_v63, %v192_v1  ;;  %v2995_v7 = vcombine.high %v189_v2, %v193_v3  ;;  %v196_v8 = vld [vmem:[#allocation9 + $0x50] sm:$0xff] }
  0x89   :  { %620 = vmatprep.subr.bf16.mxu0 %v2997_v11  ;;  %v3005_v21 = vcombine.high %v202_v14, %v206_v16  ;;  %663 = vmatprep.subr.bf16.mxu1 %v2999_v15  ;;  %v3007_v22 = vcombine.high %v203_v17, %v207_v18  ;;  %v210_v23 = vld [vmem:[#allocation9 + $0xc0] sm:$0xff]  ;;  %v211_v25 = vld [vmem:[#allocation9 + $0xc8] sm:$0xff]  ;;  %v3004_v27 = vcombine.low %v202_v14, %v206_v16  ;;  %v200_v9 = vld [vmem:[#allocation9 + $0x70] sm:$0xff] }
  0x8a   :  { %v214_v24 = vld [vmem:[#allocation9 + $0xe0] sm:$0xff]  ;;  %v215_v26 = vld [vmem:[#allocation9 + $0xe8] sm:$0xff]  ;;  %v3006_v28 = vcombine.low %v203_v17, %v207_v18  ;;  %v3681_v10 = vld [vmem:[#allocation6] sm:$0xff]   ;;  %v2992_v13 = vcombine.low %v188_v63, %v192_v1  ;;  %v2994_v14 = vcombine.low %v189_v2, %v193_v3  ;;  %v3001_v15 = vcombine.high %v196_v8, %v200_v9 }
  0x8b   :  { %v3013_v29 = vcombine.high %v210_v23, %v214_v24  ;;  %v3015_v30 = vcombine.high %v211_v25, %v215_v26  ;;  %v218_v31 = vld [vmem:[#allocation9 + $0x100] sm:$0xff]  ;;  %v219_v33 = vld [vmem:[#allocation9 + $0x108] sm:$0xff]  ;;  %v3012_v35 = vcombine.low %v210_v23, %v214_v24  ;;  %v3014_v36 = vcombine.low %v211_v25, %v215_v26  ;;  %v197_v11 = vld [vmem:[#allocation9 + $0x58] sm:$0xff] }
  0x8c   :  { %621 = vmatpush1.bf16.msra.mxu0 %v2996_v19  ;;  %664 = vmatpush1.bf16.msra.mxu1 %v2998_v20  ;;  %v222_v32 = vld [vmem:[#allocation9 + $0x120] sm:$0xff]  ;;  %v223_v34 = vld [vmem:[#allocation9 + $0x128] sm:$0xff]  ;;  %v201_v12 = vld [vmem:[#allocation9 + $0x78] sm:$0xff] }
  0x8d   :  { %622 = vmatprep.subr.bf16.mxu0 %v3005_v21  ;;  %665 = vmatprep.subr.bf16.mxu1 %v3007_v22  ;;  %v3021_v37 = vcombine.high %v218_v31, %v222_v32  ;;  %v3023_v38 = vcombine.high %v219_v33, %v223_v34  ;;  %v226_v39 = vld [vmem:[#allocation9 + $0x140] sm:$0xff]  ;;  %v227_v41 = vld [vmem:[#allocation9 + $0x148] sm:$0xff]  ;;  %v3020_v43 = vcombine.low %v218_v31, %v222_v32  ;;  %v204_v17 = vld [vmem:[#allocation9 + $0x90] sm:$0xff] }
  0x8e   :  { %v230_v40 = vld [vmem:[#allocation9 + $0x160] sm:$0xff]  ;;  %v231_v42 = vld [vmem:[#allocation9 + $0x168] sm:$0xff]  ;;  %v3022_v44 = vcombine.low %v219_v33, %v223_v34  ;;  %v3003_v16 = vcombine.high %v197_v11, %v201_v12  ;;  %v208_v18 = vld [vmem:[#allocation9 + $0xb0] sm:$0xff]  ;;  %v3000_v21 = vcombine.low %v196_v8, %v200_v9  ;;  %v3002_v22 = vcombine.low %v197_v11, %v201_v12 }
  0x8f   :  { %v3029_v45 = vcombine.high %v226_v39, %v230_v40  ;;  %v3031_v46 = vcombine.high %v227_v41, %v231_v42  ;;  %v234_v47 = vld [vmem:[#allocation9 + $0x180] sm:$0xff]  ;;  %v235_v49 = vld [vmem:[#allocation9 + $0x188] sm:$0xff]  ;;  %v3028_v51 = vcombine.low %v226_v39, %v230_v40  ;;  %v3030_v52 = vcombine.low %v227_v41, %v231_v42  ;;  %v205_v19 = vld [vmem:[#allocation9 + $0x98] sm:$0xff] }
  0x90   :  { %623 = vmatpush1.bf16.msra.mxu0 %v3004_v27  ;;  %666 = vmatpush1.bf16.msra.mxu1 %v3006_v28  ;;  %v238_v48 = vld [vmem:[#allocation9 + $0x1a0] sm:$0xff]  ;;  %v239_v50 = vld [vmem:[#allocation9 + $0x1a8] sm:$0xff]  ;;  %v209_v20 = vld [vmem:[#allocation9 + $0xb8] sm:$0xff]  ;;  %v3009_v23 = vcombine.high %v204_v17, %v208_v18 }
  0x91   :  { %624 = vmatprep.subr.bf16.mxu0 %v3013_v29  ;;  %667 = vmatprep.subr.bf16.mxu1 %v3015_v30  ;;  %v3037_v53 = vcombine.high %v234_v47, %v238_v48  ;;  %v3039_v54 = vcombine.high %v235_v49, %v239_v50  ;;  %v242_v55 = vld [vmem:[#allocation9 + $0x1c0] sm:$0xff]  ;;  %v243_v57 = vld [vmem:[#allocation9 + $0x1c8] sm:$0xff]  ;;  %v3036_v59 = vcombine.low %v234_v47, %v238_v48  ;;  %v212_v25 = vld [vmem:[#allocation9 + $0xd0] sm:$0xff] }
  0x92   :  { %v246_v56 = vld [vmem:[#allocation9 + $0x1e0] sm:$0xff]  ;;  %v247_v58 = vld [vmem:[#allocation9 + $0x1e8] sm:$0xff]  ;;  %v3038_v60 = vcombine.low %v235_v49, %v239_v50  ;;  %v3011_v24 = vcombine.high %v205_v19, %v209_v20  ;;  %v216_v26 = vld [vmem:[#allocation9 + $0xf0] sm:$0xff]  ;;  %v3008_v29 = vcombine.low %v204_v17, %v208_v18  ;;  %v3010_v30 = vcombine.low %v205_v19, %v209_v20 }
  0x93   :  { %v3045_v61 = vcombine.high %v242_v55, %v246_v56  ;;  %v3047_v62 = vcombine.high %v243_v57, %v247_v58  ;;  %v3044_v4 = vcombine.low %v242_v55, %v246_v56  ;;  %v3046_v5 = vcombine.low %v243_v57, %v247_v58  ;;  %v213_v27 = vld [vmem:[#allocation9 + $0xd8] sm:$0xff]  ;;  %v220_v33 = vld [vmem:[#allocation9 + $0x110] sm:$0xff] }
  0x94   :  { %625 = vmatpush1.bf16.msra.mxu0 %v3012_v35  ;;  %668 = vmatpush1.bf16.msra.mxu1 %v3014_v36  ;;  %v217_v28 = vld [vmem:[#allocation9 + $0xf8] sm:$0xff]  ;;  %v3017_v31 = vcombine.high %v212_v25, %v216_v26  ;;  %v224_v34 = vld [vmem:[#allocation9 + $0x130] sm:$0xff] }
  0x95   :  { %626 = vmatprep.subr.bf16.mxu0 %v3021_v37  ;;  %669 = vmatprep.subr.bf16.mxu1 %v3023_v38  ;;  %v3019_v32 = vcombine.high %v213_v27, %v217_v28  ;;  %v221_v35 = vld [vmem:[#allocation9 + $0x118] sm:$0xff]  ;;  %v3016_v37 = vcombine.low %v212_v25, %v216_v26  ;;  %v3018_v38 = vcombine.low %v213_v27, %v217_v28  ;;  %v228_v40 = vld [vmem:[#allocation9 + $0x150] sm:$0xff] }
  0x96   :  { %v225_v36 = vld [vmem:[#allocation9 + $0x138] sm:$0xff]  ;;  %v3025_v39 = vcombine.high %v220_v33, %v224_v34  ;;  %v232_v41 = vld [vmem:[#allocation9 + $0x170] sm:$0xff] }
  0x97   :  { %v229_v42 = vld [vmem:[#allocation9 + $0x158] sm:$0xff]  ;;  %v236_v48 = vld [vmem:[#allocation9 + $0x190] sm:$0xff] }
  0x98   :  { %627 = vmatpush1.bf16.msra.mxu0 %v3020_v43  ;;  %670 = vmatpush1.bf16.msra.mxu1 %v3022_v44  ;;  %v233_v43 = vld [vmem:[#allocation9 + $0x178] sm:$0xff]  ;;  %v3024_v44 = vcombine.low %v220_v33, %v224_v34  ;;  %v240_v49 = vld [vmem:[#allocation9 + $0x1b0] sm:$0xff] }
  0x99   :  { %628 = vmatprep.subr.bf16.mxu0 %v3029_v45  ;;  %671 = vmatprep.subr.bf16.mxu1 %v3031_v46  ;;  %v3026_v45 = vcombine.low %v221_v35, %v225_v36  ;;  %v3033_v46 = vcombine.high %v228_v40, %v232_v41  ;;  %v3035_v47 = vcombine.high %v229_v42, %v233_v43  ;;  %v237_v50 = vld [vmem:[#allocation9 + $0x198] sm:$0xff]  ;;  %v244_v56 = vld [vmem:[#allocation9 + $0x1d0] sm:$0xff] }
  0x9a   :  { %v248_v57 = vld [vmem:[#allocation9 + $0x1f0] sm:$0xff]  ;;  %v245_v58 = vld [vmem:[#allocation9 + $0x1d8] sm:$0xff] }
  0x9b   :  { %v3048_v1 = vcombine.low %v244_v56, %v248_v57 }
  0x9c   :  { %629 = vmatpush1.bf16.msra.mxu0 %v3028_v51  ;;  %672 = vmatpush1.bf16.msra.mxu1 %v3030_v52  ;;  %v241_v51 = vld [vmem:[#allocation9 + $0x1b8] sm:$0xff]  ;;  %v3032_v52 = vcombine.low %v228_v40, %v232_v41 }
  0x9d   :  { %630 = vmatprep.subr.bf16.mxu0 %v3037_v53  ;;  %673 = vmatprep.subr.bf16.mxu1 %v3039_v54  ;;  %v3034_v53 = vcombine.low %v229_v42, %v233_v43  ;;  %v3041_v54 = vcombine.high %v236_v48, %v240_v49  ;;  %v3043_v55 = vcombine.high %v237_v50, %v241_v51 }
  0xa0   :  { %631 = vmatpush1.bf16.msra.mxu0 %v3036_v59  ;;  %674 = vmatpush1.bf16.msra.mxu1 %v3038_v60  ;;  %v249_v59 = vld [vmem:[#allocation9 + $0x1f8] sm:$0xff]  ;;  %v3040_v60 = vcombine.low %v236_v48, %v240_v49 }
  0xa1   :  { %632 = vmatprep.subr.bf16.mxu0 %v3045_v61  ;;  %675 = vmatprep.subr.bf16.mxu1 %v3047_v62  ;;  %v3042_v61 = vcombine.low %v237_v50, %v241_v51  ;;  %v3049_v62 = vcombine.high %v244_v56, %v248_v57  ;;  %v3051_v63 = vcombine.high %v245_v58, %v249_v59 }
  0xa2   :  { %v3050_v2 = vcombine.low %v245_v58, %v249_v59 }
  0xa4   :  { %633 = vmatpush1.bf16.msra.mxu0 %v3044_v4  ;;  %676 = vmatpush1.bf16.msra.mxu1 %v3046_v5 }
  0xa5   :  { %704 = vmatprep.subr.bf16.mxu0 %v2993_v6  ;;  %747 = vmatprep.subr.bf16.mxu1 %v2995_v7 }
  0xa7   :  { %651 = vmatmul.mubr.bf16.vlgmr.msra.gmra.mrb[0].mxu0 %v3681_v10  ;;  %694 = vmatmul.mubr.bf16.vlgmr.msra.gmra.mrb[0].mxu1 %v3681_v10 }
  0xa8   :  { %705 = vmatpush1.bf16.msra.mxu0 %v2992_v13  ;;  %748 = vmatpush1.bf16.msra.mxu1 %v2994_v14 }
  0xa9   :  { %706 = vmatprep.subr.bf16.mxu0 %v3001_v15  ;;  %749 = vmatprep.subr.bf16.mxu1 %v3003_v16 }
  0xaa   :  { %736 = vmatprep.mubr.bf16.mxu0 %v3520_v0  ;;  %779 = vmatprep.mubr.bf16.mxu1 %v3520_v0  ;;  %v3027_v0 = vcombine.high %v221_v35, %v225_v36 }
  0xac   :  { %707 = vmatpush1.bf16.msra.mxu0 %v3000_v21  ;;  %750 = vmatpush1.bf16.msra.mxu1 %v3002_v22 }
  0xad   :  { %708 = vmatprep.subr.bf16.mxu0 %v3009_v23  ;;  %751 = vmatprep.subr.bf16.mxu1 %v3011_v24 }
  0xb0   :  { %709 = vmatpush1.bf16.msra.mxu0 %v3008_v29  ;;  %752 = vmatpush1.bf16.msra.mxu1 %v3010_v30 }
  0xb1   :  { %710 = vmatprep.subr.bf16.mxu0 %v3017_v31  ;;  %753 = vmatprep.subr.bf16.mxu1 %v3019_v32 }
  0xb4   :  { %711 = vmatpush1.bf16.msra.mxu0 %v3016_v37  ;;  %754 = vmatpush1.bf16.msra.mxu1 %v3018_v38 }
  0xb5   :  { %712 = vmatprep.subr.bf16.mxu0 %v3025_v39  ;;  %755 = vmatprep.subr.bf16.mxu1 %v3027_v0 }
  0xb8   :  { %713 = vmatpush1.bf16.msra.mxu0 %v3024_v44  ;;  %756 = vmatpush1.bf16.msra.mxu1 %v3026_v45 }
  0xb9   :  { %714 = vmatprep.subr.bf16.mxu0 %v3033_v46  ;;  %757 = vmatprep.subr.bf16.mxu1 %v3035_v47 }
  0xbc   :  { %715 = vmatpush1.bf16.msra.mxu0 %v3032_v52  ;;  %758 = vmatpush1.bf16.msra.mxu1 %v3034_v53 }
  0xbd   :  { %716 = vmatprep.subr.bf16.mxu0 %v3041_v54  ;;  %759 = vmatprep.subr.bf16.mxu1 %v3043_v55 }
  0xc0   :  { %717 = vmatpush1.bf16.msra.mxu0 %v3040_v60  ;;  %760 = vmatpush1.bf16.msra.mxu1 %v3042_v61 }
  0xc1   :  { %718 = vmatprep.subr.bf16.mxu0 %v3049_v62  ;;  %761 = vmatprep.subr.bf16.mxu1 %v3051_v63 }
  0xc4   :  { %719 = vmatpush1.bf16.msra.mxu0 %v3048_v1  ;;  %762 = vmatpush1.bf16.msra.mxu1 %v3050_v2 }
  0xc7   :  { %737 = vmatmul.mubr.bf16.vlgmr.msra.gmra.mrb[4].mxu0 %v3681_v10  ;;  %780 = vmatmul.mubr.bf16.vlgmr.msra.gmra.mrb[4].mxu1 %v3681_v10 }
  0xc8   :  { %3458 = shalt.err (!%p3455_p8)  }
  0xc9   :  { %s3459_s18 = scalar_lea.vmem %s181_s3, 8192  ;;  %p3464_p10 = scmp.lt.s32.totalorder %s181_s3, %s181_s3 }
  0xca   :  { %p3460_p9 = scmp.ne.s32.totalorder %s181_s3, %s3459_s18  ;;  %p3465_p11 = scmp.lt.s32.totalorder %s3459_s18, %s3459_s18 }
  0xcc   :  { %p3466_p12 = por %p3465_p11, %p3464_p10 }
  0xce   :  { %p3467_p13 = pnand %p3466_p12, %p3460_p9 }
  0xd0   :  { %3470 = shalt.err (!%p3467_p13)  }
  0xd1   :  { %183 = dma.hbm_to_vmem [thread:$0]  %s3890_s8, 8192, %s181_s3, [#allocation5 + $0x2]  ;;  %v252_v3 = vlaneseq  ;;  %v250_v6 = vld [vmem:[#allocation11] sm:$0xff] }
  0xd3   :  { %v3701_v4 = vshrl.u32 %v252_v3, 7 }
  0xd5   :  { %v3704_v5 = vsub.s32 0, %v3701_v4  ;;  %v3707_v7 = vsub.s32 2, %v3701_v4  ;;  %v3710_v8 = vsub.s32 1, %v3701_v4  ;;  %v3713_v9 = vsub.s32 3, %v3701_v4 }
  0xd6   :  { %v270_v41 = vsub.s32 4, %v3701_v4  ;;  %v278_v42 = vsub.s32 6, %v3701_v4  ;;  %v274_v43 = vsub.s32 5, %v3701_v4  ;;  %v282_v44 = vsub.s32 7, %v3701_v4 }
  0xd7   :  { %v255_v10 = vrot.slane %v250_v6, %v3704_v5  ;;  %v263_v11 = vrot.slane %v250_v6, %v3707_v7  ;;  %v259_v12 = vrot.slane %v250_v6, %v3710_v8  ;;  %v267_v13 = vrot.slane %v250_v6, %v3713_v9 }
  0xd8   :  { %v271_v45 = vrot.slane %v250_v6, %v270_v41  ;;  %v279_v46 = vrot.slane %v250_v6, %v278_v42  ;;  %v275_v47 = vrot.slane %v250_v6, %v274_v43  ;;  %v283_v48 = vrot.slane %v250_v6, %v282_v44 }
 0x17a   :  { %v652_v14 = vpop.f32.mrb[0].mxu0  ;;  %v695_v16 = vpop.f32.mrb[0].mxu1 }
 0x17b   :  { %v653_v15 = vadd.f32 %v652_v14, %v255_v10  ;;  %v654_v17 = vpop.f32.mrb[1].mxu0  ;;  %v696_v18 = vadd.f32 %v695_v16, %v263_v11  ;;  %v697_v20 = vpop.f32.mrb[1].mxu1 }
 0x17c   :  { %v655_v19 = vadd.f32 %v654_v17, %v259_v12  ;;  %v656_v21 = vpop.f32.mrb[2].mxu0  ;;  %v698_v23 = vadd.f32 %v697_v20, %v267_v13  ;;  %v699_v25 = vpop.f32.mrb[2].mxu1 }
 0x17d   :  { %v790_v22 = vmax.f32 %v653_v15, 0.0  ;;  %v657_v24 = vadd.f32 %v656_v21, %v255_v10  ;;  %v658_v26 = vpop.f32.mrb[3].mxu0  ;;  %v792_v27 = vmax.f32 %v696_v18, 0.0  ;;  %v700_v28 = vadd.f32 %v699_v25, %v263_v11  ;;  %v701_v30 = vpop.f32.mrb[3].mxu1 }
 0x17e   :  { %v659_v29 = vadd.f32 %v658_v26, %v259_v12  ;;  %v702_v32 = vadd.f32 %v701_v30, %v267_v13  ;;  %v791_v33 = vmax.f32 %v655_v19, 0.0  ;;  %v793_v36 = vmax.f32 %v698_v23, 0.0 }
 0x17f   :  { %v798_v31 = vmax.f32 %v657_v24, 0.0  ;;  %v800_v34 = vmax.f32 %v700_v28, 0.0 }
 0x180   :  { %v799_v35 = vmax.f32 %v659_v29, 0.0  ;;  %v801_v38 = vmax.f32 %v702_v32, 0.0 }
 0x181   :  { %v3719_v37 = vpack.c.bf16 %v798_v31, %v790_v22  ;;  %v3721_v39 = vpack.c.bf16 %v800_v34, %v792_v27 }
 0x182   :  { %v3723_v0 = vpack.c.bf16 %v799_v35, %v791_v33  ;;  %v3725_v40 = vpack.c.bf16 %v801_v38, %v793_v36 }
 0x19a   :  { %v738_v49 = vpop.f32.mrb[4].mxu0  ;;  %v781_v51 = vpop.f32.mrb[4].mxu1 }
 0x19b   :  { %v739_v50 = vadd.f32 %v738_v49, %v271_v45  ;;  %v740_v52 = vpop.f32.mrb[5].mxu0  ;;  %v782_v53 = vadd.f32 %v781_v51, %v279_v46  ;;  %v783_v55 = vpop.f32.mrb[5].mxu1 }
 0x19c   :  { %v741_v54 = vadd.f32 %v740_v52, %v275_v47  ;;  %v742_v56 = vpop.f32.mrb[6].mxu0  ;;  %v784_v57 = vadd.f32 %v783_v55, %v283_v48  ;;  %v785_v59 = vpop.f32.mrb[6].mxu1 }
 0x19d   :  { %v743_v58 = vadd.f32 %v742_v56, %v271_v45  ;;  %v744_v60 = vpop.f32.mrb[7].mxu0  ;;  %v786_v61 = vadd.f32 %v785_v59, %v279_v46  ;;  %v787_v63 = vpop.f32.mrb[7].mxu1  ;;  %v794_v1 = vmax.f32 %v739_v50, 0.0  ;;  %v796_v10 = vmax.f32 %v782_v53, 0.0 }
 0x19e   :  { %v745_v62 = vadd.f32 %v744_v60, %v275_v47  ;;  %v788_v3 = vadd.f32 %v787_v63, %v283_v48  ;;  %v795_v6 = vmax.f32 %v741_v54, 0.0  ;;  %v797_v13 = vmax.f32 %v784_v57, 0.0 }
 0x19f   :  { %v802_v2 = vmax.f32 %v743_v58, 0.0  ;;  %v804_v11 = vmax.f32 %v786_v61, 0.0 }
 0x1a0   :  { %v803_v12 = vmax.f32 %v745_v62, 0.0  ;;  %v805_v15 = vmax.f32 %v788_v3, 0.0 }
 0x1a1   :  { %v3739_v14 = vpack.c.bf16 %v802_v2, %v794_v1  ;;  %v3741_v16 = vpack.c.bf16 %v804_v11, %v796_v10 }
 0x1a2   :  { %v3743_v17 = vpack.c.bf16 %v803_v12, %v795_v6  ;;  %v3745_v18 = vpack.c.bf16 %v805_v15, %v797_v13 }
 0x1a3   :  { %3501 = dma.done.wait [#allocation5], 65536 }
 0x1a4   :  { %3502 = vsyncadd [#allocation5], 4294901760  ;;  %1404 = vmatprep.mubr.bf16.mxu0 %v3723_v0  ;;  %1576 = vmatprep.mubr.bf16.mxu1 %v3723_v0  ;;  %v819_v19 = vld [vmem:[#allocation2 + $0x8] sm:$0xff]  ;;  %v821_v20 = vld [vmem:[#allocation2 + $0x18] sm:$0xff] }
 0x1a5   :  { %v818_v21 = vld [vmem:[#allocation2] sm:$0xff]  ;;  %1372 = vmatprep.subr.bf16.mxu0 %v819_v19  ;;  %1544 = vmatprep.subr.bf16.mxu1 %v821_v20  ;;  %v820_v22 = vld [vmem:[#allocation2 + $0x10] sm:$0xff]  ;;  %v827_v23 = vld [vmem:[#allocation2 + $0x48] sm:$0xff] }
 0x1a6   :  { %v829_v24 = vld [vmem:[#allocation2 + $0x58] sm:$0xff]  ;;  %1373 = vmatpush1.bf16.msra.mxu0 %v818_v21  ;;  %1545 = vmatpush1.bf16.msra.mxu1 %v820_v22  ;;  %v826_v25 = vld [vmem:[#allocation2 + $0x40] sm:$0xff]  ;;  %v828_v26 = vld [vmem:[#allocation2 + $0x50] sm:$0xff] }
 0x1a7   :  { %1374 = vmatprep.subr.bf16.mxu0 %v827_v23  ;;  %1546 = vmatprep.subr.bf16.mxu1 %v829_v24  ;;  %v835_v27 = vld [vmem:[#allocation2 + $0x88] sm:$0xff]  ;;  %v837_v28 = vld [vmem:[#allocation2 + $0x98] sm:$0xff]  ;;  %v834_v29 = vld [vmem:[#allocation2 + $0x80] sm:$0xff] }
 0x1a8   :  { %v836_v30 = vld [vmem:[#allocation2 + $0x90] sm:$0xff]  ;;  %v843_v31 = vld [vmem:[#allocation2 + $0xc8] sm:$0xff]  ;;  %v845_v32 = vld [vmem:[#allocation2 + $0xd8] sm:$0xff] }
 0x1a9   :  { %v842_v33 = vld [vmem:[#allocation2 + $0xc0] sm:$0xff]  ;;  %v844_v34 = vld [vmem:[#allocation2 + $0xd0] sm:$0xff]  ;;  %v851_v35 = vld [vmem:[#allocation2 + $0x108] sm:$0xff] }
 0x1aa   :  { %1375 = vmatpush1.bf16.msra.mxu0 %v826_v25  ;;  %1547 = vmatpush1.bf16.msra.mxu1 %v828_v26  ;;  %v853_v36 = vld [vmem:[#allocation2 + $0x118] sm:$0xff]  ;;  %v850_v38 = vld [vmem:[#allocation2 + $0x100] sm:$0xff]  ;;  %v852_v45 = vld [vmem:[#allocation2 + $0x110] sm:$0xff] }
 0x1ab   :  { %1376 = vmatprep.subr.bf16.mxu0 %v835_v27  ;;  %1548 = vmatprep.subr.bf16.mxu1 %v837_v28  ;;  %v859_v46 = vld [vmem:[#allocation2 + $0x148] sm:$0xff]  ;;  %v861_v47 = vld [vmem:[#allocation2 + $0x158] sm:$0xff]  ;;  %v858_v48 = vld [vmem:[#allocation2 + $0x140] sm:$0xff] }
 0x1ac   :  { %v860_v49 = vld [vmem:[#allocation2 + $0x150] sm:$0xff]  ;;  %v867_v50 = vld [vmem:[#allocation2 + $0x188] sm:$0xff]  ;;  %v869_v51 = vld [vmem:[#allocation2 + $0x198] sm:$0xff] }
 0x1ad   :  { %v866_v52 = vld [vmem:[#allocation2 + $0x180] sm:$0xff]  ;;  %v868_v53 = vld [vmem:[#allocation2 + $0x190] sm:$0xff]  ;;  %v875_v54 = vld [vmem:[#allocation2 + $0x1c8] sm:$0xff] }
 0x1ae   :  { %1377 = vmatpush1.bf16.msra.mxu0 %v834_v29  ;;  %1549 = vmatpush1.bf16.msra.mxu1 %v836_v30  ;;  %v877_v55 = vld [vmem:[#allocation2 + $0x1d8] sm:$0xff]  ;;  %v874_v56 = vld [vmem:[#allocation2 + $0x1c0] sm:$0xff]  ;;  %v876_v57 = vld [vmem:[#allocation2 + $0x1d0] sm:$0xff] }
 0x1af   :  { %1378 = vmatprep.subr.bf16.mxu0 %v843_v31  ;;  %1550 = vmatprep.subr.bf16.mxu1 %v845_v32  ;;  %v883_v58 = vld [vmem:[#allocation2 + $0x208] sm:$0xff]  ;;  %v885_v59 = vld [vmem:[#allocation2 + $0x218] sm:$0xff]  ;;  %v882_v60 = vld [vmem:[#allocation2 + $0x200] sm:$0xff] }
 0x1b0   :  { %v884_v61 = vld [vmem:[#allocation2 + $0x210] sm:$0xff]  ;;  %v891_v62 = vld [vmem:[#allocation2 + $0x248] sm:$0xff]  ;;  %v893_v63 = vld [vmem:[#allocation2 + $0x258] sm:$0xff] }
 0x1b1   :  { %v890_v1 = vld [vmem:[#allocation2 + $0x240] sm:$0xff]  ;;  %v892_v2 = vld [vmem:[#allocation2 + $0x250] sm:$0xff]  ;;  %v899_v3 = vld [vmem:[#allocation2 + $0x288] sm:$0xff] }
 0x1b2   :  { %1379 = vmatpush1.bf16.msra.mxu0 %v842_v33  ;;  %1551 = vmatpush1.bf16.msra.mxu1 %v844_v34  ;;  %v901_v10 = vld [vmem:[#allocation2 + $0x298] sm:$0xff]  ;;  %v898_v6 = vld [vmem:[#allocation2 + $0x280] sm:$0xff]  ;;  %v900_v11 = vld [vmem:[#allocation2 + $0x290] sm:$0xff] }
 0x1b3   :  { %1380 = vmatprep.subr.bf16.mxu0 %v851_v35  ;;  %1552 = vmatprep.subr.bf16.mxu1 %v853_v36  ;;  %v907_v12 = vld [vmem:[#allocation2 + $0x2c8] sm:$0xff]  ;;  %v909_v13 = vld [vmem:[#allocation2 + $0x2d8] sm:$0xff]  ;;  %v906_v15 = vld [vmem:[#allocation2 + $0x2c0] sm:$0xff] }
 0x1b4   :  { %v908_v19 = vld [vmem:[#allocation2 + $0x2d0] sm:$0xff]  ;;  %v915_v20 = vld [vmem:[#allocation2 + $0x308] sm:$0xff]  ;;  %v917_v21 = vld [vmem:[#allocation2 + $0x318] sm:$0xff] }
 0x1b5   :  { %v914_v22 = vld [vmem:[#allocation2 + $0x300] sm:$0xff]  ;;  %v916_v23 = vld [vmem:[#allocation2 + $0x310] sm:$0xff]  ;;  %v923_v24 = vld [vmem:[#allocation2 + $0x348] sm:$0xff] }
 0x1b6   :  { %1381 = vmatpush1.bf16.msra.mxu0 %v850_v38  ;;  %1553 = vmatpush1.bf16.msra.mxu1 %v852_v45  ;;  %v925_v25 = vld [vmem:[#allocation2 + $0x358] sm:$0xff]  ;;  %v922_v26 = vld [vmem:[#allocation2 + $0x340] sm:$0xff]  ;;  %v924_v27 = vld [vmem:[#allocation2 + $0x350] sm:$0xff] }
 0x1b7   :  { %1382 = vmatprep.subr.bf16.mxu0 %v859_v46  ;;  %1554 = vmatprep.subr.bf16.mxu1 %v861_v47  ;;  %v931_v28 = vld [vmem:[#allocation2 + $0x388] sm:$0xff]  ;;  %v933_v29 = vld [vmem:[#allocation2 + $0x398] sm:$0xff]  ;;  %v930_v30 = vld [vmem:[#allocation2 + $0x380] sm:$0xff] }
 0x1b8   :  { %v932_v31 = vld [vmem:[#allocation2 + $0x390] sm:$0xff]  ;;  %v939_v32 = vld [vmem:[#allocation2 + $0x3c8] sm:$0xff]  ;;  %v941_v33 = vld [vmem:[#allocation2 + $0x3d8] sm:$0xff] }
 0x1b9   :  { %v938_v34 = vld [vmem:[#allocation2 + $0x3c0] sm:$0xff]  ;;  %v940_v35 = vld [vmem:[#allocation2 + $0x3d0] sm:$0xff]  ;;  %v947_v36 = vld [vmem:[#allocation2 + $0x408] sm:$0xff] }
 0x1ba   :  { %1383 = vmatpush1.bf16.msra.mxu0 %v858_v48  ;;  %1555 = vmatpush1.bf16.msra.mxu1 %v860_v49  ;;  %v949_v38 = vld [vmem:[#allocation2 + $0x418] sm:$0xff]  ;;  %v946_v45 = vld [vmem:[#allocation2 + $0x400] sm:$0xff]  ;;  %v948_v46 = vld [vmem:[#allocation2 + $0x410] sm:$0xff] }
 0x1bb   :  { %1384 = vmatprep.subr.bf16.mxu0 %v867_v50  ;;  %1556 = vmatprep.subr.bf16.mxu1 %v869_v51  ;;  %v955_v47 = vld [vmem:[#allocation2 + $0x448] sm:$0xff]  ;;  %v957_v48 = vld [vmem:[#allocation2 + $0x458] sm:$0xff]  ;;  %v954_v49 = vld [vmem:[#allocation2 + $0x440] sm:$0xff] }
 0x1bc   :  { %v956_v50 = vld [vmem:[#allocation2 + $0x450] sm:$0xff]  ;;  %v963_v51 = vld [vmem:[#allocation2 + $0x488] sm:$0xff] }
 0x1be   :  { %1385 = vmatpush1.bf16.msra.mxu0 %v866_v52  ;;  %1557 = vmatpush1.bf16.msra.mxu1 %v868_v53  ;;  %v965_v52 = vld [vmem:[#allocation2 + $0x498] sm:$0xff]  ;;  %v962_v53 = vld [vmem:[#allocation2 + $0x480] sm:$0xff] }
 0x1bf   :  { %1386 = vmatprep.subr.bf16.mxu0 %v875_v54  ;;  %1558 = vmatprep.subr.bf16.mxu1 %v877_v55  ;;  %v964_v54 = vld [vmem:[#allocation2 + $0x490] sm:$0xff]  ;;  %v971_v55 = vld [vmem:[#allocation2 + $0x4c8] sm:$0xff] }
 0x1c2   :  { %1387 = vmatpush1.bf16.msra.mxu0 %v874_v56  ;;  %1559 = vmatpush1.bf16.msra.mxu1 %v876_v57  ;;  %v973_v56 = vld [vmem:[#allocation2 + $0x4d8] sm:$0xff]  ;;  %v970_v57 = vld [vmem:[#allocation2 + $0x4c0] sm:$0xff] }
 0x1c3   :  { %1388 = vmatprep.subr.bf16.mxu0 %v883_v58  ;;  %1560 = vmatprep.subr.bf16.mxu1 %v885_v59  ;;  %v972_v58 = vld [vmem:[#allocation2 + $0x4d0] sm:$0xff]  ;;  %v979_v59 = vld [vmem:[#allocation2 + $0x508] sm:$0xff] }
 0x1c6   :  { %1389 = vmatpush1.bf16.msra.mxu0 %v882_v60  ;;  %1561 = vmatpush1.bf16.msra.mxu1 %v884_v61  ;;  %v981_v60 = vld [vmem:[#allocation2 + $0x518] sm:$0xff]  ;;  %v978_v61 = vld [vmem:[#allocation2 + $0x500] sm:$0xff] }
 0x1c7   :  { %1390 = vmatprep.subr.bf16.mxu0 %v891_v62  ;;  %1562 = vmatprep.subr.bf16.mxu1 %v893_v63  ;;  %v980_v62 = vld [vmem:[#allocation2 + $0x510] sm:$0xff]  ;;  %v987_v63 = vld [vmem:[#allocation2 + $0x548] sm:$0xff] }
 0x1ca   :  { %1391 = vmatpush1.bf16.msra.mxu0 %v890_v1  ;;  %1563 = vmatpush1.bf16.msra.mxu1 %v892_v2  ;;  %v989_v1 = vld [vmem:[#allocation2 + $0x558] sm:$0xff]  ;;  %v986_v2 = vld [vmem:[#allocation2 + $0x540] sm:$0xff] }
 0x1cb   :  { %1392 = vmatprep.subr.bf16.mxu0 %v899_v3  ;;  %1564 = vmatprep.subr.bf16.mxu1 %v901_v10  ;;  %v988_v3 = vld [vmem:[#allocation2 + $0x550] sm:$0xff]  ;;  %v995_v10 = vld [vmem:[#allocation2 + $0x588] sm:$0xff] }
 0x1ce   :  { %1393 = vmatpush1.bf16.msra.mxu0 %v898_v6  ;;  %1565 = vmatpush1.bf16.msra.mxu1 %v900_v11  ;;  %v997_v6 = vld [vmem:[#allocation2 + $0x598] sm:$0xff]  ;;  %v994_v11 = vld [vmem:[#allocation2 + $0x580] sm:$0xff] }
 0x1cf   :  { %1394 = vmatprep.subr.bf16.mxu0 %v907_v12  ;;  %1566 = vmatprep.subr.bf16.mxu1 %v909_v13  ;;  %v996_v12 = vld [vmem:[#allocation2 + $0x590] sm:$0xff]  ;;  %v1003_v13 = vld [vmem:[#allocation2 + $0x5c8] sm:$0xff] }
 0x1d2   :  { %1395 = vmatpush1.bf16.msra.mxu0 %v906_v15  ;;  %1567 = vmatpush1.bf16.msra.mxu1 %v908_v19  ;;  %v1005_v15 = vld [vmem:[#allocation2 + $0x5d8] sm:$0xff]  ;;  %v1002_v19 = vld [vmem:[#allocation2 + $0x5c0] sm:$0xff] }
 0x1d3   :  { %1396 = vmatprep.subr.bf16.mxu0 %v915_v20  ;;  %1568 = vmatprep.subr.bf16.mxu1 %v917_v21  ;;  %v1004_v20 = vld [vmem:[#allocation2 + $0x5d0] sm:$0xff]  ;;  %v1011_v21 = vld [vmem:[#allocation2 + $0x608] sm:$0xff] }
 0x1d6   :  { %1397 = vmatpush1.bf16.msra.mxu0 %v914_v22  ;;  %1569 = vmatpush1.bf16.msra.mxu1 %v916_v23  ;;  %v1013_v22 = vld [vmem:[#allocation2 + $0x618] sm:$0xff]  ;;  %v1010_v23 = vld [vmem:[#allocation2 + $0x600] sm:$0xff] }
 0x1d7   :  { %1398 = vmatprep.subr.bf16.mxu0 %v923_v24  ;;  %1570 = vmatprep.subr.bf16.mxu1 %v925_v25  ;;  %v1012_v24 = vld [vmem:[#allocation2 + $0x610] sm:$0xff]  ;;  %v1019_v25 = vld [vmem:[#allocation2 + $0x648] sm:$0xff] }
 0x1da   :  { %1399 = vmatpush1.bf16.msra.mxu0 %v922_v26  ;;  %1571 = vmatpush1.bf16.msra.mxu1 %v924_v27  ;;  %v1021_v26 = vld [vmem:[#allocation2 + $0x658] sm:$0xff]  ;;  %v1018_v27 = vld [vmem:[#allocation2 + $0x640] sm:$0xff] }
 0x1db   :  { %1400 = vmatprep.subr.bf16.mxu0 %v931_v28  ;;  %1572 = vmatprep.subr.bf16.mxu1 %v933_v29  ;;  %v1020_v28 = vld [vmem:[#allocation2 + $0x650] sm:$0xff]  ;;  %v1027_v29 = vld [vmem:[#allocation2 + $0x688] sm:$0xff] }
 0x1de   :  { %1401 = vmatpush1.bf16.msra.mxu0 %v930_v30  ;;  %1573 = vmatpush1.bf16.msra.mxu1 %v932_v31  ;;  %v1029_v30 = vld [vmem:[#allocation2 + $0x698] sm:$0xff]  ;;  %v1026_v31 = vld [vmem:[#allocation2 + $0x680] sm:$0xff] }
 0x1df   :  { %1402 = vmatprep.subr.bf16.mxu0 %v939_v32  ;;  %1574 = vmatprep.subr.bf16.mxu1 %v941_v33  ;;  %v1028_v32 = vld [vmem:[#allocation2 + $0x690] sm:$0xff]  ;;  %v1035_v33 = vld [vmem:[#allocation2 + $0x6c8] sm:$0xff] }
 0x1e2   :  { %1403 = vmatpush1.bf16.msra.mxu0 %v938_v34  ;;  %1575 = vmatpush1.bf16.msra.mxu1 %v940_v35  ;;  %v1037_v34 = vld [vmem:[#allocation2 + $0x6d8] sm:$0xff]  ;;  %v1034_v35 = vld [vmem:[#allocation2 + $0x6c0] sm:$0xff] }
 0x1e3   :  { %1415 = vmatprep.subr.bf16.mxu0 %v947_v36  ;;  %1587 = vmatprep.subr.bf16.mxu1 %v949_v38  ;;  %v1036_v36 = vld [vmem:[#allocation2 + $0x6d0] sm:$0xff]  ;;  %v1043_v38 = vld [vmem:[#allocation2 + $0x708] sm:$0xff] }
 0x1e5   :  { %1405 = vmatmul.mubr.bf16.vlgmr.msra.gmra.mrb[8].mxu0 %v3719_v37  ;;  %1577 = vmatmul.mubr.bf16.vlgmr.msra.gmra.mrb[8].mxu1 %v3719_v37 }
 0x1e6   :  { %1416 = vmatpush1.bf16.msra.mxu0 %v946_v45  ;;  %1588 = vmatpush1.bf16.msra.mxu1 %v948_v46  ;;  %v1045_v45 = vld [vmem:[#allocation2 + $0x718] sm:$0xff]  ;;  %v1042_v46 = vld [vmem:[#allocation2 + $0x700] sm:$0xff] }
 0x1e7   :  { %1417 = vmatprep.subr.bf16.mxu0 %v955_v47  ;;  %1589 = vmatprep.subr.bf16.mxu1 %v957_v48  ;;  %v1044_v47 = vld [vmem:[#allocation2 + $0x710] sm:$0xff]  ;;  %v1051_v48 = vld [vmem:[#allocation2 + $0x748] sm:$0xff] }
 0x1e8   :  { %1447 = vmatprep.mubr.bf16.mxu0 %v3725_v40  ;;  %1619 = vmatprep.mubr.bf16.mxu1 %v3725_v40 }
 0x1ea   :  { %1418 = vmatpush1.bf16.msra.mxu0 %v954_v49  ;;  %1590 = vmatpush1.bf16.msra.mxu1 %v956_v50  ;;  %v1053_v49 = vld [vmem:[#allocation2 + $0x758] sm:$0xff]  ;;  %v1050_v50 = vld [vmem:[#allocation2 + $0x740] sm:$0xff] }
 0x1eb   :  { %1419 = vmatprep.subr.bf16.mxu0 %v963_v51  ;;  %1591 = vmatprep.subr.bf16.mxu1 %v965_v52  ;;  %v1052_v51 = vld [vmem:[#allocation2 + $0x750] sm:$0xff]  ;;  %v1059_v52 = vld [vmem:[#allocation2 + $0x788] sm:$0xff] }
 0x1ee   :  { %1420 = vmatpush1.bf16.msra.mxu0 %v962_v53  ;;  %1592 = vmatpush1.bf16.msra.mxu1 %v964_v54  ;;  %v1061_v53 = vld [vmem:[#allocation2 + $0x798] sm:$0xff]  ;;  %v1058_v54 = vld [vmem:[#allocation2 + $0x780] sm:$0xff] }
 0x1ef   :  { %1421 = vmatprep.subr.bf16.mxu0 %v971_v55  ;;  %1593 = vmatprep.subr.bf16.mxu1 %v973_v56  ;;  %v1060_v55 = vld [vmem:[#allocation2 + $0x790] sm:$0xff]  ;;  %v1067_v56 = vld [vmem:[#allocation2 + $0x7c8] sm:$0xff] }
 0x1f2   :  { %1422 = vmatpush1.bf16.msra.mxu0 %v970_v57  ;;  %1594 = vmatpush1.bf16.msra.mxu1 %v972_v58  ;;  %v1069_v57 = vld [vmem:[#allocation2 + $0x7d8] sm:$0xff]  ;;  %v1066_v58 = vld [vmem:[#allocation2 + $0x7c0] sm:$0xff] }
 0x1f3   :  { %1423 = vmatprep.subr.bf16.mxu0 %v979_v59  ;;  %1595 = vmatprep.subr.bf16.mxu1 %v981_v60  ;;  %v1068_v59 = vld [vmem:[#allocation2 + $0x7d0] sm:$0xff]  ;;  %v1075_v60 = vld [vmem:[#allocation2 + $0x808] sm:$0xff] }
 0x1f6   :  { %1424 = vmatpush1.bf16.msra.mxu0 %v978_v61  ;;  %1596 = vmatpush1.bf16.msra.mxu1 %v980_v62  ;;  %v1077_v61 = vld [vmem:[#allocation2 + $0x818] sm:$0xff]  ;;  %v1074_v62 = vld [vmem:[#allocation2 + $0x800] sm:$0xff] }
 0x1f7   :  { %1425 = vmatprep.subr.bf16.mxu0 %v987_v63  ;;  %1597 = vmatprep.subr.bf16.mxu1 %v989_v1  ;;  %v1076_v63 = vld [vmem:[#allocation2 + $0x810] sm:$0xff]  ;;  %v1083_v1 = vld [vmem:[#allocation2 + $0x848] sm:$0xff] }
 0x1fa   :  { %1426 = vmatpush1.bf16.msra.mxu0 %v986_v2  ;;  %1598 = vmatpush1.bf16.msra.mxu1 %v988_v3  ;;  %v1085_v2 = vld [vmem:[#allocation2 + $0x858] sm:$0xff]  ;;  %v1082_v3 = vld [vmem:[#allocation2 + $0x840] sm:$0xff] }
 0x1fb   :  { %1427 = vmatprep.subr.bf16.mxu0 %v995_v10  ;;  %1599 = vmatprep.subr.bf16.mxu1 %v997_v6  ;;  %v1084_v10 = vld [vmem:[#allocation2 + $0x850] sm:$0xff]  ;;  %v1091_v6 = vld [vmem:[#allocation2 + $0x888] sm:$0xff] }
 0x1fe   :  { %1428 = vmatpush1.bf16.msra.mxu0 %v994_v11  ;;  %1600 = vmatpush1.bf16.msra.mxu1 %v996_v12  ;;  %v1093_v11 = vld [vmem:[#allocation2 + $0x898] sm:$0xff]  ;;  %v1090_v12 = vld [vmem:[#allocation2 + $0x880] sm:$0xff] }
 0x1ff   :  { %1429 = vmatprep.subr.bf16.mxu0 %v1003_v13  ;;  %1601 = vmatprep.subr.bf16.mxu1 %v1005_v15  ;;  %v1092_v13 = vld [vmem:[#allocation2 + $0x890] sm:$0xff]  ;;  %v1099_v15 = vld [vmem:[#allocation2 + $0x8c8] sm:$0xff] }
 0x202   :  { %1430 = vmatpush1.bf16.msra.mxu0 %v1002_v19  ;;  %1602 = vmatpush1.bf16.msra.mxu1 %v1004_v20  ;;  %v1101_v19 = vld [vmem:[#allocation2 + $0x8d8] sm:$0xff]  ;;  %v1098_v20 = vld [vmem:[#allocation2 + $0x8c0] sm:$0xff] }
 0x203   :  { %1431 = vmatprep.subr.bf16.mxu0 %v1011_v21  ;;  %1603 = vmatprep.subr.bf16.mxu1 %v1013_v22  ;;  %v1100_v21 = vld [vmem:[#allocation2 + $0x8d0] sm:$0xff]  ;;  %v1107_v22 = vld [vmem:[#allocation2 + $0x908] sm:$0xff] }
 0x206   :  { %1432 = vmatpush1.bf16.msra.mxu0 %v1010_v23  ;;  %1604 = vmatpush1.bf16.msra.mxu1 %v1012_v24  ;;  %v1109_v23 = vld [vmem:[#allocation2 + $0x918] sm:$0xff]  ;;  %v1106_v24 = vld [vmem:[#allocation2 + $0x900] sm:$0xff] }
 0x207   :  { %1433 = vmatprep.subr.bf16.mxu0 %v1019_v25  ;;  %1605 = vmatprep.subr.bf16.mxu1 %v1021_v26  ;;  %v1108_v25 = vld [vmem:[#allocation2 + $0x910] sm:$0xff]  ;;  %v1115_v26 = vld [vmem:[#allocation2 + $0x948] sm:$0xff] }
 0x20a   :  { %1434 = vmatpush1.bf16.msra.mxu0 %v1018_v27  ;;  %1606 = vmatpush1.bf16.msra.mxu1 %v1020_v28  ;;  %v1117_v27 = vld [vmem:[#allocation2 + $0x958] sm:$0xff]  ;;  %v1114_v28 = vld [vmem:[#allocation2 + $0x940] sm:$0xff] }
 0x20b   :  { %1435 = vmatprep.subr.bf16.mxu0 %v1027_v29  ;;  %1607 = vmatprep.subr.bf16.mxu1 %v1029_v30  ;;  %v1116_v29 = vld [vmem:[#allocation2 + $0x950] sm:$0xff]  ;;  %v1123_v30 = vld [vmem:[#allocation2 + $0x988] sm:$0xff] }
 0x20e   :  { %1436 = vmatpush1.bf16.msra.mxu0 %v1026_v31  ;;  %1608 = vmatpush1.bf16.msra.mxu1 %v1028_v32  ;;  %v1125_v31 = vld [vmem:[#allocation2 + $0x998] sm:$0xff]  ;;  %v1122_v32 = vld [vmem:[#allocation2 + $0x980] sm:$0xff] }
 0x20f   :  { %1437 = vmatprep.subr.bf16.mxu0 %v1035_v33  ;;  %1609 = vmatprep.subr.bf16.mxu1 %v1037_v34  ;;  %v1124_v33 = vld [vmem:[#allocation2 + $0x990] sm:$0xff]  ;;  %v1131_v34 = vld [vmem:[#allocation2 + $0x9c8] sm:$0xff] }
 0x212   :  { %1438 = vmatpush1.bf16.msra.mxu0 %v1034_v35  ;;  %1610 = vmatpush1.bf16.msra.mxu1 %v1036_v36  ;;  %v1133_v35 = vld [vmem:[#allocation2 + $0x9d8] sm:$0xff]  ;;  %v1130_v36 = vld [vmem:[#allocation2 + $0x9c0] sm:$0xff] }
 0x213   :  { %1439 = vmatprep.subr.bf16.mxu0 %v1043_v38  ;;  %1611 = vmatprep.subr.bf16.mxu1 %v1045_v45  ;;  %v1132_v38 = vld [vmem:[#allocation2 + $0x9d0] sm:$0xff]  ;;  %v1139_v45 = vld [vmem:[#allocation2 + $0xa08] sm:$0xff] }
 0x216   :  { %1440 = vmatpush1.bf16.msra.mxu0 %v1042_v46  ;;  %1612 = vmatpush1.bf16.msra.mxu1 %v1044_v47  ;;  %v1141_v46 = vld [vmem:[#allocation2 + $0xa18] sm:$0xff]  ;;  %v1138_v47 = vld [vmem:[#allocation2 + $0xa00] sm:$0xff] }
 0x217   :  { %1441 = vmatprep.subr.bf16.mxu0 %v1051_v48  ;;  %1613 = vmatprep.subr.bf16.mxu1 %v1053_v49  ;;  %v1140_v48 = vld [vmem:[#allocation2 + $0xa10] sm:$0xff]  ;;  %v1147_v49 = vld [vmem:[#allocation2 + $0xa48] sm:$0xff] }
 0x21a   :  { %1442 = vmatpush1.bf16.msra.mxu0 %v1050_v50  ;;  %1614 = vmatpush1.bf16.msra.mxu1 %v1052_v51  ;;  %v1149_v50 = vld [vmem:[#allocation2 + $0xa58] sm:$0xff]  ;;  %v1146_v51 = vld [vmem:[#allocation2 + $0xa40] sm:$0xff] }
 0x21b   :  { %1443 = vmatprep.subr.bf16.mxu0 %v1059_v52  ;;  %1615 = vmatprep.subr.bf16.mxu1 %v1061_v53  ;;  %v1148_v52 = vld [vmem:[#allocation2 + $0xa50] sm:$0xff]  ;;  %v1155_v53 = vld [vmem:[#allocation2 + $0xa88] sm:$0xff] }
 0x21e   :  { %1444 = vmatpush1.bf16.msra.mxu0 %v1058_v54  ;;  %1616 = vmatpush1.bf16.msra.mxu1 %v1060_v55  ;;  %v1157_v54 = vld [vmem:[#allocation2 + $0xa98] sm:$0xff]  ;;  %v1154_v55 = vld [vmem:[#allocation2 + $0xa80] sm:$0xff] }
 0x21f   :  { %1445 = vmatprep.subr.bf16.mxu0 %v1067_v56  ;;  %1617 = vmatprep.subr.bf16.mxu1 %v1069_v57  ;;  %v1156_v56 = vld [vmem:[#allocation2 + $0xa90] sm:$0xff]  ;;  %v1163_v57 = vld [vmem:[#allocation2 + $0xac8] sm:$0xff] }
 0x222   :  { %1446 = vmatpush1.bf16.msra.mxu0 %v1066_v58  ;;  %1618 = vmatpush1.bf16.msra.mxu1 %v1068_v59  ;;  %v1165_v58 = vld [vmem:[#allocation2 + $0xad8] sm:$0xff]  ;;  %v1162_v59 = vld [vmem:[#allocation2 + $0xac0] sm:$0xff] }
 0x223   :  { %1458 = vmatprep.subr.bf16.mxu0 %v1075_v60  ;;  %1630 = vmatprep.subr.bf16.mxu1 %v1077_v61  ;;  %v1164_v60 = vld [vmem:[#allocation2 + $0xad0] sm:$0xff]  ;;  %v1171_v61 = vld [vmem:[#allocation2 + $0xb08] sm:$0xff] }
 0x225   :  { %1448 = vmatmul.mubr.bf16.vlgmr.msra.gmra.mrb[8].mxu0 %v3721_v39  ;;  %1620 = vmatmul.mubr.bf16.vlgmr.msra.gmra.mrb[8].mxu1 %v3721_v39 }
 0x226   :  { %1459 = vmatpush1.bf16.msra.mxu0 %v1074_v62  ;;  %1631 = vmatpush1.bf16.msra.mxu1 %v1076_v63  ;;  %v1173_v62 = vld [vmem:[#allocation2 + $0xb18] sm:$0xff]  ;;  %v1170_v63 = vld [vmem:[#allocation2 + $0xb00] sm:$0xff] }
 0x227   :  { %1460 = vmatprep.subr.bf16.mxu0 %v1083_v1  ;;  %1632 = vmatprep.subr.bf16.mxu1 %v1085_v2  ;;  %v1172_v1 = vld [vmem:[#allocation2 + $0xb10] sm:$0xff]  ;;  %v1179_v2 = vld [vmem:[#allocation2 + $0xb48] sm:$0xff] }
 0x228   :  { %1490 = vmatprep.mubr.bf16.mxu0 %v3743_v17  ;;  %1662 = vmatprep.mubr.bf16.mxu1 %v3743_v17 }
 0x22a   :  { %1461 = vmatpush1.bf16.msra.mxu0 %v1082_v3  ;;  %1633 = vmatpush1.bf16.msra.mxu1 %v1084_v10  ;;  %v1181_v3 = vld [vmem:[#allocation2 + $0xb58] sm:$0xff]  ;;  %v1178_v10 = vld [vmem:[#allocation2 + $0xb40] sm:$0xff] }
 0x22b   :  { %1462 = vmatprep.subr.bf16.mxu0 %v1091_v6  ;;  %1634 = vmatprep.subr.bf16.mxu1 %v1093_v11  ;;  %v1180_v6 = vld [vmem:[#allocation2 + $0xb50] sm:$0xff]  ;;  %v1187_v11 = vld [vmem:[#allocation2 + $0xb88] sm:$0xff] }
 0x22e   :  { %1463 = vmatpush1.bf16.msra.mxu0 %v1090_v12  ;;  %1635 = vmatpush1.bf16.msra.mxu1 %v1092_v13  ;;  %v1189_v12 = vld [vmem:[#allocation2 + $0xb98] sm:$0xff]  ;;  %v1186_v13 = vld [vmem:[#allocation2 + $0xb80] sm:$0xff] }
 0x22f   :  { %1464 = vmatprep.subr.bf16.mxu0 %v1099_v15  ;;  %1636 = vmatprep.subr.bf16.mxu1 %v1101_v19  ;;  %v1188_v15 = vld [vmem:[#allocation2 + $0xb90] sm:$0xff]  ;;  %v1195_v19 = vld [vmem:[#allocation2 + $0xbc8] sm:$0xff] }
 0x232   :  { %1465 = vmatpush1.bf16.msra.mxu0 %v1098_v20  ;;  %1637 = vmatpush1.bf16.msra.mxu1 %v1100_v21  ;;  %v1197_v20 = vld [vmem:[#allocation2 + $0xbd8] sm:$0xff]  ;;  %v1194_v21 = vld [vmem:[#allocation2 + $0xbc0] sm:$0xff] }
 0x233   :  { %1466 = vmatprep.subr.bf16.mxu0 %v1107_v22  ;;  %1638 = vmatprep.subr.bf16.mxu1 %v1109_v23  ;;  %v1196_v22 = vld [vmem:[#allocation2 + $0xbd0] sm:$0xff]  ;;  %v1203_v23 = vld [vmem:[#allocation2 + $0xc08] sm:$0xff] }
 0x236   :  { %1467 = vmatpush1.bf16.msra.mxu0 %v1106_v24  ;;  %1639 = vmatpush1.bf16.msra.mxu1 %v1108_v25  ;;  %v1205_v24 = vld [vmem:[#allocation2 + $0xc18] sm:$0xff]  ;;  %v1202_v25 = vld [vmem:[#allocation2 + $0xc00] sm:$0xff] }
 0x237   :  { %1468 = vmatprep.subr.bf16.mxu0 %v1115_v26  ;;  %1640 = vmatprep.subr.bf16.mxu1 %v1117_v27  ;;  %v1204_v26 = vld [vmem:[#allocation2 + $0xc10] sm:$0xff]  ;;  %v1211_v27 = vld [vmem:[#allocation2 + $0xc48] sm:$0xff] }
 0x23a   :  { %1469 = vmatpush1.bf16.msra.mxu0 %v1114_v28  ;;  %1641 = vmatpush1.bf16.msra.mxu1 %v1116_v29  ;;  %v1213_v28 = vld [vmem:[#allocation2 + $0xc58] sm:$0xff]  ;;  %v1210_v29 = vld [vmem:[#allocation2 + $0xc40] sm:$0xff] }
 0x23b   :  { %1470 = vmatprep.subr.bf16.mxu0 %v1123_v30  ;;  %1642 = vmatprep.subr.bf16.mxu1 %v1125_v31  ;;  %v1212_v30 = vld [vmem:[#allocation2 + $0xc50] sm:$0xff]  ;;  %v1219_v31 = vld [vmem:[#allocation2 + $0xc88] sm:$0xff] }
 0x23e   :  { %1471 = vmatpush1.bf16.msra.mxu0 %v1122_v32  ;;  %1643 = vmatpush1.bf16.msra.mxu1 %v1124_v33  ;;  %v1221_v32 = vld [vmem:[#allocation2 + $0xc98] sm:$0xff]  ;;  %v1218_v33 = vld [vmem:[#allocation2 + $0xc80] sm:$0xff] }
 0x23f   :  { %1472 = vmatprep.subr.bf16.mxu0 %v1131_v34  ;;  %1644 = vmatprep.subr.bf16.mxu1 %v1133_v35  ;;  %v1220_v34 = vld [vmem:[#allocation2 + $0xc90] sm:$0xff]  ;;  %v1227_v35 = vld [vmem:[#allocation2 + $0xcc8] sm:$0xff] }
 0x242   :  { %1473 = vmatpush1.bf16.msra.mxu0 %v1130_v36  ;;  %1645 = vmatpush1.bf16.msra.mxu1 %v1132_v38  ;;  %v1229_v36 = vld [vmem:[#allocation2 + $0xcd8] sm:$0xff]  ;;  %v1226_v38 = vld [vmem:[#allocation2 + $0xcc0] sm:$0xff] }
 0x243   :  { %1474 = vmatprep.subr.bf16.mxu0 %v1139_v45  ;;  %1646 = vmatprep.subr.bf16.mxu1 %v1141_v46  ;;  %v1228_v45 = vld [vmem:[#allocation2 + $0xcd0] sm:$0xff]  ;;  %v1235_v46 = vld [vmem:[#allocation2 + $0xd08] sm:$0xff] }
 0x246   :  { %1475 = vmatpush1.bf16.msra.mxu0 %v1138_v47  ;;  %1647 = vmatpush1.bf16.msra.mxu1 %v1140_v48  ;;  %v1237_v47 = vld [vmem:[#allocation2 + $0xd18] sm:$0xff]  ;;  %v1234_v48 = vld [vmem:[#allocation2 + $0xd00] sm:$0xff] }
 0x247   :  { %1476 = vmatprep.subr.bf16.mxu0 %v1147_v49  ;;  %1648 = vmatprep.subr.bf16.mxu1 %v1149_v50  ;;  %v1236_v49 = vld [vmem:[#allocation2 + $0xd10] sm:$0xff]  ;;  %v1243_v50 = vld [vmem:[#allocation2 + $0xd48] sm:$0xff] }
 0x24a   :  { %1477 = vmatpush1.bf16.msra.mxu0 %v1146_v51  ;;  %1649 = vmatpush1.bf16.msra.mxu1 %v1148_v52  ;;  %v1245_v51 = vld [vmem:[#allocation2 + $0xd58] sm:$0xff]  ;;  %v1242_v52 = vld [vmem:[#allocation2 + $0xd40] sm:$0xff] }
 0x24b   :  { %1478 = vmatprep.subr.bf16.mxu0 %v1155_v53  ;;  %1650 = vmatprep.subr.bf16.mxu1 %v1157_v54  ;;  %v1244_v53 = vld [vmem:[#allocation2 + $0xd50] sm:$0xff]  ;;  %v1251_v54 = vld [vmem:[#allocation2 + $0xd88] sm:$0xff] }
 0x24e   :  { %1479 = vmatpush1.bf16.msra.mxu0 %v1154_v55  ;;  %1651 = vmatpush1.bf16.msra.mxu1 %v1156_v56  ;;  %v1253_v55 = vld [vmem:[#allocation2 + $0xd98] sm:$0xff]  ;;  %v1250_v56 = vld [vmem:[#allocation2 + $0xd80] sm:$0xff] }
 0x24f   :  { %1480 = vmatprep.subr.bf16.mxu0 %v1163_v57  ;;  %1652 = vmatprep.subr.bf16.mxu1 %v1165_v58  ;;  %v1252_v57 = vld [vmem:[#allocation2 + $0xd90] sm:$0xff]  ;;  %v1259_v58 = vld [vmem:[#allocation2 + $0xdc8] sm:$0xff] }
 0x252   :  { %1481 = vmatpush1.bf16.msra.mxu0 %v1162_v59  ;;  %1653 = vmatpush1.bf16.msra.mxu1 %v1164_v60  ;;  %v1261_v59 = vld [vmem:[#allocation2 + $0xdd8] sm:$0xff]  ;;  %v1258_v60 = vld [vmem:[#allocation2 + $0xdc0] sm:$0xff] }
 0x253   :  { %1482 = vmatprep.subr.bf16.mxu0 %v1171_v61  ;;  %1654 = vmatprep.subr.bf16.mxu1 %v1173_v62  ;;  %v1260_v61 = vld [vmem:[#allocation2 + $0xdd0] sm:$0xff]  ;;  %v1267_v62 = vld [vmem:[#allocation2 + $0xe08] sm:$0xff] }
 0x256   :  { %1483 = vmatpush1.bf16.msra.mxu0 %v1170_v63  ;;  %1655 = vmatpush1.bf16.msra.mxu1 %v1172_v1  ;;  %v1269_v63 = vld [vmem:[#allocation2 + $0xe18] sm:$0xff]  ;;  %v1266_v1 = vld [vmem:[#allocation2 + $0xe00] sm:$0xff] }
 0x257   :  { %1484 = vmatprep.subr.bf16.mxu0 %v1179_v2  ;;  %1656 = vmatprep.subr.bf16.mxu1 %v1181_v3  ;;  %v1268_v2 = vld [vmem:[#allocation2 + $0xe10] sm:$0xff]  ;;  %v1275_v3 = vld [vmem:[#allocation2 + $0xe48] sm:$0xff] }
 0x25a   :  { %1485 = vmatpush1.bf16.msra.mxu0 %v1178_v10  ;;  %1657 = vmatpush1.bf16.msra.mxu1 %v1180_v6  ;;  %v1277_v10 = vld [vmem:[#allocation2 + $0xe58] sm:$0xff]  ;;  %v1274_v6 = vld [vmem:[#allocation2 + $0xe40] sm:$0xff] }
 0x25b   :  { %1486 = vmatprep.subr.bf16.mxu0 %v1187_v11  ;;  %1658 = vmatprep.subr.bf16.mxu1 %v1189_v12  ;;  %v1276_v11 = vld [vmem:[#allocation2 + $0xe50] sm:$0xff]  ;;  %v1283_v12 = vld [vmem:[#allocation2 + $0xe88] sm:$0xff] }
 0x25e   :  { %1487 = vmatpush1.bf16.msra.mxu0 %v1186_v13  ;;  %1659 = vmatpush1.bf16.msra.mxu1 %v1188_v15  ;;  %v1285_v13 = vld [vmem:[#allocation2 + $0xe98] sm:$0xff]  ;;  %v1282_v15 = vld [vmem:[#allocation2 + $0xe80] sm:$0xff] }
 0x25f   :  { %1488 = vmatprep.subr.bf16.mxu0 %v1195_v19  ;;  %1660 = vmatprep.subr.bf16.mxu1 %v1197_v20  ;;  %v1284_v19 = vld [vmem:[#allocation2 + $0xe90] sm:$0xff]  ;;  %v1291_v20 = vld [vmem:[#allocation2 + $0xec8] sm:$0xff] }
 0x262   :  { %1489 = vmatpush1.bf16.msra.mxu0 %v1194_v21  ;;  %1661 = vmatpush1.bf16.msra.mxu1 %v1196_v22  ;;  %v1293_v21 = vld [vmem:[#allocation2 + $0xed8] sm:$0xff]  ;;  %v1290_v22 = vld [vmem:[#allocation2 + $0xec0] sm:$0xff] }
 0x263   :  { %1501 = vmatprep.subr.bf16.mxu0 %v1203_v23  ;;  %1673 = vmatprep.subr.bf16.mxu1 %v1205_v24  ;;  %v1292_v23 = vld [vmem:[#allocation2 + $0xed0] sm:$0xff]  ;;  %v1299_v24 = vld [vmem:[#allocation2 + $0xf08] sm:$0xff] }
 0x265   :  { %1491 = vmatmul.mubr.bf16.vlgmr.msra.gmra.mrb[8].mxu0 %v3739_v14  ;;  %1663 = vmatmul.mubr.bf16.vlgmr.msra.gmra.mrb[8].mxu1 %v3739_v14 }
 0x266   :  { %1502 = vmatpush1.bf16.msra.mxu0 %v1202_v25  ;;  %1674 = vmatpush1.bf16.msra.mxu1 %v1204_v26  ;;  %v1301_v25 = vld [vmem:[#allocation2 + $0xf18] sm:$0xff]  ;;  %v1298_v26 = vld [vmem:[#allocation2 + $0xf00] sm:$0xff] }
 0x267   :  { %1503 = vmatprep.subr.bf16.mxu0 %v1211_v27  ;;  %1675 = vmatprep.subr.bf16.mxu1 %v1213_v28  ;;  %v1300_v27 = vld [vmem:[#allocation2 + $0xf10] sm:$0xff]  ;;  %v1307_v28 = vld [vmem:[#allocation2 + $0xf48] sm:$0xff] }
 0x268   :  { %1533 = vmatprep.mubr.bf16.mxu0 %v3745_v18  ;;  %1705 = vmatprep.mubr.bf16.mxu1 %v3745_v18 }
 0x26a   :  { %1504 = vmatpush1.bf16.msra.mxu0 %v1210_v29  ;;  %1676 = vmatpush1.bf16.msra.mxu1 %v1212_v30  ;;  %v1309_v29 = vld [vmem:[#allocation2 + $0xf58] sm:$0xff]  ;;  %v1306_v30 = vld [vmem:[#allocation2 + $0xf40] sm:$0xff] }
 0x26b   :  { %1505 = vmatprep.subr.bf16.mxu0 %v1219_v31  ;;  %1677 = vmatprep.subr.bf16.mxu1 %v1221_v32  ;;  %v1308_v31 = vld [vmem:[#allocation2 + $0xf50] sm:$0xff]  ;;  %v1315_v32 = vld [vmem:[#allocation2 + $0xf88] sm:$0xff] }
 0x26e   :  { %1506 = vmatpush1.bf16.msra.mxu0 %v1218_v33  ;;  %1678 = vmatpush1.bf16.msra.mxu1 %v1220_v34  ;;  %v1317_v33 = vld [vmem:[#allocation2 + $0xf98] sm:$0xff]  ;;  %v1314_v34 = vld [vmem:[#allocation2 + $0xf80] sm:$0xff] }
 0x26f   :  { %1507 = vmatprep.subr.bf16.mxu0 %v1227_v35  ;;  %1679 = vmatprep.subr.bf16.mxu1 %v1229_v36  ;;  %v1316_v35 = vld [vmem:[#allocation2 + $0xf90] sm:$0xff]  ;;  %v1323_v36 = vld [vmem:[#allocation2 + $0xfc8] sm:$0xff] }
 0x272   :  { %1508 = vmatpush1.bf16.msra.mxu0 %v1226_v38  ;;  %1680 = vmatpush1.bf16.msra.mxu1 %v1228_v45  ;;  %v1325_v38 = vld [vmem:[#allocation2 + $0xfd8] sm:$0xff]  ;;  %v1322_v45 = vld [vmem:[#allocation2 + $0xfc0] sm:$0xff] }
 0x273   :  { %1509 = vmatprep.subr.bf16.mxu0 %v1235_v46  ;;  %1681 = vmatprep.subr.bf16.mxu1 %v1237_v47  ;;  %v1324_v46 = vld [vmem:[#allocation2 + $0xfd0] sm:$0xff]  ;;  %v823_v47 = vld [vmem:[#allocation2 + $0x28] sm:$0xff] }
 0x276   :  { %1510 = vmatpush1.bf16.msra.mxu0 %v1234_v48  ;;  %1682 = vmatpush1.bf16.msra.mxu1 %v1236_v49  ;;  %v825_v48 = vld [vmem:[#allocation2 + $0x38] sm:$0xff]  ;;  %v822_v49 = vld [vmem:[#allocation2 + $0x20] sm:$0xff] }
 0x277   :  { %1511 = vmatprep.subr.bf16.mxu0 %v1243_v50  ;;  %1683 = vmatprep.subr.bf16.mxu1 %v1245_v51  ;;  %v824_v50 = vld [vmem:[#allocation2 + $0x30] sm:$0xff]  ;;  %v831_v51 = vld [vmem:[#allocation2 + $0x68] sm:$0xff] }
 0x27a   :  { %1512 = vmatpush1.bf16.msra.mxu0 %v1242_v52  ;;  %1684 = vmatpush1.bf16.msra.mxu1 %v1244_v53  ;;  %v833_v52 = vld [vmem:[#allocation2 + $0x78] sm:$0xff]  ;;  %v830_v53 = vld [vmem:[#allocation2 + $0x60] sm:$0xff] }
 0x27b   :  { %1513 = vmatprep.subr.bf16.mxu0 %v1251_v54  ;;  %1685 = vmatprep.subr.bf16.mxu1 %v1253_v55  ;;  %v832_v54 = vld [vmem:[#allocation2 + $0x70] sm:$0xff]  ;;  %v839_v55 = vld [vmem:[#allocation2 + $0xa8] sm:$0xff] }
 0x27e   :  { %1514 = vmatpush1.bf16.msra.mxu0 %v1250_v56  ;;  %1686 = vmatpush1.bf16.msra.mxu1 %v1252_v57  ;;  %v841_v56 = vld [vmem:[#allocation2 + $0xb8] sm:$0xff]  ;;  %v838_v57 = vld [vmem:[#allocation2 + $0xa0] sm:$0xff] }
 0x27f   :  { %1515 = vmatprep.subr.bf16.mxu0 %v1259_v58  ;;  %1687 = vmatprep.subr.bf16.mxu1 %v1261_v59  ;;  %v840_v58 = vld [vmem:[#allocation2 + $0xb0] sm:$0xff]  ;;  %v847_v59 = vld [vmem:[#allocation2 + $0xe8] sm:$0xff] }
 0x282   :  { %1516 = vmatpush1.bf16.msra.mxu0 %v1258_v60  ;;  %1688 = vmatpush1.bf16.msra.mxu1 %v1260_v61  ;;  %v849_v60 = vld [vmem:[#allocation2 + $0xf8] sm:$0xff]  ;;  %v846_v61 = vld [vmem:[#allocation2 + $0xe0] sm:$0xff] }
 0x283   :  { %1517 = vmatprep.subr.bf16.mxu0 %v1267_v62  ;;  %1689 = vmatprep.subr.bf16.mxu1 %v1269_v63  ;;  %v848_v62 = vld [vmem:[#allocation2 + $0xf0] sm:$0xff]  ;;  %v855_v63 = vld [vmem:[#allocation2 + $0x128] sm:$0xff] }
 0x286   :  { %1518 = vmatpush1.bf16.msra.mxu0 %v1266_v1  ;;  %1690 = vmatpush1.bf16.msra.mxu1 %v1268_v2  ;;  %v857_v1 = vld [vmem:[#allocation2 + $0x138] sm:$0xff]  ;;  %v856_v2 = vld [vmem:[#allocation2 + $0x130] sm:$0xff] }
 0x287   :  { %1519 = vmatprep.subr.bf16.mxu0 %v1275_v3  ;;  %1691 = vmatprep.subr.bf16.mxu1 %v1277_v10  ;;  %v863_v3 = vld [vmem:[#allocation2 + $0x168] sm:$0xff]  ;;  %v865_v10 = vld [vmem:[#allocation2 + $0x178] sm:$0xff] }
 0x28a   :  { %1520 = vmatpush1.bf16.msra.mxu0 %v1274_v6  ;;  %1692 = vmatpush1.bf16.msra.mxu1 %v1276_v11  ;;  %v862_v6 = vld [vmem:[#allocation2 + $0x160] sm:$0xff]  ;;  %v864_v11 = vld [vmem:[#allocation2 + $0x170] sm:$0xff] }
 0x28b   :  { %1521 = vmatprep.subr.bf16.mxu0 %v1283_v12  ;;  %1693 = vmatprep.subr.bf16.mxu1 %v1285_v13  ;;  %v871_v12 = vld [vmem:[#allocation2 + $0x1a8] sm:$0xff]  ;;  %v873_v13 = vld [vmem:[#allocation2 + $0x1b8] sm:$0xff] }
 0x28e   :  { %1522 = vmatpush1.bf16.msra.mxu0 %v1282_v15  ;;  %1694 = vmatpush1.bf16.msra.mxu1 %v1284_v19  ;;  %v870_v15 = vld [vmem:[#allocation2 + $0x1a0] sm:$0xff]  ;;  %v872_v19 = vld [vmem:[#allocation2 + $0x1b0] sm:$0xff] }
 0x28f   :  { %1523 = vmatprep.subr.bf16.mxu0 %v1291_v20  ;;  %1695 = vmatprep.subr.bf16.mxu1 %v1293_v21  ;;  %v879_v20 = vld [vmem:[#allocation2 + $0x1e8] sm:$0xff]  ;;  %v881_v21 = vld [vmem:[#allocation2 + $0x1f8] sm:$0xff] }
 0x292   :  { %1524 = vmatpush1.bf16.msra.mxu0 %v1290_v22  ;;  %1696 = vmatpush1.bf16.msra.mxu1 %v1292_v23  ;;  %v878_v22 = vld [vmem:[#allocation2 + $0x1e0] sm:$0xff]  ;;  %v880_v23 = vld [vmem:[#allocation2 + $0x1f0] sm:$0xff] }
 0x293   :  { %1525 = vmatprep.subr.bf16.mxu0 %v1299_v24  ;;  %1697 = vmatprep.subr.bf16.mxu1 %v1301_v25  ;;  %v887_v24 = vld [vmem:[#allocation2 + $0x228] sm:$0xff]  ;;  %v889_v25 = vld [vmem:[#allocation2 + $0x238] sm:$0xff] }
 0x296   :  { %1526 = vmatpush1.bf16.msra.mxu0 %v1298_v26  ;;  %1698 = vmatpush1.bf16.msra.mxu1 %v1300_v27  ;;  %v886_v26 = vld [vmem:[#allocation2 + $0x220] sm:$0xff]  ;;  %v888_v27 = vld [vmem:[#allocation2 + $0x230] sm:$0xff] }
 0x297   :  { %1527 = vmatprep.subr.bf16.mxu0 %v1307_v28  ;;  %1699 = vmatprep.subr.bf16.mxu1 %v1309_v29  ;;  %v895_v28 = vld [vmem:[#allocation2 + $0x268] sm:$0xff]  ;;  %v897_v29 = vld [vmem:[#allocation2 + $0x278] sm:$0xff] }
 0x29a   :  { %1528 = vmatpush1.bf16.msra.mxu0 %v1306_v30  ;;  %1700 = vmatpush1.bf16.msra.mxu1 %v1308_v31  ;;  %v894_v30 = vld [vmem:[#allocation2 + $0x260] sm:$0xff]  ;;  %v896_v31 = vld [vmem:[#allocation2 + $0x270] sm:$0xff] }
 0x29b   :  { %1529 = vmatprep.subr.bf16.mxu0 %v1315_v32  ;;  %1701 = vmatprep.subr.bf16.mxu1 %v1317_v33  ;;  %v903_v32 = vld [vmem:[#allocation2 + $0x2a8] sm:$0xff]  ;;  %v905_v33 = vld [vmem:[#allocation2 + $0x2b8] sm:$0xff] }
 0x29e   :  { %1530 = vmatpush1.bf16.msra.mxu0 %v1314_v34  ;;  %1702 = vmatpush1.bf16.msra.mxu1 %v1316_v35  ;;  %v902_v34 = vld [vmem:[#allocation2 + $0x2a0] sm:$0xff]  ;;  %v904_v35 = vld [vmem:[#allocation2 + $0x2b0] sm:$0xff] }
 0x29f   :  { %1531 = vmatprep.subr.bf16.mxu0 %v1323_v36  ;;  %1703 = vmatprep.subr.bf16.mxu1 %v1325_v38  ;;  %v911_v36 = vld [vmem:[#allocation2 + $0x2e8] sm:$0xff]  ;;  %v913_v38 = vld [vmem:[#allocation2 + $0x2f8] sm:$0xff] }
 0x2a2   :  { %1532 = vmatpush1.bf16.msra.mxu0 %v1322_v45  ;;  %1704 = vmatpush1.bf16.msra.mxu1 %v1324_v46  ;;  %v910_v45 = vld [vmem:[#allocation2 + $0x2e0] sm:$0xff]  ;;  %v912_v46 = vld [vmem:[#allocation2 + $0x2f0] sm:$0xff] }
 0x2a3   :  { %1716 = vmatprep.subr.bf16.mxu0 %v823_v47  ;;  %1888 = vmatprep.subr.bf16.mxu1 %v825_v48  ;;  %v919_v47 = vld [vmem:[#allocation2 + $0x328] sm:$0xff]  ;;  %v921_v48 = vld [vmem:[#allocation2 + $0x338] sm:$0xff] }
 0x2a5   :  { %1534 = vmatmul.mubr.bf16.vlgmr.msra.gmra.mrb[8].mxu0 %v3741_v16  ;;  %1706 = vmatmul.mubr.bf16.vlgmr.msra.gmra.mrb[8].mxu1 %v3741_v16 }
 0x2a6   :  { %1717 = vmatpush1.bf16.msra.mxu0 %v822_v49  ;;  %1889 = vmatpush1.bf16.msra.mxu1 %v824_v50  ;;  %v918_v49 = vld [vmem:[#allocation2 + $0x320] sm:$0xff]  ;;  %v920_v50 = vld [vmem:[#allocation2 + $0x330] sm:$0xff] }
 0x2a7   :  { %1718 = vmatprep.subr.bf16.mxu0 %v831_v51  ;;  %1890 = vmatprep.subr.bf16.mxu1 %v833_v52  ;;  %v927_v51 = vld [vmem:[#allocation2 + $0x368] sm:$0xff]  ;;  %v929_v52 = vld [vmem:[#allocation2 + $0x378] sm:$0xff] }
 0x2a8   :  { %1748 = vmatprep.mubr.bf16.mxu0 %v3723_v0  ;;  %1920 = vmatprep.mubr.bf16.mxu1 %v3723_v0  ;;  %v854_v0 = vld [vmem:[#allocation2 + $0x120] sm:$0xff] }
 0x2aa   :  { %1719 = vmatpush1.bf16.msra.mxu0 %v830_v53  ;;  %1891 = vmatpush1.bf16.msra.mxu1 %v832_v54  ;;  %v926_v53 = vld [vmem:[#allocation2 + $0x360] sm:$0xff]  ;;  %v928_v54 = vld [vmem:[#allocation2 + $0x370] sm:$0xff] }
 0x2ab   :  { %1720 = vmatprep.subr.bf16.mxu0 %v839_v55  ;;  %1892 = vmatprep.subr.bf16.mxu1 %v841_v56  ;;  %v935_v55 = vld [vmem:[#allocation2 + $0x3a8] sm:$0xff]  ;;  %v937_v56 = vld [vmem:[#allocation2 + $0x3b8] sm:$0xff] }
 0x2ae   :  { %1721 = vmatpush1.bf16.msra.mxu0 %v838_v57  ;;  %1893 = vmatpush1.bf16.msra.mxu1 %v840_v58  ;;  %v934_v57 = vld [vmem:[#allocation2 + $0x3a0] sm:$0xff]  ;;  %v936_v58 = vld [vmem:[#allocation2 + $0x3b0] sm:$0xff] }
 0x2af   :  { %1722 = vmatprep.subr.bf16.mxu0 %v847_v59  ;;  %1894 = vmatprep.subr.bf16.mxu1 %v849_v60  ;;  %v943_v59 = vld [vmem:[#allocation2 + $0x3e8] sm:$0xff]  ;;  %v945_v60 = vld [vmem:[#allocation2 + $0x3f8] sm:$0xff] }
 0x2b2   :  { %1723 = vmatpush1.bf16.msra.mxu0 %v846_v61  ;;  %1895 = vmatpush1.bf16.msra.mxu1 %v848_v62  ;;  %v942_v61 = vld [vmem:[#allocation2 + $0x3e0] sm:$0xff]  ;;  %v944_v62 = vld [vmem:[#allocation2 + $0x3f0] sm:$0xff] }
 0x2b3   :  { %1724 = vmatprep.subr.bf16.mxu0 %v855_v63  ;;  %1896 = vmatprep.subr.bf16.mxu1 %v857_v1  ;;  %v951_v63 = vld [vmem:[#allocation2 + $0x428] sm:$0xff]  ;;  %v953_v1 = vld [vmem:[#allocation2 + $0x438] sm:$0xff] }
 0x2b6   :  { %1725 = vmatpush1.bf16.msra.mxu0 %v854_v0  ;;  %1897 = vmatpush1.bf16.msra.mxu1 %v856_v2  ;;  %v950_v0 = vld [vmem:[#allocation2 + $0x420] sm:$0xff]  ;;  %v952_v2 = vld [vmem:[#allocation2 + $0x430] sm:$0xff] }
 0x2b7   :  { %1726 = vmatprep.subr.bf16.mxu0 %v863_v3  ;;  %1898 = vmatprep.subr.bf16.mxu1 %v865_v10  ;;  %v959_v3 = vld [vmem:[#allocation2 + $0x468] sm:$0xff]  ;;  %v961_v10 = vld [vmem:[#allocation2 + $0x478] sm:$0xff] }
 0x2ba   :  { %1727 = vmatpush1.bf16.msra.mxu0 %v862_v6  ;;  %1899 = vmatpush1.bf16.msra.mxu1 %v864_v11  ;;  %v958_v6 = vld [vmem:[#allocation2 + $0x460] sm:$0xff]  ;;  %v960_v11 = vld [vmem:[#allocation2 + $0x470] sm:$0xff] }
 0x2bb   :  { %1728 = vmatprep.subr.bf16.mxu0 %v871_v12  ;;  %1900 = vmatprep.subr.bf16.mxu1 %v873_v13  ;;  %v967_v12 = vld [vmem:[#allocation2 + $0x4a8] sm:$0xff]  ;;  %v969_v13 = vld [vmem:[#allocation2 + $0x4b8] sm:$0xff] }
 0x2be   :  { %1729 = vmatpush1.bf16.msra.mxu0 %v870_v15  ;;  %1901 = vmatpush1.bf16.msra.mxu1 %v872_v19  ;;  %v966_v15 = vld [vmem:[#allocation2 + $0x4a0] sm:$0xff]  ;;  %v968_v19 = vld [vmem:[#allocation2 + $0x4b0] sm:$0xff] }
 0x2bf   :  { %1730 = vmatprep.subr.bf16.mxu0 %v879_v20  ;;  %1902 = vmatprep.subr.bf16.mxu1 %v881_v21  ;;  %v975_v20 = vld [vmem:[#allocation2 + $0x4e8] sm:$0xff]  ;;  %v974_v21 = vld [vmem:[#allocation2 + $0x4e0] sm:$0xff] }
 0x2c2   :  { %1731 = vmatpush1.bf16.msra.mxu0 %v878_v22  ;;  %1903 = vmatpush1.bf16.msra.mxu1 %v880_v23  ;;  %v976_v22 = vld [vmem:[#allocation2 + $0x4f0] sm:$0xff]  ;;  %v983_v23 = vld [vmem:[#allocation2 + $0x528] sm:$0xff] }
 0x2c3   :  { %1732 = vmatprep.subr.bf16.mxu0 %v887_v24  ;;  %1904 = vmatprep.subr.bf16.mxu1 %v889_v25  ;;  %v985_v24 = vld [vmem:[#allocation2 + $0x538] sm:$0xff]  ;;  %v984_v25 = vld [vmem:[#allocation2 + $0x530] sm:$0xff] }
 0x2c6   :  { %1733 = vmatpush1.bf16.msra.mxu0 %v886_v26  ;;  %1905 = vmatpush1.bf16.msra.mxu1 %v888_v27  ;;  %v991_v26 = vld [vmem:[#allocation2 + $0x568] sm:$0xff]  ;;  %v993_v27 = vld [vmem:[#allocation2 + $0x578] sm:$0xff] }
 0x2c7   :  { %1734 = vmatprep.subr.bf16.mxu0 %v895_v28  ;;  %1906 = vmatprep.subr.bf16.mxu1 %v897_v29  ;;  %v990_v28 = vld [vmem:[#allocation2 + $0x560] sm:$0xff]  ;;  %v992_v29 = vld [vmem:[#allocation2 + $0x570] sm:$0xff] }
 0x2ca   :  { %1735 = vmatpush1.bf16.msra.mxu0 %v894_v30  ;;  %1907 = vmatpush1.bf16.msra.mxu1 %v896_v31  ;;  %v999_v30 = vld [vmem:[#allocation2 + $0x5a8] sm:$0xff]  ;;  %v1001_v31 = vld [vmem:[#allocation2 + $0x5b8] sm:$0xff] }
 0x2cb   :  { %1736 = vmatprep.subr.bf16.mxu0 %v903_v32  ;;  %1908 = vmatprep.subr.bf16.mxu1 %v905_v33  ;;  %v998_v32 = vld [vmem:[#allocation2 + $0x5a0] sm:$0xff]  ;;  %v1000_v33 = vld [vmem:[#allocation2 + $0x5b0] sm:$0xff] }
 0x2ce   :  { %1737 = vmatpush1.bf16.msra.mxu0 %v902_v34  ;;  %1909 = vmatpush1.bf16.msra.mxu1 %v904_v35  ;;  %v1007_v34 = vld [vmem:[#allocation2 + $0x5e8] sm:$0xff]  ;;  %v1009_v35 = vld [vmem:[#allocation2 + $0x5f8] sm:$0xff] }
 0x2cf   :  { %1738 = vmatprep.subr.bf16.mxu0 %v911_v36  ;;  %1910 = vmatprep.subr.bf16.mxu1 %v913_v38  ;;  %v1006_v36 = vld [vmem:[#allocation2 + $0x5e0] sm:$0xff]  ;;  %v1008_v38 = vld [vmem:[#allocation2 + $0x5f0] sm:$0xff] }
 0x2d2   :  { %1739 = vmatpush1.bf16.msra.mxu0 %v910_v45  ;;  %1911 = vmatpush1.bf16.msra.mxu1 %v912_v46  ;;  %v1015_v45 = vld [vmem:[#allocation2 + $0x628] sm:$0xff]  ;;  %v1017_v46 = vld [vmem:[#allocation2 + $0x638] sm:$0xff] }
 0x2d3   :  { %1740 = vmatprep.subr.bf16.mxu0 %v919_v47  ;;  %1912 = vmatprep.subr.bf16.mxu1 %v921_v48  ;;  %v1014_v47 = vld [vmem:[#allocation2 + $0x620] sm:$0xff]  ;;  %v1016_v48 = vld [vmem:[#allocation2 + $0x630] sm:$0xff] }
 0x2d6   :  { %1741 = vmatpush1.bf16.msra.mxu0 %v918_v49  ;;  %1913 = vmatpush1.bf16.msra.mxu1 %v920_v50  ;;  %v1023_v49 = vld [vmem:[#allocation2 + $0x668] sm:$0xff]  ;;  %v1025_v50 = vld [vmem:[#allocation2 + $0x678] sm:$0xff] }
 0x2d7   :  { %1742 = vmatprep.subr.bf16.mxu0 %v927_v51  ;;  %1914 = vmatprep.subr.bf16.mxu1 %v929_v52  ;;  %v1022_v51 = vld [vmem:[#allocation2 + $0x660] sm:$0xff]  ;;  %v1024_v52 = vld [vmem:[#allocation2 + $0x670] sm:$0xff] }
 0x2da   :  { %1743 = vmatpush1.bf16.msra.mxu0 %v926_v53  ;;  %1915 = vmatpush1.bf16.msra.mxu1 %v928_v54  ;;  %v1031_v53 = vld [vmem:[#allocation2 + $0x6a8] sm:$0xff]  ;;  %v1033_v54 = vld [vmem:[#allocation2 + $0x6b8] sm:$0xff] }
 0x2db   :  { %1744 = vmatprep.subr.bf16.mxu0 %v935_v55  ;;  %1916 = vmatprep.subr.bf16.mxu1 %v937_v56  ;;  %v1030_v55 = vld [vmem:[#allocation2 + $0x6a0] sm:$0xff]  ;;  %v1032_v56 = vld [vmem:[#allocation2 + $0x6b0] sm:$0xff] }
 0x2de   :  { %1745 = vmatpush1.bf16.msra.mxu0 %v934_v57  ;;  %1917 = vmatpush1.bf16.msra.mxu1 %v936_v58  ;;  %v1039_v57 = vld [vmem:[#allocation2 + $0x6e8] sm:$0xff]  ;;  %v1041_v58 = vld [vmem:[#allocation2 + $0x6f8] sm:$0xff] }
 0x2df   :  { %1746 = vmatprep.subr.bf16.mxu0 %v943_v59  ;;  %1918 = vmatprep.subr.bf16.mxu1 %v945_v60  ;;  %v1038_v59 = vld [vmem:[#allocation2 + $0x6e0] sm:$0xff]  ;;  %v1040_v60 = vld [vmem:[#allocation2 + $0x6f0] sm:$0xff] }
 0x2e2   :  { %1747 = vmatpush1.bf16.msra.mxu0 %v942_v61  ;;  %1919 = vmatpush1.bf16.msra.mxu1 %v944_v62  ;;  %v1047_v61 = vld [vmem:[#allocation2 + $0x728] sm:$0xff]  ;;  %v1049_v62 = vld [vmem:[#allocation2 + $0x738] sm:$0xff] }
 0x2e3   :  { %1759 = vmatprep.subr.bf16.mxu0 %v951_v63  ;;  %1931 = vmatprep.subr.bf16.mxu1 %v953_v1  ;;  %v1046_v63 = vld [vmem:[#allocation2 + $0x720] sm:$0xff]  ;;  %v1048_v1 = vld [vmem:[#allocation2 + $0x730] sm:$0xff] }
 0x2e5   :  { %1749 = vmatmul.mubr.bf16.vlgmr.msra.gmra.mrb[12].mxu0 %v3719_v37  ;;  %1921 = vmatmul.mubr.bf16.vlgmr.msra.gmra.mrb[12].mxu1 %v3719_v37  ;;  %v977_v37 = vld [vmem:[#allocation2 + $0x4f8] sm:$0xff] }
 0x2e6   :  { %1760 = vmatpush1.bf16.msra.mxu0 %v950_v0  ;;  %1932 = vmatpush1.bf16.msra.mxu1 %v952_v2  ;;  %v1055_v0 = vld [vmem:[#allocation2 + $0x768] sm:$0xff]  ;;  %v1057_v2 = vld [vmem:[#allocation2 + $0x778] sm:$0xff] }
 0x2e7   :  { %1761 = vmatprep.subr.bf16.mxu0 %v959_v3  ;;  %1933 = vmatprep.subr.bf16.mxu1 %v961_v10  ;;  %v1054_v3 = vld [vmem:[#allocation2 + $0x760] sm:$0xff]  ;;  %v1056_v10 = vld [vmem:[#allocation2 + $0x770] sm:$0xff] }
 0x2e8   :  { %1791 = vmatprep.mubr.bf16.mxu0 %v3725_v40  ;;  %1963 = vmatprep.mubr.bf16.mxu1 %v3725_v40  ;;  %v982_v40 = vld [vmem:[#allocation2 + $0x520] sm:$0xff] }
 0x2ea   :  { %1762 = vmatpush1.bf16.msra.mxu0 %v958_v6  ;;  %1934 = vmatpush1.bf16.msra.mxu1 %v960_v11  ;;  %v1063_v6 = vld [vmem:[#allocation2 + $0x7a8] sm:$0xff]  ;;  %v1065_v11 = vld [vmem:[#allocation2 + $0x7b8] sm:$0xff] }
 0x2eb   :  { %1763 = vmatprep.subr.bf16.mxu0 %v967_v12  ;;  %1935 = vmatprep.subr.bf16.mxu1 %v969_v13  ;;  %v1062_v12 = vld [vmem:[#allocation2 + $0x7a0] sm:$0xff]  ;;  %v1064_v13 = vld [vmem:[#allocation2 + $0x7b0] sm:$0xff] }
 0x2ee   :  { %1764 = vmatpush1.bf16.msra.mxu0 %v966_v15  ;;  %1936 = vmatpush1.bf16.msra.mxu1 %v968_v19  ;;  %v1071_v15 = vld [vmem:[#allocation2 + $0x7e8] sm:$0xff]  ;;  %v1073_v19 = vld [vmem:[#allocation2 + $0x7f8] sm:$0xff] }
 0x2ef   :  { %1765 = vmatprep.subr.bf16.mxu0 %v975_v20  ;;  %1937 = vmatprep.subr.bf16.mxu1 %v977_v37  ;;  %v1070_v20 = vld [vmem:[#allocation2 + $0x7e0] sm:$0xff]  ;;  %v1072_v37 = vld [vmem:[#allocation2 + $0x7f0] sm:$0xff] }
 0x2f2   :  { %1766 = vmatpush1.bf16.msra.mxu0 %v974_v21  ;;  %1938 = vmatpush1.bf16.msra.mxu1 %v976_v22  ;;  %v1079_v21 = vld [vmem:[#allocation2 + $0x828] sm:$0xff]  ;;  %v1081_v22 = vld [vmem:[#allocation2 + $0x838] sm:$0xff] }
 0x2f3   :  { %1767 = vmatprep.subr.bf16.mxu0 %v983_v23  ;;  %1939 = vmatprep.subr.bf16.mxu1 %v985_v24  ;;  %v1078_v23 = vld [vmem:[#allocation2 + $0x820] sm:$0xff]  ;;  %v1080_v24 = vld [vmem:[#allocation2 + $0x830] sm:$0xff] }
 0x2f6   :  { %1768 = vmatpush1.bf16.msra.mxu0 %v982_v40  ;;  %1940 = vmatpush1.bf16.msra.mxu1 %v984_v25  ;;  %v1087_v40 = vld [vmem:[#allocation2 + $0x868] sm:$0xff]  ;;  %v1089_v25 = vld [vmem:[#allocation2 + $0x878] sm:$0xff] }
 0x2f7   :  { %1769 = vmatprep.subr.bf16.mxu0 %v991_v26  ;;  %1941 = vmatprep.subr.bf16.mxu1 %v993_v27  ;;  %v1086_v26 = vld [vmem:[#allocation2 + $0x860] sm:$0xff]  ;;  %v1088_v27 = vld [vmem:[#allocation2 + $0x870] sm:$0xff] }
 0x2fa   :  { %1770 = vmatpush1.bf16.msra.mxu0 %v990_v28  ;;  %1942 = vmatpush1.bf16.msra.mxu1 %v992_v29  ;;  %v1095_v28 = vld [vmem:[#allocation2 + $0x8a8] sm:$0xff]  ;;  %v1097_v29 = vld [vmem:[#allocation2 + $0x8b8] sm:$0xff] }
 0x2fb   :  { %1771 = vmatprep.subr.bf16.mxu0 %v999_v30  ;;  %1943 = vmatprep.subr.bf16.mxu1 %v1001_v31  ;;  %v1094_v30 = vld [vmem:[#allocation2 + $0x8a0] sm:$0xff]  ;;  %v1096_v31 = vld [vmem:[#allocation2 + $0x8b0] sm:$0xff] }
 0x2fe   :  { %1772 = vmatpush1.bf16.msra.mxu0 %v998_v32  ;;  %1944 = vmatpush1.bf16.msra.mxu1 %v1000_v33  ;;  %v1103_v32 = vld [vmem:[#allocation2 + $0x8e8] sm:$0xff]  ;;  %v1102_v33 = vld [vmem:[#allocation2 + $0x8e0] sm:$0xff] }
 0x2ff   :  { %1773 = vmatprep.subr.bf16.mxu0 %v1007_v34  ;;  %1945 = vmatprep.subr.bf16.mxu1 %v1009_v35  ;;  %v1104_v34 = vld [vmem:[#allocation2 + $0x8f0] sm:$0xff]  ;;  %v1111_v35 = vld [vmem:[#allocation2 + $0x928] sm:$0xff] }
 0x302   :  { %1774 = vmatpush1.bf16.msra.mxu0 %v1006_v36  ;;  %1946 = vmatpush1.bf16.msra.mxu1 %v1008_v38  ;;  %v1113_v36 = vld [vmem:[#allocation2 + $0x938] sm:$0xff]  ;;  %v1112_v38 = vld [vmem:[#allocation2 + $0x930] sm:$0xff] }
 0x303   :  { %1775 = vmatprep.subr.bf16.mxu0 %v1015_v45  ;;  %1947 = vmatprep.subr.bf16.mxu1 %v1017_v46  ;;  %v1119_v45 = vld [vmem:[#allocation2 + $0x968] sm:$0xff]  ;;  %v1121_v46 = vld [vmem:[#allocation2 + $0x978] sm:$0xff] }
 0x306   :  { %1776 = vmatpush1.bf16.msra.mxu0 %v1014_v47  ;;  %1948 = vmatpush1.bf16.msra.mxu1 %v1016_v48  ;;  %v1118_v47 = vld [vmem:[#allocation2 + $0x960] sm:$0xff]  ;;  %v1120_v48 = vld [vmem:[#allocation2 + $0x970] sm:$0xff] }
 0x307   :  { %1777 = vmatprep.subr.bf16.mxu0 %v1023_v49  ;;  %1949 = vmatprep.subr.bf16.mxu1 %v1025_v50  ;;  %v1127_v49 = vld [vmem:[#allocation2 + $0x9a8] sm:$0xff]  ;;  %v1129_v50 = vld [vmem:[#allocation2 + $0x9b8] sm:$0xff] }
 0x30a   :  { %1778 = vmatpush1.bf16.msra.mxu0 %v1022_v51  ;;  %1950 = vmatpush1.bf16.msra.mxu1 %v1024_v52  ;;  %v1126_v51 = vld [vmem:[#allocation2 + $0x9a0] sm:$0xff]  ;;  %v1128_v52 = vld [vmem:[#allocation2 + $0x9b0] sm:$0xff] }
 0x30b   :  { %1779 = vmatprep.subr.bf16.mxu0 %v1031_v53  ;;  %1951 = vmatprep.subr.bf16.mxu1 %v1033_v54  ;;  %v1135_v53 = vld [vmem:[#allocation2 + $0x9e8] sm:$0xff]  ;;  %v1137_v54 = vld [vmem:[#allocation2 + $0x9f8] sm:$0xff] }
 0x30e   :  { %1780 = vmatpush1.bf16.msra.mxu0 %v1030_v55  ;;  %1952 = vmatpush1.bf16.msra.mxu1 %v1032_v56  ;;  %v1134_v55 = vld [vmem:[#allocation2 + $0x9e0] sm:$0xff]  ;;  %v1136_v56 = vld [vmem:[#allocation2 + $0x9f0] sm:$0xff] }
 0x30f   :  { %1781 = vmatprep.subr.bf16.mxu0 %v1039_v57  ;;  %1953 = vmatprep.subr.bf16.mxu1 %v1041_v58  ;;  %v1143_v57 = vld [vmem:[#allocation2 + $0xa28] sm:$0xff]  ;;  %v1145_v58 = vld [vmem:[#allocation2 + $0xa38] sm:$0xff] }
 0x312   :  { %1782 = vmatpush1.bf16.msra.mxu0 %v1038_v59  ;;  %1954 = vmatpush1.bf16.msra.mxu1 %v1040_v60  ;;  %v1142_v59 = vld [vmem:[#allocation2 + $0xa20] sm:$0xff]  ;;  %v1144_v60 = vld [vmem:[#allocation2 + $0xa30] sm:$0xff] }
 0x313   :  { %1783 = vmatprep.subr.bf16.mxu0 %v1047_v61  ;;  %1955 = vmatprep.subr.bf16.mxu1 %v1049_v62  ;;  %v1151_v61 = vld [vmem:[#allocation2 + $0xa68] sm:$0xff]  ;;  %v1153_v62 = vld [vmem:[#allocation2 + $0xa78] sm:$0xff] }
 0x316   :  { %1784 = vmatpush1.bf16.msra.mxu0 %v1046_v63  ;;  %1956 = vmatpush1.bf16.msra.mxu1 %v1048_v1  ;;  %v1150_v63 = vld [vmem:[#allocation2 + $0xa60] sm:$0xff]  ;;  %v1152_v1 = vld [vmem:[#allocation2 + $0xa70] sm:$0xff] }
 0x317   :  { %1785 = vmatprep.subr.bf16.mxu0 %v1055_v0  ;;  %1957 = vmatprep.subr.bf16.mxu1 %v1057_v2  ;;  %v1159_v0 = vld [vmem:[#allocation2 + $0xaa8] sm:$0xff]  ;;  %v1161_v2 = vld [vmem:[#allocation2 + $0xab8] sm:$0xff] }
 0x31a   :  { %1786 = vmatpush1.bf16.msra.mxu0 %v1054_v3  ;;  %1958 = vmatpush1.bf16.msra.mxu1 %v1056_v10  ;;  %v1158_v3 = vld [vmem:[#allocation2 + $0xaa0] sm:$0xff]  ;;  %v1160_v10 = vld [vmem:[#allocation2 + $0xab0] sm:$0xff] }
 0x31b   :  { %1787 = vmatprep.subr.bf16.mxu0 %v1063_v6  ;;  %1959 = vmatprep.subr.bf16.mxu1 %v1065_v11  ;;  %v1167_v6 = vld [vmem:[#allocation2 + $0xae8] sm:$0xff]  ;;  %v1169_v11 = vld [vmem:[#allocation2 + $0xaf8] sm:$0xff] }
 0x31e   :  { %1788 = vmatpush1.bf16.msra.mxu0 %v1062_v12  ;;  %1960 = vmatpush1.bf16.msra.mxu1 %v1064_v13  ;;  %v1166_v12 = vld [vmem:[#allocation2 + $0xae0] sm:$0xff]  ;;  %v1168_v13 = vld [vmem:[#allocation2 + $0xaf0] sm:$0xff] }
 0x31f   :  { %1789 = vmatprep.subr.bf16.mxu0 %v1071_v15  ;;  %1961 = vmatprep.subr.bf16.mxu1 %v1073_v19  ;;  %v1175_v15 = vld [vmem:[#allocation2 + $0xb28] sm:$0xff]  ;;  %v1177_v19 = vld [vmem:[#allocation2 + $0xb38] sm:$0xff] }
 0x322   :  { %1790 = vmatpush1.bf16.msra.mxu0 %v1070_v20  ;;  %1962 = vmatpush1.bf16.msra.mxu1 %v1072_v37  ;;  %v1174_v20 = vld [vmem:[#allocation2 + $0xb20] sm:$0xff]  ;;  %v1176_v37 = vld [vmem:[#allocation2 + $0xb30] sm:$0xff] }
 0x323   :  { %1802 = vmatprep.subr.bf16.mxu0 %v1079_v21  ;;  %1974 = vmatprep.subr.bf16.mxu1 %v1081_v22  ;;  %v1183_v21 = vld [vmem:[#allocation2 + $0xb68] sm:$0xff]  ;;  %v1185_v22 = vld [vmem:[#allocation2 + $0xb78] sm:$0xff] }
 0x325   :  { %1792 = vmatmul.mubr.bf16.vlgmr.msra.gmra.mrb[12].mxu0 %v3721_v39  ;;  %1964 = vmatmul.mubr.bf16.vlgmr.msra.gmra.mrb[12].mxu1 %v3721_v39  ;;  %v1105_v39 = vld [vmem:[#allocation2 + $0x8f8] sm:$0xff] }
 0x326   :  { %1803 = vmatpush1.bf16.msra.mxu0 %v1078_v23  ;;  %1975 = vmatpush1.bf16.msra.mxu1 %v1080_v24  ;;  %v1182_v23 = vld [vmem:[#allocation2 + $0xb60] sm:$0xff]  ;;  %v1184_v24 = vld [vmem:[#allocation2 + $0xb70] sm:$0xff] }
 0x327   :  { %1804 = vmatprep.subr.bf16.mxu0 %v1087_v40  ;;  %1976 = vmatprep.subr.bf16.mxu1 %v1089_v25  ;;  %v1191_v40 = vld [vmem:[#allocation2 + $0xba8] sm:$0xff]  ;;  %v1193_v25 = vld [vmem:[#allocation2 + $0xbb8] sm:$0xff] }
 0x328   :  { %1834 = vmatprep.mubr.bf16.mxu0 %v3743_v17  ;;  %2006 = vmatprep.mubr.bf16.mxu1 %v3743_v17  ;;  %v1110_v17 = vld [vmem:[#allocation2 + $0x920] sm:$0xff] }
 0x32a   :  { %1805 = vmatpush1.bf16.msra.mxu0 %v1086_v26  ;;  %1977 = vmatpush1.bf16.msra.mxu1 %v1088_v27  ;;  %v1190_v26 = vld [vmem:[#allocation2 + $0xba0] sm:$0xff]  ;;  %v1192_v27 = vld [vmem:[#allocation2 + $0xbb0] sm:$0xff] }
 0x32b   :  { %1806 = vmatprep.subr.bf16.mxu0 %v1095_v28  ;;  %1978 = vmatprep.subr.bf16.mxu1 %v1097_v29  ;;  %v1199_v28 = vld [vmem:[#allocation2 + $0xbe8] sm:$0xff]  ;;  %v1201_v29 = vld [vmem:[#allocation2 + $0xbf8] sm:$0xff] }
 0x32e   :  { %1807 = vmatpush1.bf16.msra.mxu0 %v1094_v30  ;;  %1979 = vmatpush1.bf16.msra.mxu1 %v1096_v31  ;;  %v1198_v30 = vld [vmem:[#allocation2 + $0xbe0] sm:$0xff]  ;;  %v1200_v31 = vld [vmem:[#allocation2 + $0xbf0] sm:$0xff] }
 0x32f   :  { %1808 = vmatprep.subr.bf16.mxu0 %v1103_v32  ;;  %1980 = vmatprep.subr.bf16.mxu1 %v1105_v39  ;;  %v1207_v32 = vld [vmem:[#allocation2 + $0xc28] sm:$0xff]  ;;  %v1209_v39 = vld [vmem:[#allocation2 + $0xc38] sm:$0xff] }
 0x332   :  { %1809 = vmatpush1.bf16.msra.mxu0 %v1102_v33  ;;  %1981 = vmatpush1.bf16.msra.mxu1 %v1104_v34  ;;  %v1206_v33 = vld [vmem:[#allocation2 + $0xc20] sm:$0xff]  ;;  %v1208_v34 = vld [vmem:[#allocation2 + $0xc30] sm:$0xff] }
 0x333   :  { %1810 = vmatprep.subr.bf16.mxu0 %v1111_v35  ;;  %1982 = vmatprep.subr.bf16.mxu1 %v1113_v36  ;;  %v1215_v35 = vld [vmem:[#allocation2 + $0xc68] sm:$0xff]  ;;  %v1217_v36 = vld [vmem:[#allocation2 + $0xc78] sm:$0xff] }
 0x336   :  { %1811 = vmatpush1.bf16.msra.mxu0 %v1110_v17  ;;  %1983 = vmatpush1.bf16.msra.mxu1 %v1112_v38  ;;  %v1214_v17 = vld [vmem:[#allocation2 + $0xc60] sm:$0xff]  ;;  %v1216_v38 = vld [vmem:[#allocation2 + $0xc70] sm:$0xff] }
 0x337   :  { %1812 = vmatprep.subr.bf16.mxu0 %v1119_v45  ;;  %1984 = vmatprep.subr.bf16.mxu1 %v1121_v46  ;;  %v1223_v45 = vld [vmem:[#allocation2 + $0xca8] sm:$0xff]  ;;  %v1225_v46 = vld [vmem:[#allocation2 + $0xcb8] sm:$0xff] }
 0x33a   :  { %1813 = vmatpush1.bf16.msra.mxu0 %v1118_v47  ;;  %1985 = vmatpush1.bf16.msra.mxu1 %v1120_v48  ;;  %v1222_v47 = vld [vmem:[#allocation2 + $0xca0] sm:$0xff]  ;;  %v1224_v48 = vld [vmem:[#allocation2 + $0xcb0] sm:$0xff] }
 0x33b   :  { %1814 = vmatprep.subr.bf16.mxu0 %v1127_v49  ;;  %1986 = vmatprep.subr.bf16.mxu1 %v1129_v50  ;;  %v1231_v49 = vld [vmem:[#allocation2 + $0xce8] sm:$0xff]  ;;  %v1230_v50 = vld [vmem:[#allocation2 + $0xce0] sm:$0xff] }
 0x33e   :  { %1815 = vmatpush1.bf16.msra.mxu0 %v1126_v51  ;;  %1987 = vmatpush1.bf16.msra.mxu1 %v1128_v52  ;;  %v1232_v51 = vld [vmem:[#allocation2 + $0xcf0] sm:$0xff]  ;;  %v1239_v52 = vld [vmem:[#allocation2 + $0xd28] sm:$0xff] }
 0x33f   :  { %1816 = vmatprep.subr.bf16.mxu0 %v1135_v53  ;;  %1988 = vmatprep.subr.bf16.mxu1 %v1137_v54  ;;  %v1241_v53 = vld [vmem:[#allocation2 + $0xd38] sm:$0xff]  ;;  %v3777_v54 = vld [vmem:[#allocation12] sm:$0xff] }
 0x342   :  { %1817 = vmatpush1.bf16.msra.mxu0 %v1134_v55  ;;  %1989 = vmatpush1.bf16.msra.mxu1 %v1136_v56  ;;  %v1240_v55 = vld [vmem:[#allocation2 + $0xd30] sm:$0xff]  ;;  %v1247_v56 = vld [vmem:[#allocation2 + $0xd68] sm:$0xff] }
 0x343   :  { %1818 = vmatprep.subr.bf16.mxu0 %v1143_v57  ;;  %1990 = vmatprep.subr.bf16.mxu1 %v1145_v58  ;;  %v1249_v57 = vld [vmem:[#allocation2 + $0xd78] sm:$0xff]  ;;  %v1335_v58 = vrot.slane %v3777_v54, %v3704_v5 }
 0x346   :  { %1819 = vmatpush1.bf16.msra.mxu0 %v1142_v59  ;;  %1991 = vmatpush1.bf16.msra.mxu1 %v1144_v60  ;;  %v1343_v59 = vrot.slane %v3777_v54, %v3707_v7  ;;  %v1339_v60 = vrot.slane %v3777_v54, %v3710_v8 }
 0x347   :  { %1820 = vmatprep.subr.bf16.mxu0 %v1151_v61  ;;  %1992 = vmatprep.subr.bf16.mxu1 %v1153_v62  ;;  %v1347_v61 = vrot.slane %v3777_v54, %v3713_v9  ;;  %v1246_v62 = vld [vmem:[#allocation2 + $0xd60] sm:$0xff] }
 0x34a   :  { %1821 = vmatpush1.bf16.msra.mxu0 %v1150_v63  ;;  %1993 = vmatpush1.bf16.msra.mxu1 %v1152_v1  ;;  %v1248_v63 = vld [vmem:[#allocation2 + $0xd70] sm:$0xff] }
 0x34b   :  { %1822 = vmatprep.subr.bf16.mxu0 %v1159_v0  ;;  %1994 = vmatprep.subr.bf16.mxu1 %v1161_v2  ;;  %v1255_v2 = vld [vmem:[#allocation2 + $0xda8] sm:$0xff] }
 0x34e   :  { %1823 = vmatpush1.bf16.msra.mxu0 %v1158_v3  ;;  %1995 = vmatpush1.bf16.msra.mxu1 %v1160_v10  ;;  %v1257_v3 = vld [vmem:[#allocation2 + $0xdb8] sm:$0xff] }
 0x34f   :  { %1824 = vmatprep.subr.bf16.mxu0 %v1167_v6  ;;  %1996 = vmatprep.subr.bf16.mxu1 %v1169_v11 }
 0x352   :  { %1825 = vmatpush1.bf16.msra.mxu0 %v1166_v12  ;;  %1997 = vmatpush1.bf16.msra.mxu1 %v1168_v13 }
 0x353   :  { %1826 = vmatprep.subr.bf16.mxu0 %v1175_v15  ;;  %1998 = vmatprep.subr.bf16.mxu1 %v1177_v19 }
 0x356   :  { %1827 = vmatpush1.bf16.msra.mxu0 %v1174_v20  ;;  %1999 = vmatpush1.bf16.msra.mxu1 %v1176_v37 }
 0x357   :  { %1828 = vmatprep.subr.bf16.mxu0 %v1183_v21  ;;  %2000 = vmatprep.subr.bf16.mxu1 %v1185_v22 }
 0x35a   :  { %1829 = vmatpush1.bf16.msra.mxu0 %v1182_v23  ;;  %2001 = vmatpush1.bf16.msra.mxu1 %v1184_v24  ;;  %v1254_v24 = vld [vmem:[#allocation2 + $0xda0] sm:$0xff] }
 0x35b   :  { %1830 = vmatprep.subr.bf16.mxu0 %v1191_v40  ;;  %2002 = vmatprep.subr.bf16.mxu1 %v1193_v25  ;;  %v1256_v40 = vld [vmem:[#allocation2 + $0xdb0] sm:$0xff] }
 0x35e   :  { %1831 = vmatpush1.bf16.msra.mxu0 %v1190_v26  ;;  %2003 = vmatpush1.bf16.msra.mxu1 %v1192_v27  ;;  %v1263_v27 = vld [vmem:[#allocation2 + $0xde8] sm:$0xff] }
 0x35f   :  { %1832 = vmatprep.subr.bf16.mxu0 %v1199_v28  ;;  %2004 = vmatprep.subr.bf16.mxu1 %v1201_v29  ;;  %v1265_v28 = vld [vmem:[#allocation2 + $0xdf8] sm:$0xff] }
 0x362   :  { %1833 = vmatpush1.bf16.msra.mxu0 %v1198_v30  ;;  %2005 = vmatpush1.bf16.msra.mxu1 %v1200_v31 }
 0x363   :  { %1845 = vmatprep.subr.bf16.mxu0 %v1207_v32  ;;  %2017 = vmatprep.subr.bf16.mxu1 %v1209_v39 }
 0x365   :  { %1835 = vmatmul.mubr.bf16.vlgmr.msra.gmra.mrb[12].mxu0 %v3739_v14  ;;  %2007 = vmatmul.mubr.bf16.vlgmr.msra.gmra.mrb[12].mxu1 %v3739_v14  ;;  %v1233_v14 = vld [vmem:[#allocation2 + $0xcf8] sm:$0xff] }
 0x366   :  { %1846 = vmatpush1.bf16.msra.mxu0 %v1206_v33  ;;  %2018 = vmatpush1.bf16.msra.mxu1 %v1208_v34 }
 0x367   :  { %1847 = vmatprep.subr.bf16.mxu0 %v1215_v35  ;;  %2019 = vmatprep.subr.bf16.mxu1 %v1217_v36 }
 0x368   :  { %1877 = vmatprep.mubr.bf16.mxu0 %v3745_v18  ;;  %2049 = vmatprep.mubr.bf16.mxu1 %v3745_v18  ;;  %v1238_v18 = vld [vmem:[#allocation2 + $0xd20] sm:$0xff] }
 0x36a   :  { %1848 = vmatpush1.bf16.msra.mxu0 %v1214_v17  ;;  %2020 = vmatpush1.bf16.msra.mxu1 %v1216_v38  ;;  %v1262_v38 = vld [vmem:[#allocation2 + $0xde0] sm:$0xff] }
 0x36b   :  { %1849 = vmatprep.subr.bf16.mxu0 %v1223_v45  ;;  %2021 = vmatprep.subr.bf16.mxu1 %v1225_v46  ;;  %v1264_v45 = vld [vmem:[#allocation2 + $0xdf0] sm:$0xff] }
 0x36e   :  { %1850 = vmatpush1.bf16.msra.mxu0 %v1222_v47  ;;  %2022 = vmatpush1.bf16.msra.mxu1 %v1224_v48  ;;  %v1271_v48 = vld [vmem:[#allocation2 + $0xe28] sm:$0xff] }
 0x36f   :  { %1851 = vmatprep.subr.bf16.mxu0 %v1231_v49  ;;  %2023 = vmatprep.subr.bf16.mxu1 %v1233_v14  ;;  %v1273_v49 = vld [vmem:[#allocation2 + $0xe38] sm:$0xff]  ;;  %v1270_v14 = vld [vmem:[#allocation2 + $0xe20] sm:$0xff] }
 0x372   :  { %1852 = vmatpush1.bf16.msra.mxu0 %v1230_v50  ;;  %2024 = vmatpush1.bf16.msra.mxu1 %v1232_v51  ;;  %v1272_v50 = vld [vmem:[#allocation2 + $0xe30] sm:$0xff]  ;;  %v1279_v51 = vld [vmem:[#allocation2 + $0xe68] sm:$0xff] }
 0x373   :  { %1853 = vmatprep.subr.bf16.mxu0 %v1239_v52  ;;  %2025 = vmatprep.subr.bf16.mxu1 %v1241_v53  ;;  %v1281_v52 = vld [vmem:[#allocation2 + $0xe78] sm:$0xff]  ;;  %v1278_v53 = vld [vmem:[#allocation2 + $0xe60] sm:$0xff] }
 0x376   :  { %1854 = vmatpush1.bf16.msra.mxu0 %v1238_v18  ;;  %2026 = vmatpush1.bf16.msra.mxu1 %v1240_v55  ;;  %v1280_v18 = vld [vmem:[#allocation2 + $0xe70] sm:$0xff]  ;;  %v1287_v55 = vld [vmem:[#allocation2 + $0xea8] sm:$0xff] }
 0x377   :  { %1855 = vmatprep.subr.bf16.mxu0 %v1247_v56  ;;  %2027 = vmatprep.subr.bf16.mxu1 %v1249_v57  ;;  %v1289_v56 = vld [vmem:[#allocation2 + $0xeb8] sm:$0xff]  ;;  %v1286_v57 = vld [vmem:[#allocation2 + $0xea0] sm:$0xff] }
 0x378   :  { %v1535_v1 = vpop.f32.mrb[8].mxu0  ;;  %v1707_v0 = vpop.f32.mrb[8].mxu1 }
 0x379   :  { %v3196_v10 = vadd.f32 %v1535_v1, %v1335_v58  ;;  %v3200_v6 = vadd.f32 %v1707_v0, %v1343_v59  ;;  %v1537_v11 = vpop.f32.mrb[9].mxu0  ;;  %v1709_v12 = vpop.f32.mrb[9].mxu1  ;;  %v1305_v1 = vld [vmem:[#allocation2 + $0xf38] sm:$0xff]  ;;  %v1302_v0 = vld [vmem:[#allocation2 + $0xf20] sm:$0xff] }
 0x37a   :  { %v3197_v13 = vadd.f32 %v1537_v11, %v1339_v60  ;;  %v3201_v15 = vadd.f32 %v1709_v12, %v1347_v61  ;;  %v1539_v19 = vpop.f32.mrb[10].mxu0  ;;  %v1711_v20 = vpop.f32.mrb[10].mxu1  ;;  %1856 = vmatpush1.bf16.msra.mxu0 %v1246_v62  ;;  %2028 = vmatpush1.bf16.msra.mxu1 %v1248_v63  ;;  %v1296_v62 = vld [vmem:[#allocation2 + $0xef0] sm:$0xff]  ;;  %v1303_v63 = vld [vmem:[#allocation2 + $0xf28] sm:$0xff] }
 0x37b   :  { %v3198_v37 = vadd.f32 %v1539_v19, %v1335_v58  ;;  %v3202_v21 = vadd.f32 %v1711_v20, %v1343_v59  ;;  %v1541_v22 = vpop.f32.mrb[11].mxu0  ;;  %v1713_v23 = vpop.f32.mrb[11].mxu1  ;;  %1857 = vmatprep.subr.bf16.mxu0 %v1255_v2  ;;  %2029 = vmatprep.subr.bf16.mxu1 %v1257_v3  ;;  %v2060_v29 = vmax.f32 %v3196_v10, 0.0  ;;  %v2062_v30 = vmax.f32 %v3200_v6, 0.0  ;;  %v1288_v58 = vld [vmem:[#allocation2 + $0xeb0] sm:$0xff]  ;;  %v1295_v59 = vld [vmem:[#allocation2 + $0xee8] sm:$0xff] }
 0x37c   :  { %v3199_v25 = vadd.f32 %v1541_v22, %v1339_v60  ;;  %v3203_v26 = vadd.f32 %v1713_v23, %v1347_v61  ;;  %v2061_v39 = vmax.f32 %v3197_v13, 0.0  ;;  %v2063_v33 = vmax.f32 %v3201_v15, 0.0  ;;  %v1297_v60 = vld [vmem:[#allocation2 + $0xef8] sm:$0xff]  ;;  %v1294_v61 = vld [vmem:[#allocation2 + $0xee0] sm:$0xff]  ;;  %v1304_v2 = vld [vmem:[#allocation2 + $0xf30] sm:$0xff] }
 0x37d   :  { %v2068_v31 = vmax.f32 %v3198_v37, 0.0  ;;  %v2070_v32 = vmax.f32 %v3202_v21, 0.0  ;;  %v1311_v3 = vld [vmem:[#allocation2 + $0xf68] sm:$0xff]  ;;  %v1313_v10 = vld [vmem:[#allocation2 + $0xf78] sm:$0xff]  ;;  %v1310_v6 = vld [vmem:[#allocation2 + $0xf60] sm:$0xff]  ;;  %v1351_v23 = vrot.slane %v3777_v54, %v270_v41 }
 0x37e   :  { %v2069_v34 = vmax.f32 %v3199_v25, 0.0  ;;  %v2071_v35 = vmax.f32 %v3203_v26, 0.0  ;;  %1858 = vmatpush1.bf16.msra.mxu0 %v1254_v24  ;;  %2030 = vmatpush1.bf16.msra.mxu1 %v1256_v40  ;;  %v1312_v11 = vld [vmem:[#allocation2 + $0xf70] sm:$0xff]  ;;  %v1319_v12 = vld [vmem:[#allocation2 + $0xfa8] sm:$0xff]  ;;  %v1321_v13 = vld [vmem:[#allocation2 + $0xfb8] sm:$0xff]  ;;  %v1359_v24 = vrot.slane %v3777_v54, %v278_v42  ;;  %v1355_v40 = vrot.slane %v3777_v54, %v274_v43 }
 0x37f   :  { %v3787_v36 = vpack.c.bf16 %v2068_v31, %v2060_v29  ;;  %v3789_v17 = vpack.c.bf16 %v2070_v32, %v2062_v30  ;;  %1859 = vmatprep.subr.bf16.mxu0 %v1263_v27  ;;  %2031 = vmatprep.subr.bf16.mxu1 %v1265_v28  ;;  %v1318_v15 = vld [vmem:[#allocation2 + $0xfa0] sm:$0xff]  ;;  %v1320_v19 = vld [vmem:[#allocation2 + $0xfb0] sm:$0xff]  ;;  %v1327_v20 = vld [vmem:[#allocation2 + $0xfe8] sm:$0xff]  ;;  %v1363_v25 = vrot.slane %v3777_v54, %v282_v44 }
 0x380   :  { %v3791_v46 = vpack.c.bf16 %v2069_v34, %v2061_v39  ;;  %v3793_v47 = vpack.c.bf16 %v2071_v35, %v2063_v33  ;;  %v1329_v37 = vld [vmem:[#allocation2 + $0xff8] sm:$0xff]  ;;  %v1326_v21 = vld [vmem:[#allocation2 + $0xfe0] sm:$0xff]  ;;  %v1328_v22 = vld [vmem:[#allocation2 + $0xff0] sm:$0xff] }
 0x382   :  { %1860 = vmatpush1.bf16.msra.mxu0 %v1262_v38  ;;  %2032 = vmatpush1.bf16.msra.mxu1 %v1264_v45 }
 0x383   :  { %1861 = vmatprep.subr.bf16.mxu0 %v1271_v48  ;;  %2033 = vmatprep.subr.bf16.mxu1 %v1273_v49 }
 0x386   :  { %1862 = vmatpush1.bf16.msra.mxu0 %v1270_v14  ;;  %2034 = vmatpush1.bf16.msra.mxu1 %v1272_v50 }
 0x387   :  { %1863 = vmatprep.subr.bf16.mxu0 %v1279_v51  ;;  %2035 = vmatprep.subr.bf16.mxu1 %v1281_v52 }
 0x38a   :  { %1864 = vmatpush1.bf16.msra.mxu0 %v1278_v53  ;;  %2036 = vmatpush1.bf16.msra.mxu1 %v1280_v18 }
 0x38b   :  { %1865 = vmatprep.subr.bf16.mxu0 %v1287_v55  ;;  %2037 = vmatprep.subr.bf16.mxu1 %v1289_v56 }
 0x38e   :  { %1866 = vmatpush1.bf16.msra.mxu0 %v1286_v57  ;;  %2038 = vmatpush1.bf16.msra.mxu1 %v1288_v58 }
 0x38f   :  { %1867 = vmatprep.subr.bf16.mxu0 %v1295_v59  ;;  %2039 = vmatprep.subr.bf16.mxu1 %v1297_v60 }
 0x392   :  { %1868 = vmatpush1.bf16.msra.mxu0 %v1294_v61  ;;  %2040 = vmatpush1.bf16.msra.mxu1 %v1296_v62 }
 0x393   :  { %1869 = vmatprep.subr.bf16.mxu0 %v1303_v63  ;;  %2041 = vmatprep.subr.bf16.mxu1 %v1305_v1 }
 0x396   :  { %1870 = vmatpush1.bf16.msra.mxu0 %v1302_v0  ;;  %2042 = vmatpush1.bf16.msra.mxu1 %v1304_v2 }
 0x397   :  { %1871 = vmatprep.subr.bf16.mxu0 %v1311_v3  ;;  %2043 = vmatprep.subr.bf16.mxu1 %v1313_v10 }
 0x39a   :  { %1872 = vmatpush1.bf16.msra.mxu0 %v1310_v6  ;;  %2044 = vmatpush1.bf16.msra.mxu1 %v1312_v11 }
 0x39b   :  { %1873 = vmatprep.subr.bf16.mxu0 %v1319_v12  ;;  %2045 = vmatprep.subr.bf16.mxu1 %v1321_v13 }
 0x39e   :  { %1874 = vmatpush1.bf16.msra.mxu0 %v1318_v15  ;;  %2046 = vmatpush1.bf16.msra.mxu1 %v1320_v19 }
 0x39f   :  { %1875 = vmatprep.subr.bf16.mxu0 %v1327_v20  ;;  %2047 = vmatprep.subr.bf16.mxu1 %v1329_v37 }
 0x3a2   :  { %1876 = vmatpush1.bf16.msra.mxu0 %v1326_v21  ;;  %2048 = vmatpush1.bf16.msra.mxu1 %v1328_v22 }
 0x3a5   :  { %1878 = vmatmul.mubr.bf16.vlgmr.msra.gmra.mrb[12].mxu0 %v3741_v16  ;;  %2050 = vmatmul.mubr.bf16.vlgmr.msra.gmra.mrb[12].mxu1 %v3741_v16 }
 0x478   :  { %v1879_v26 = vpop.f32.mrb[12].mxu0  ;;  %v2051_v27 = vpop.f32.mrb[12].mxu1 }
 0x479   :  { %v3204_v28 = vadd.f32 %v1879_v26, %v1351_v23  ;;  %v3208_v16 = vadd.f32 %v2051_v27, %v1359_v24  ;;  %v1881_v29 = vpop.f32.mrb[13].mxu0  ;;  %v2053_v30 = vpop.f32.mrb[13].mxu1 }
 0x47a   :  { %v3205_v31 = vadd.f32 %v1881_v29, %v1355_v40  ;;  %v3209_v41 = vadd.f32 %v2053_v30, %v1363_v25  ;;  %v1883_v32 = vpop.f32.mrb[14].mxu0  ;;  %v2055_v39 = vpop.f32.mrb[14].mxu1 }
 0x47b   :  { %v3206_v33 = vadd.f32 %v1883_v32, %v1351_v23  ;;  %v3210_v42 = vadd.f32 %v2055_v39, %v1359_v24  ;;  %v1885_v34 = vpop.f32.mrb[15].mxu0  ;;  %v2057_v35 = vpop.f32.mrb[15].mxu1  ;;  %v2064_v45 = vmax.f32 %v3204_v28, 0.0  ;;  %v2066_v4 = vmax.f32 %v3208_v16, 0.0 }
 0x47c   :  { %v3207_v38 = vadd.f32 %v1885_v34, %v1355_v40  ;;  %v3211_v43 = vadd.f32 %v2057_v35, %v1363_v25  ;;  %v2065_v54 = vmax.f32 %v3205_v31, 0.0  ;;  %v2067_v49 = vmax.f32 %v3209_v41, 0.0 }
 0x47d   :  { %v2072_v48 = vmax.f32 %v3206_v33, 0.0  ;;  %v2074_v44 = vmax.f32 %v3210_v42, 0.0 }
 0x47e   :  { %v2073_v14 = vmax.f32 %v3207_v38, 0.0  ;;  %v2075_v50 = vmax.f32 %v3211_v43, 0.0 }
 0x47f   :  { %v3809_v51 = vpack.c.bf16 %v2072_v48, %v2064_v45  ;;  %v3811_v52 = vpack.c.bf16 %v2074_v44, %v2066_v4 }
 0x480   :  { %v3813_v53 = vpack.c.bf16 %v2073_v14, %v2065_v54  ;;  %v3815_v18 = vpack.c.bf16 %v2075_v50, %v2067_v49 }
 0x481   :  { %3503 = dma.done.wait [#allocation5 + $0x1], 32768 }
 0x482   :  { %3504 = vsyncadd [#allocation5 + $0x1], 4294934528  ;;  %2397 = vmatprep.mubr.bf16.mxu0 %v3791_v46  ;;  %2569 = vmatprep.mubr.bf16.mxu1 %v3791_v46  ;;  %v2088_v55 = vld [vmem:[#allocation3 + $0x8] sm:$0xff]  ;;  %v2090_v56 = vld [vmem:[#allocation3 + $0x18] sm:$0xff] }
 0x483   :  { %v2087_v57 = vld [vmem:[#allocation3] sm:$0xff]  ;;  %2365 = vmatprep.subr.bf16.mxu0 %v2088_v55  ;;  %2537 = vmatprep.subr.bf16.mxu1 %v2090_v56  ;;  %v2089_v58 = vld [vmem:[#allocation3 + $0x10] sm:$0xff]  ;;  %v2092_v59 = vld [vmem:[#allocation3 + $0x28] sm:$0xff] }
 0x484   :  { %v2094_v60 = vld [vmem:[#allocation3 + $0x38] sm:$0xff]  ;;  %2366 = vmatpush1.bf16.msra.mxu0 %v2087_v57  ;;  %2538 = vmatpush1.bf16.msra.mxu1 %v2089_v58  ;;  %v2091_v61 = vld [vmem:[#allocation3 + $0x20] sm:$0xff]  ;;  %v2093_v62 = vld [vmem:[#allocation3 + $0x30] sm:$0xff] }
 0x485   :  { %2367 = vmatprep.subr.bf16.mxu0 %v2092_v59  ;;  %2539 = vmatprep.subr.bf16.mxu1 %v2094_v60  ;;  %v2096_v63 = vld [vmem:[#allocation3 + $0x48] sm:$0xff]  ;;  %v2098_v1 = vld [vmem:[#allocation3 + $0x58] sm:$0xff]  ;;  %v2095_v46 = vld [vmem:[#allocation3 + $0x40] sm:$0xff] }
 0x486   :  { %v2097_v0 = vld [vmem:[#allocation3 + $0x50] sm:$0xff]  ;;  %v2100_v2 = vld [vmem:[#allocation3 + $0x68] sm:$0xff]  ;;  %v2102_v3 = vld [vmem:[#allocation3 + $0x78] sm:$0xff] }
 0x487   :  { %v2099_v10 = vld [vmem:[#allocation3 + $0x60] sm:$0xff]  ;;  %v2101_v6 = vld [vmem:[#allocation3 + $0x70] sm:$0xff]  ;;  %v2104_v11 = vld [vmem:[#allocation3 + $0x88] sm:$0xff] }
 0x488   :  { %2368 = vmatpush1.bf16.msra.mxu0 %v2091_v61  ;;  %2540 = vmatpush1.bf16.msra.mxu1 %v2093_v62  ;;  %v2106_v12 = vld [vmem:[#allocation3 + $0x98] sm:$0xff]  ;;  %v2103_v13 = vld [vmem:[#allocation3 + $0x80] sm:$0xff]  ;;  %v2105_v15 = vld [vmem:[#allocation3 + $0x90] sm:$0xff] }
 0x489   :  { %2369 = vmatprep.subr.bf16.mxu0 %v2096_v63  ;;  %2541 = vmatprep.subr.bf16.mxu1 %v2098_v1  ;;  %v2108_v19 = vld [vmem:[#allocation3 + $0xa8] sm:$0xff]  ;;  %v2110_v20 = vld [vmem:[#allocation3 + $0xb8] sm:$0xff]  ;;  %v2107_v37 = vld [vmem:[#allocation3 + $0xa0] sm:$0xff] }
 0x48a   :  { %v2109_v21 = vld [vmem:[#allocation3 + $0xb0] sm:$0xff]  ;;  %v2112_v22 = vld [vmem:[#allocation3 + $0xc8] sm:$0xff]  ;;  %v2114_v23 = vld [vmem:[#allocation3 + $0xd8] sm:$0xff] }
 0x48b   :  { %v2111_v24 = vld [vmem:[#allocation3 + $0xc0] sm:$0xff]  ;;  %v2113_v40 = vld [vmem:[#allocation3 + $0xd0] sm:$0xff]  ;;  %v2116_v25 = vld [vmem:[#allocation3 + $0xe8] sm:$0xff] }
 0x48c   :  { %2370 = vmatpush1.bf16.msra.mxu0 %v2095_v46  ;;  %2542 = vmatpush1.bf16.msra.mxu1 %v2097_v0  ;;  %v2118_v26 = vld [vmem:[#allocation3 + $0xf8] sm:$0xff]  ;;  %v2115_v27 = vld [vmem:[#allocation3 + $0xe0] sm:$0xff]  ;;  %v2117_v28 = vld [vmem:[#allocation3 + $0xf0] sm:$0xff] }
 0x48d   :  { %2371 = vmatprep.subr.bf16.mxu0 %v2100_v2  ;;  %2543 = vmatprep.subr.bf16.mxu1 %v2102_v3  ;;  %v2120_v16 = vld [vmem:[#allocation3 + $0x108] sm:$0xff]  ;;  %v2122_v29 = vld [vmem:[#allocation3 + $0x118] sm:$0xff]  ;;  %v2119_v30 = vld [vmem:[#allocation3 + $0x100] sm:$0xff] }
 0x48e   :  { %v2121_v31 = vld [vmem:[#allocation3 + $0x110] sm:$0xff]  ;;  %v2124_v41 = vld [vmem:[#allocation3 + $0x128] sm:$0xff]  ;;  %v2126_v32 = vld [vmem:[#allocation3 + $0x138] sm:$0xff] }
 0x48f   :  { %v2123_v39 = vld [vmem:[#allocation3 + $0x120] sm:$0xff]  ;;  %v2125_v33 = vld [vmem:[#allocation3 + $0x130] sm:$0xff]  ;;  %v2128_v42 = vld [vmem:[#allocation3 + $0x148] sm:$0xff] }
 0x490   :  { %2372 = vmatpush1.bf16.msra.mxu0 %v2099_v10  ;;  %2544 = vmatpush1.bf16.msra.mxu1 %v2101_v6  ;;  %v2130_v34 = vld [vmem:[#allocation3 + $0x158] sm:$0xff]  ;;  %v2127_v35 = vld [vmem:[#allocation3 + $0x140] sm:$0xff]  ;;  %v2129_v38 = vld [vmem:[#allocation3 + $0x150] sm:$0xff] }
 0x491   :  { %2373 = vmatprep.subr.bf16.mxu0 %v2104_v11  ;;  %2545 = vmatprep.subr.bf16.mxu1 %v2106_v12  ;;  %v2132_v43 = vld [vmem:[#allocation3 + $0x168] sm:$0xff]  ;;  %v2134_v45 = vld [vmem:[#allocation3 + $0x178] sm:$0xff]  ;;  %v2131_v4 = vld [vmem:[#allocation3 + $0x160] sm:$0xff] }
 0x492   :  { %v2133_v48 = vld [vmem:[#allocation3 + $0x170] sm:$0xff]  ;;  %v2136_v44 = vld [vmem:[#allocation3 + $0x188] sm:$0xff]  ;;  %v2138_v54 = vld [vmem:[#allocation3 + $0x198] sm:$0xff] }
 0x493   :  { %v2135_v49 = vld [vmem:[#allocation3 + $0x180] sm:$0xff]  ;;  %v2137_v14 = vld [vmem:[#allocation3 + $0x190] sm:$0xff]  ;;  %v2140_v50 = vld [vmem:[#allocation3 + $0x1a8] sm:$0xff] }
 0x494   :  { %2374 = vmatpush1.bf16.msra.mxu0 %v2103_v13  ;;  %2546 = vmatpush1.bf16.msra.mxu1 %v2105_v15  ;;  %v2142_v55 = vld [vmem:[#allocation3 + $0x1b8] sm:$0xff]  ;;  %v2139_v56 = vld [vmem:[#allocation3 + $0x1a0] sm:$0xff]  ;;  %v2141_v57 = vld [vmem:[#allocation3 + $0x1b0] sm:$0xff] }
 0x495   :  { %2375 = vmatprep.subr.bf16.mxu0 %v2108_v19  ;;  %2547 = vmatprep.subr.bf16.mxu1 %v2110_v20  ;;  %v2144_v58 = vld [vmem:[#allocation3 + $0x1c8] sm:$0xff]  ;;  %v2146_v59 = vld [vmem:[#allocation3 + $0x1d8] sm:$0xff]  ;;  %v2143_v60 = vld [vmem:[#allocation3 + $0x1c0] sm:$0xff] }
 0x496   :  { %v2145_v61 = vld [vmem:[#allocation3 + $0x1d0] sm:$0xff]  ;;  %v2148_v62 = vld [vmem:[#allocation3 + $0x1e8] sm:$0xff]  ;;  %v2150_v63 = vld [vmem:[#allocation3 + $0x1f8] sm:$0xff] }
 0x497   :  { %v2147_v1 = vld [vmem:[#allocation3 + $0x1e0] sm:$0xff]  ;;  %v2149_v46 = vld [vmem:[#allocation3 + $0x1f0] sm:$0xff]  ;;  %v2152_v0 = vld [vmem:[#allocation3 + $0x208] sm:$0xff] }
 0x498   :  { %2376 = vmatpush1.bf16.msra.mxu0 %v2107_v37  ;;  %2548 = vmatpush1.bf16.msra.mxu1 %v2109_v21  ;;  %v2154_v2 = vld [vmem:[#allocation3 + $0x218] sm:$0xff]  ;;  %v2151_v3 = vld [vmem:[#allocation3 + $0x200] sm:$0xff]  ;;  %v2153_v10 = vld [vmem:[#allocation3 + $0x210] sm:$0xff] }
 0x499   :  { %2377 = vmatprep.subr.bf16.mxu0 %v2112_v22  ;;  %2549 = vmatprep.subr.bf16.mxu1 %v2114_v23  ;;  %v2156_v6 = vld [vmem:[#allocation3 + $0x228] sm:$0xff]  ;;  %v2158_v11 = vld [vmem:[#allocation3 + $0x238] sm:$0xff]  ;;  %v2155_v12 = vld [vmem:[#allocation3 + $0x220] sm:$0xff] }
 0x49a   :  { %v2157_v13 = vld [vmem:[#allocation3 + $0x230] sm:$0xff]  ;;  %v2160_v15 = vld [vmem:[#allocation3 + $0x248] sm:$0xff]  ;;  %v2162_v19 = vld [vmem:[#allocation3 + $0x258] sm:$0xff] }
 0x49b   :  { %v2159_v20 = vld [vmem:[#allocation3 + $0x240] sm:$0xff]  ;;  %v2161_v37 = vld [vmem:[#allocation3 + $0x250] sm:$0xff]  ;;  %v2164_v21 = vld [vmem:[#allocation3 + $0x268] sm:$0xff] }
 0x49c   :  { %2378 = vmatpush1.bf16.msra.mxu0 %v2111_v24  ;;  %2550 = vmatpush1.bf16.msra.mxu1 %v2113_v40  ;;  %v2163_v22 = vld [vmem:[#allocation3 + $0x260] sm:$0xff]  ;;  %v2165_v23 = vld [vmem:[#allocation3 + $0x270] sm:$0xff]  ;;  %v2168_v24 = vld [vmem:[#allocation3 + $0x288] sm:$0xff] }
 0x49d   :  { %2379 = vmatprep.subr.bf16.mxu0 %v2116_v25  ;;  %2551 = vmatprep.subr.bf16.mxu1 %v2118_v26  ;;  %v2170_v40 = vld [vmem:[#allocation3 + $0x298] sm:$0xff]  ;;  %v2169_v25 = vld [vmem:[#allocation3 + $0x290] sm:$0xff]  ;;  %v2172_v26 = vld [vmem:[#allocation3 + $0x2a8] sm:$0xff] }
 0x4a0   :  { %2380 = vmatpush1.bf16.msra.mxu0 %v2115_v27  ;;  %2552 = vmatpush1.bf16.msra.mxu1 %v2117_v28  ;;  %v2174_v27 = vld [vmem:[#allocation3 + $0x2b8] sm:$0xff]  ;;  %v2171_v28 = vld [vmem:[#allocation3 + $0x2a0] sm:$0xff] }
 0x4a1   :  { %2381 = vmatprep.subr.bf16.mxu0 %v2120_v16  ;;  %2553 = vmatprep.subr.bf16.mxu1 %v2122_v29  ;;  %v2173_v16 = vld [vmem:[#allocation3 + $0x2b0] sm:$0xff]  ;;  %v2176_v29 = vld [vmem:[#allocation3 + $0x2c8] sm:$0xff] }
 0x4a4   :  { %2382 = vmatpush1.bf16.msra.mxu0 %v2119_v30  ;;  %2554 = vmatpush1.bf16.msra.mxu1 %v2121_v31  ;;  %v2178_v30 = vld [vmem:[#allocation3 + $0x2d8] sm:$0xff]  ;;  %v2175_v31 = vld [vmem:[#allocation3 + $0x2c0] sm:$0xff] }
 0x4a5   :  { %2383 = vmatprep.subr.bf16.mxu0 %v2124_v41  ;;  %2555 = vmatprep.subr.bf16.mxu1 %v2126_v32  ;;  %v2177_v41 = vld [vmem:[#allocation3 + $0x2d0] sm:$0xff]  ;;  %v2180_v32 = vld [vmem:[#allocation3 + $0x2e8] sm:$0xff] }
 0x4a8   :  { %2384 = vmatpush1.bf16.msra.mxu0 %v2123_v39  ;;  %2556 = vmatpush1.bf16.msra.mxu1 %v2125_v33  ;;  %v2182_v39 = vld [vmem:[#allocation3 + $0x2f8] sm:$0xff]  ;;  %v2179_v33 = vld [vmem:[#allocation3 + $0x2e0] sm:$0xff] }
 0x4a9   :  { %2385 = vmatprep.subr.bf16.mxu0 %v2128_v42  ;;  %2557 = vmatprep.subr.bf16.mxu1 %v2130_v34  ;;  %v2181_v42 = vld [vmem:[#allocation3 + $0x2f0] sm:$0xff]  ;;  %v2184_v34 = vld [vmem:[#allocation3 + $0x308] sm:$0xff] }
 0x4ac   :  { %2386 = vmatpush1.bf16.msra.mxu0 %v2127_v35  ;;  %2558 = vmatpush1.bf16.msra.mxu1 %v2129_v38  ;;  %v2186_v35 = vld [vmem:[#allocation3 + $0x318] sm:$0xff]  ;;  %v2183_v38 = vld [vmem:[#allocation3 + $0x300] sm:$0xff] }
 0x4ad   :  { %2387 = vmatprep.subr.bf16.mxu0 %v2132_v43  ;;  %2559 = vmatprep.subr.bf16.mxu1 %v2134_v45  ;;  %v2185_v43 = vld [vmem:[#allocation3 + $0x310] sm:$0xff]  ;;  %v2188_v45 = vld [vmem:[#allocation3 + $0x328] sm:$0xff] }
 0x4b0   :  { %2388 = vmatpush1.bf16.msra.mxu0 %v2131_v4  ;;  %2560 = vmatpush1.bf16.msra.mxu1 %v2133_v48  ;;  %v2190_v4 = vld [vmem:[#allocation3 + $0x338] sm:$0xff]  ;;  %v2187_v48 = vld [vmem:[#allocation3 + $0x320] sm:$0xff] }
 0x4b1   :  { %2389 = vmatprep.subr.bf16.mxu0 %v2136_v44  ;;  %2561 = vmatprep.subr.bf16.mxu1 %v2138_v54  ;;  %v2189_v44 = vld [vmem:[#allocation3 + $0x330] sm:$0xff]  ;;  %v2192_v54 = vld [vmem:[#allocation3 + $0x348] sm:$0xff] }
 0x4b4   :  { %2390 = vmatpush1.bf16.msra.mxu0 %v2135_v49  ;;  %2562 = vmatpush1.bf16.msra.mxu1 %v2137_v14  ;;  %v2194_v49 = vld [vmem:[#allocation3 + $0x358] sm:$0xff]  ;;  %v2191_v14 = vld [vmem:[#allocation3 + $0x340] sm:$0xff] }
 0x4b5   :  { %2391 = vmatprep.subr.bf16.mxu0 %v2140_v50  ;;  %2563 = vmatprep.subr.bf16.mxu1 %v2142_v55  ;;  %v2193_v50 = vld [vmem:[#allocation3 + $0x350] sm:$0xff]  ;;  %v2196_v55 = vld [vmem:[#allocation3 + $0x368] sm:$0xff] }
 0x4b8   :  { %2392 = vmatpush1.bf16.msra.mxu0 %v2139_v56  ;;  %2564 = vmatpush1.bf16.msra.mxu1 %v2141_v57  ;;  %v2198_v56 = vld [vmem:[#allocation3 + $0x378] sm:$0xff]  ;;  %v2195_v57 = vld [vmem:[#allocation3 + $0x360] sm:$0xff] }
 0x4b9   :  { %2393 = vmatprep.subr.bf16.mxu0 %v2144_v58  ;;  %2565 = vmatprep.subr.bf16.mxu1 %v2146_v59  ;;  %v2197_v58 = vld [vmem:[#allocation3 + $0x370] sm:$0xff]  ;;  %v2200_v59 = vld [vmem:[#allocation3 + $0x388] sm:$0xff] }
 0x4bc   :  { %2394 = vmatpush1.bf16.msra.mxu0 %v2143_v60  ;;  %2566 = vmatpush1.bf16.msra.mxu1 %v2145_v61  ;;  %v2202_v60 = vld [vmem:[#allocation3 + $0x398] sm:$0xff]  ;;  %v2199_v61 = vld [vmem:[#allocation3 + $0x380] sm:$0xff] }
 0x4bd   :  { %2395 = vmatprep.subr.bf16.mxu0 %v2148_v62  ;;  %2567 = vmatprep.subr.bf16.mxu1 %v2150_v63  ;;  %v2201_v62 = vld [vmem:[#allocation3 + $0x390] sm:$0xff]  ;;  %v2204_v63 = vld [vmem:[#allocation3 + $0x3a8] sm:$0xff] }
 0x4c0   :  { %2396 = vmatpush1.bf16.msra.mxu0 %v2147_v1  ;;  %2568 = vmatpush1.bf16.msra.mxu1 %v2149_v46  ;;  %v2206_v1 = vld [vmem:[#allocation3 + $0x3b8] sm:$0xff]  ;;  %v2203_v46 = vld [vmem:[#allocation3 + $0x3a0] sm:$0xff] }
 0x4c1   :  { %2408 = vmatprep.subr.bf16.mxu0 %v2152_v0  ;;  %2580 = vmatprep.subr.bf16.mxu1 %v2154_v2  ;;  %v2205_v0 = vld [vmem:[#allocation3 + $0x3b0] sm:$0xff]  ;;  %v2208_v2 = vld [vmem:[#allocation3 + $0x3c8] sm:$0xff] }
 0x4c3   :  { %2398 = vmatmul.mubr.bf16.vlgmr.msra.gmra.mrb[16].mxu0 %v3787_v36  ;;  %2570 = vmatmul.mubr.bf16.vlgmr.msra.gmra.mrb[16].mxu1 %v3787_v36  ;;  %v2166_v36 = vld [vmem:[#allocation3 + $0x278] sm:$0xff] }
 0x4c4   :  { %2409 = vmatpush1.bf16.msra.mxu0 %v2151_v3  ;;  %2581 = vmatpush1.bf16.msra.mxu1 %v2153_v10  ;;  %v2210_v3 = vld [vmem:[#allocation3 + $0x3d8] sm:$0xff]  ;;  %v2207_v10 = vld [vmem:[#allocation3 + $0x3c0] sm:$0xff] }
 0x4c5   :  { %2410 = vmatprep.subr.bf16.mxu0 %v2156_v6  ;;  %2582 = vmatprep.subr.bf16.mxu1 %v2158_v11  ;;  %v2209_v6 = vld [vmem:[#allocation3 + $0x3d0] sm:$0xff]  ;;  %v2212_v11 = vld [vmem:[#allocation3 + $0x3e8] sm:$0xff] }
 0x4c6   :  { %2440 = vmatprep.mubr.bf16.mxu0 %v3793_v47  ;;  %2612 = vmatprep.mubr.bf16.mxu1 %v3793_v47  ;;  %v2167_v47 = vld [vmem:[#allocation3 + $0x280] sm:$0xff] }
 0x4c8   :  { %2411 = vmatpush1.bf16.msra.mxu0 %v2155_v12  ;;  %2583 = vmatpush1.bf16.msra.mxu1 %v2157_v13  ;;  %v2214_v12 = vld [vmem:[#allocation3 + $0x3f8] sm:$0xff]  ;;  %v2211_v13 = vld [vmem:[#allocation3 + $0x3e0] sm:$0xff] }
 0x4c9   :  { %2412 = vmatprep.subr.bf16.mxu0 %v2160_v15  ;;  %2584 = vmatprep.subr.bf16.mxu1 %v2162_v19  ;;  %v2213_v15 = vld [vmem:[#allocation3 + $0x3f0] sm:$0xff]  ;;  %v2216_v19 = vld [vmem:[#allocation3 + $0x408] sm:$0xff] }
 0x4cc   :  { %2413 = vmatpush1.bf16.msra.mxu0 %v2159_v20  ;;  %2585 = vmatpush1.bf16.msra.mxu1 %v2161_v37  ;;  %v2218_v20 = vld [vmem:[#allocation3 + $0x418] sm:$0xff]  ;;  %v2215_v37 = vld [vmem:[#allocation3 + $0x400] sm:$0xff] }
 0x4cd   :  { %2414 = vmatprep.subr.bf16.mxu0 %v2164_v21  ;;  %2586 = vmatprep.subr.bf16.mxu1 %v2166_v36  ;;  %v2217_v21 = vld [vmem:[#allocation3 + $0x410] sm:$0xff]  ;;  %v2220_v36 = vld [vmem:[#allocation3 + $0x428] sm:$0xff] }
 0x4d0   :  { %2415 = vmatpush1.bf16.msra.mxu0 %v2163_v22  ;;  %2587 = vmatpush1.bf16.msra.mxu1 %v2165_v23  ;;  %v2222_v22 = vld [vmem:[#allocation3 + $0x438] sm:$0xff]  ;;  %v2219_v23 = vld [vmem:[#allocation3 + $0x420] sm:$0xff] }
 0x4d1   :  { %2416 = vmatprep.subr.bf16.mxu0 %v2168_v24  ;;  %2588 = vmatprep.subr.bf16.mxu1 %v2170_v40  ;;  %v2221_v24 = vld [vmem:[#allocation3 + $0x430] sm:$0xff]  ;;  %v2224_v40 = vld [vmem:[#allocation3 + $0x448] sm:$0xff] }
 0x4d4   :  { %2417 = vmatpush1.bf16.msra.mxu0 %v2167_v47  ;;  %2589 = vmatpush1.bf16.msra.mxu1 %v2169_v25  ;;  %v2226_v47 = vld [vmem:[#allocation3 + $0x458] sm:$0xff]  ;;  %v2223_v25 = vld [vmem:[#allocation3 + $0x440] sm:$0xff] }
 0x4d5   :  { %2418 = vmatprep.subr.bf16.mxu0 %v2172_v26  ;;  %2590 = vmatprep.subr.bf16.mxu1 %v2174_v27  ;;  %v2225_v26 = vld [vmem:[#allocation3 + $0x450] sm:$0xff]  ;;  %v2228_v27 = vld [vmem:[#allocation3 + $0x468] sm:$0xff] }
 0x4d8   :  { %2419 = vmatpush1.bf16.msra.mxu0 %v2171_v28  ;;  %2591 = vmatpush1.bf16.msra.mxu1 %v2173_v16  ;;  %v2227_v28 = vld [vmem:[#allocation3 + $0x460] sm:$0xff]  ;;  %v2229_v16 = vld [vmem:[#allocation3 + $0x470] sm:$0xff] }
 0x4d9   :  { %2420 = vmatprep.subr.bf16.mxu0 %v2176_v29  ;;  %2592 = vmatprep.subr.bf16.mxu1 %v2178_v30  ;;  %v2232_v29 = vld [vmem:[#allocation3 + $0x488] sm:$0xff]  ;;  %v2234_v30 = vld [vmem:[#allocation3 + $0x498] sm:$0xff] }
 0x4dc   :  { %2421 = vmatpush1.bf16.msra.mxu0 %v2175_v31  ;;  %2593 = vmatpush1.bf16.msra.mxu1 %v2177_v41  ;;  %v2233_v31 = vld [vmem:[#allocation3 + $0x490] sm:$0xff]  ;;  %v2236_v41 = vld [vmem:[#allocation3 + $0x4a8] sm:$0xff] }
 0x4dd   :  { %2422 = vmatprep.subr.bf16.mxu0 %v2180_v32  ;;  %2594 = vmatprep.subr.bf16.mxu1 %v2182_v39  ;;  %v2238_v32 = vld [vmem:[#allocation3 + $0x4b8] sm:$0xff]  ;;  %v2235_v39 = vld [vmem:[#allocation3 + $0x4a0] sm:$0xff] }
 0x4e0   :  { %2423 = vmatpush1.bf16.msra.mxu0 %v2179_v33  ;;  %2595 = vmatpush1.bf16.msra.mxu1 %v2181_v42  ;;  %v2237_v33 = vld [vmem:[#allocation3 + $0x4b0] sm:$0xff]  ;;  %v2240_v42 = vld [vmem:[#allocation3 + $0x4c8] sm:$0xff] }
 0x4e1   :  { %2424 = vmatprep.subr.bf16.mxu0 %v2184_v34  ;;  %2596 = vmatprep.subr.bf16.mxu1 %v2186_v35  ;;  %v2242_v34 = vld [vmem:[#allocation3 + $0x4d8] sm:$0xff]  ;;  %v2239_v35 = vld [vmem:[#allocation3 + $0x4c0] sm:$0xff] }
 0x4e4   :  { %2425 = vmatpush1.bf16.msra.mxu0 %v2183_v38  ;;  %2597 = vmatpush1.bf16.msra.mxu1 %v2185_v43  ;;  %v2241_v38 = vld [vmem:[#allocation3 + $0x4d0] sm:$0xff]  ;;  %v2244_v43 = vld [vmem:[#allocation3 + $0x4e8] sm:$0xff] }
 0x4e5   :  { %2426 = vmatprep.subr.bf16.mxu0 %v2188_v45  ;;  %2598 = vmatprep.subr.bf16.mxu1 %v2190_v4  ;;  %v2246_v45 = vld [vmem:[#allocation3 + $0x4f8] sm:$0xff]  ;;  %v2243_v4 = vld [vmem:[#allocation3 + $0x4e0] sm:$0xff] }
 0x4e8   :  { %2427 = vmatpush1.bf16.msra.mxu0 %v2187_v48  ;;  %2599 = vmatpush1.bf16.msra.mxu1 %v2189_v44  ;;  %v2245_v48 = vld [vmem:[#allocation3 + $0x4f0] sm:$0xff]  ;;  %v2248_v44 = vld [vmem:[#allocation3 + $0x508] sm:$0xff] }
 0x4e9   :  { %2428 = vmatprep.subr.bf16.mxu0 %v2192_v54  ;;  %2600 = vmatprep.subr.bf16.mxu1 %v2194_v49  ;;  %v2250_v54 = vld [vmem:[#allocation3 + $0x518] sm:$0xff]  ;;  %v2247_v49 = vld [vmem:[#allocation3 + $0x500] sm:$0xff] }
 0x4ec   :  { %2429 = vmatpush1.bf16.msra.mxu0 %v2191_v14  ;;  %2601 = vmatpush1.bf16.msra.mxu1 %v2193_v50  ;;  %v2249_v14 = vld [vmem:[#allocation3 + $0x510] sm:$0xff]  ;;  %v2252_v50 = vld [vmem:[#allocation3 + $0x528] sm:$0xff] }
 0x4ed   :  { %2430 = vmatprep.subr.bf16.mxu0 %v2196_v55  ;;  %2602 = vmatprep.subr.bf16.mxu1 %v2198_v56  ;;  %v2254_v55 = vld [vmem:[#allocation3 + $0x538] sm:$0xff]  ;;  %v2251_v56 = vld [vmem:[#allocation3 + $0x520] sm:$0xff] }
 0x4f0   :  { %2431 = vmatpush1.bf16.msra.mxu0 %v2195_v57  ;;  %2603 = vmatpush1.bf16.msra.mxu1 %v2197_v58  ;;  %v2253_v57 = vld [vmem:[#allocation3 + $0x530] sm:$0xff]  ;;  %v2256_v58 = vld [vmem:[#allocation3 + $0x548] sm:$0xff] }
 0x4f1   :  { %2432 = vmatprep.subr.bf16.mxu0 %v2200_v59  ;;  %2604 = vmatprep.subr.bf16.mxu1 %v2202_v60  ;;  %v2258_v59 = vld [vmem:[#allocation3 + $0x558] sm:$0xff]  ;;  %v2255_v60 = vld [vmem:[#allocation3 + $0x540] sm:$0xff] }
 0x4f4   :  { %2433 = vmatpush1.bf16.msra.mxu0 %v2199_v61  ;;  %2605 = vmatpush1.bf16.msra.mxu1 %v2201_v62  ;;  %v2257_v61 = vld [vmem:[#allocation3 + $0x550] sm:$0xff]  ;;  %v2260_v62 = vld [vmem:[#allocation3 + $0x568] sm:$0xff] }
 0x4f5   :  { %2434 = vmatprep.subr.bf16.mxu0 %v2204_v63  ;;  %2606 = vmatprep.subr.bf16.mxu1 %v2206_v1  ;;  %v2262_v63 = vld [vmem:[#allocation3 + $0x578] sm:$0xff]  ;;  %v2259_v1 = vld [vmem:[#allocation3 + $0x560] sm:$0xff] }
 0x4f8   :  { %2435 = vmatpush1.bf16.msra.mxu0 %v2203_v46  ;;  %2607 = vmatpush1.bf16.msra.mxu1 %v2205_v0  ;;  %v2261_v46 = vld [vmem:[#allocation3 + $0x570] sm:$0xff]  ;;  %v2264_v0 = vld [vmem:[#allocation3 + $0x588] sm:$0xff] }
 0x4f9   :  { %2436 = vmatprep.subr.bf16.mxu0 %v2208_v2  ;;  %2608 = vmatprep.subr.bf16.mxu1 %v2210_v3  ;;  %v2266_v2 = vld [vmem:[#allocation3 + $0x598] sm:$0xff]  ;;  %v2263_v3 = vld [vmem:[#allocation3 + $0x580] sm:$0xff] }
 0x4fc   :  { %2437 = vmatpush1.bf16.msra.mxu0 %v2207_v10  ;;  %2609 = vmatpush1.bf16.msra.mxu1 %v2209_v6  ;;  %v2265_v10 = vld [vmem:[#allocation3 + $0x590] sm:$0xff]  ;;  %v2268_v6 = vld [vmem:[#allocation3 + $0x5a8] sm:$0xff] }
 0x4fd   :  { %2438 = vmatprep.subr.bf16.mxu0 %v2212_v11  ;;  %2610 = vmatprep.subr.bf16.mxu1 %v2214_v12  ;;  %v2270_v11 = vld [vmem:[#allocation3 + $0x5b8] sm:$0xff]  ;;  %v2267_v12 = vld [vmem:[#allocation3 + $0x5a0] sm:$0xff] }
 0x500   :  { %2439 = vmatpush1.bf16.msra.mxu0 %v2211_v13  ;;  %2611 = vmatpush1.bf16.msra.mxu1 %v2213_v15  ;;  %v2269_v13 = vld [vmem:[#allocation3 + $0x5b0] sm:$0xff]  ;;  %v2272_v15 = vld [vmem:[#allocation3 + $0x5c8] sm:$0xff] }
 0x501   :  { %2451 = vmatprep.subr.bf16.mxu0 %v2216_v19  ;;  %2623 = vmatprep.subr.bf16.mxu1 %v2218_v20  ;;  %v2274_v19 = vld [vmem:[#allocation3 + $0x5d8] sm:$0xff]  ;;  %v2271_v20 = vld [vmem:[#allocation3 + $0x5c0] sm:$0xff] }
 0x503   :  { %2441 = vmatmul.mubr.bf16.vlgmr.msra.gmra.mrb[16].mxu0 %v3789_v17  ;;  %2613 = vmatmul.mubr.bf16.vlgmr.msra.gmra.mrb[16].mxu1 %v3789_v17  ;;  %v2230_v17 = vld [vmem:[#allocation3 + $0x478] sm:$0xff] }
 0x504   :  { %2452 = vmatpush1.bf16.msra.mxu0 %v2215_v37  ;;  %2624 = vmatpush1.bf16.msra.mxu1 %v2217_v21  ;;  %v2273_v37 = vld [vmem:[#allocation3 + $0x5d0] sm:$0xff]  ;;  %v2276_v21 = vld [vmem:[#allocation3 + $0x5e8] sm:$0xff] }
 0x505   :  { %2453 = vmatprep.subr.bf16.mxu0 %v2220_v36  ;;  %2625 = vmatprep.subr.bf16.mxu1 %v2222_v22  ;;  %v2278_v36 = vld [vmem:[#allocation3 + $0x5f8] sm:$0xff]  ;;  %v2275_v22 = vld [vmem:[#allocation3 + $0x5e0] sm:$0xff] }
 0x506   :  { %2483 = vmatprep.mubr.bf16.mxu0 %v3813_v53  ;;  %2655 = vmatprep.mubr.bf16.mxu1 %v3813_v53  ;;  %v2231_v53 = vld [vmem:[#allocation3 + $0x480] sm:$0xff] }
 0x508   :  { %2454 = vmatpush1.bf16.msra.mxu0 %v2219_v23  ;;  %2626 = vmatpush1.bf16.msra.mxu1 %v2221_v24  ;;  %v2277_v23 = vld [vmem:[#allocation3 + $0x5f0] sm:$0xff]  ;;  %v2280_v24 = vld [vmem:[#allocation3 + $0x608] sm:$0xff] }
 0x509   :  { %2455 = vmatprep.subr.bf16.mxu0 %v2224_v40  ;;  %2627 = vmatprep.subr.bf16.mxu1 %v2226_v47  ;;  %v2282_v40 = vld [vmem:[#allocation3 + $0x618] sm:$0xff]  ;;  %v2279_v47 = vld [vmem:[#allocation3 + $0x600] sm:$0xff] }
 0x50c   :  { %2456 = vmatpush1.bf16.msra.mxu0 %v2223_v25  ;;  %2628 = vmatpush1.bf16.msra.mxu1 %v2225_v26  ;;  %v2281_v25 = vld [vmem:[#allocation3 + $0x610] sm:$0xff]  ;;  %v2284_v26 = vld [vmem:[#allocation3 + $0x628] sm:$0xff] }
 0x50d   :  { %2457 = vmatprep.subr.bf16.mxu0 %v2228_v27  ;;  %2629 = vmatprep.subr.bf16.mxu1 %v2230_v17  ;;  %v2286_v27 = vld [vmem:[#allocation3 + $0x638] sm:$0xff]  ;;  %v2283_v17 = vld [vmem:[#allocation3 + $0x620] sm:$0xff] }
 0x510   :  { %2458 = vmatpush1.bf16.msra.mxu0 %v2227_v28  ;;  %2630 = vmatpush1.bf16.msra.mxu1 %v2229_v16  ;;  %v2285_v28 = vld [vmem:[#allocation3 + $0x630] sm:$0xff]  ;;  %v2288_v16 = vld [vmem:[#allocation3 + $0x648] sm:$0xff] }
 0x511   :  { %2459 = vmatprep.subr.bf16.mxu0 %v2232_v29  ;;  %2631 = vmatprep.subr.bf16.mxu1 %v2234_v30  ;;  %v2290_v29 = vld [vmem:[#allocation3 + $0x658] sm:$0xff]  ;;  %v2287_v30 = vld [vmem:[#allocation3 + $0x640] sm:$0xff] }
 0x514   :  { %2460 = vmatpush1.bf16.msra.mxu0 %v2231_v53  ;;  %2632 = vmatpush1.bf16.msra.mxu1 %v2233_v31  ;;  %v2289_v53 = vld [vmem:[#allocation3 + $0x650] sm:$0xff]  ;;  %v2292_v31 = vld [vmem:[#allocation3 + $0x668] sm:$0xff] }
 0x515   :  { %2461 = vmatprep.subr.bf16.mxu0 %v2236_v41  ;;  %2633 = vmatprep.subr.bf16.mxu1 %v2238_v32  ;;  %v2291_v41 = vld [vmem:[#allocation3 + $0x660] sm:$0xff]  ;;  %v2293_v32 = vld [vmem:[#allocation3 + $0x670] sm:$0xff] }
 0x518   :  { %2462 = vmatpush1.bf16.msra.mxu0 %v2235_v39  ;;  %2634 = vmatpush1.bf16.msra.mxu1 %v2237_v33  ;;  %v2296_v39 = vld [vmem:[#allocation3 + $0x688] sm:$0xff]  ;;  %v2298_v33 = vld [vmem:[#allocation3 + $0x698] sm:$0xff] }
 0x519   :  { %2463 = vmatprep.subr.bf16.mxu0 %v2240_v42  ;;  %2635 = vmatprep.subr.bf16.mxu1 %v2242_v34  ;;  %v2297_v42 = vld [vmem:[#allocation3 + $0x690] sm:$0xff]  ;;  %v2300_v34 = vld [vmem:[#allocation3 + $0x6a8] sm:$0xff] }
 0x51c   :  { %2464 = vmatpush1.bf16.msra.mxu0 %v2239_v35  ;;  %2636 = vmatpush1.bf16.msra.mxu1 %v2241_v38  ;;  %v2302_v35 = vld [vmem:[#allocation3 + $0x6b8] sm:$0xff]  ;;  %v2299_v38 = vld [vmem:[#allocation3 + $0x6a0] sm:$0xff] }
 0x51d   :  { %2465 = vmatprep.subr.bf16.mxu0 %v2244_v43  ;;  %2637 = vmatprep.subr.bf16.mxu1 %v2246_v45  ;;  %v2301_v43 = vld [vmem:[#allocation3 + $0x6b0] sm:$0xff]  ;;  %v2304_v45 = vld [vmem:[#allocation3 + $0x6c8] sm:$0xff] }
 0x520   :  { %2466 = vmatpush1.bf16.msra.mxu0 %v2243_v4  ;;  %2638 = vmatpush1.bf16.msra.mxu1 %v2245_v48  ;;  %v2306_v4 = vld [vmem:[#allocation3 + $0x6d8] sm:$0xff]  ;;  %v2303_v48 = vld [vmem:[#allocation3 + $0x6c0] sm:$0xff] }
 0x521   :  { %2467 = vmatprep.subr.bf16.mxu0 %v2248_v44  ;;  %2639 = vmatprep.subr.bf16.mxu1 %v2250_v54  ;;  %v2305_v44 = vld [vmem:[#allocation3 + $0x6d0] sm:$0xff]  ;;  %v2308_v54 = vld [vmem:[#allocation3 + $0x6e8] sm:$0xff] }
 0x524   :  { %2468 = vmatpush1.bf16.msra.mxu0 %v2247_v49  ;;  %2640 = vmatpush1.bf16.msra.mxu1 %v2249_v14  ;;  %v2310_v49 = vld [vmem:[#allocation3 + $0x6f8] sm:$0xff]  ;;  %v2307_v14 = vld [vmem:[#allocation3 + $0x6e0] sm:$0xff] }
 0x525   :  { %2469 = vmatprep.subr.bf16.mxu0 %v2252_v50  ;;  %2641 = vmatprep.subr.bf16.mxu1 %v2254_v55  ;;  %v2309_v50 = vld [vmem:[#allocation3 + $0x6f0] sm:$0xff]  ;;  %v2312_v55 = vld [vmem:[#allocation3 + $0x708] sm:$0xff] }
 0x528   :  { %2470 = vmatpush1.bf16.msra.mxu0 %v2251_v56  ;;  %2642 = vmatpush1.bf16.msra.mxu1 %v2253_v57  ;;  %v2314_v56 = vld [vmem:[#allocation3 + $0x718] sm:$0xff]  ;;  %v2311_v57 = vld [vmem:[#allocation3 + $0x700] sm:$0xff] }
 0x529   :  { %2471 = vmatprep.subr.bf16.mxu0 %v2256_v58  ;;  %2643 = vmatprep.subr.bf16.mxu1 %v2258_v59  ;;  %v2313_v58 = vld [vmem:[#allocation3 + $0x710] sm:$0xff]  ;;  %v2316_v59 = vld [vmem:[#allocation3 + $0x728] sm:$0xff] }
 0x52c   :  { %2472 = vmatpush1.bf16.msra.mxu0 %v2255_v60  ;;  %2644 = vmatpush1.bf16.msra.mxu1 %v2257_v61  ;;  %v2318_v60 = vld [vmem:[#allocation3 + $0x738] sm:$0xff]  ;;  %v2315_v61 = vld [vmem:[#allocation3 + $0x720] sm:$0xff] }
 0x52d   :  { %2473 = vmatprep.subr.bf16.mxu0 %v2260_v62  ;;  %2645 = vmatprep.subr.bf16.mxu1 %v2262_v63  ;;  %v2317_v62 = vld [vmem:[#allocation3 + $0x730] sm:$0xff]  ;;  %v2320_v63 = vld [vmem:[#allocation3 + $0x748] sm:$0xff] }
 0x530   :  { %2474 = vmatpush1.bf16.msra.mxu0 %v2259_v1  ;;  %2646 = vmatpush1.bf16.msra.mxu1 %v2261_v46  ;;  %v2322_v1 = vld [vmem:[#allocation3 + $0x758] sm:$0xff]  ;;  %v2319_v46 = vld [vmem:[#allocation3 + $0x740] sm:$0xff] }
 0x531   :  { %2475 = vmatprep.subr.bf16.mxu0 %v2264_v0  ;;  %2647 = vmatprep.subr.bf16.mxu1 %v2266_v2  ;;  %v2321_v0 = vld [vmem:[#allocation3 + $0x750] sm:$0xff]  ;;  %v2324_v2 = vld [vmem:[#allocation3 + $0x768] sm:$0xff] }
 0x534   :  { %2476 = vmatpush1.bf16.msra.mxu0 %v2263_v3  ;;  %2648 = vmatpush1.bf16.msra.mxu1 %v2265_v10  ;;  %v2326_v3 = vld [vmem:[#allocation3 + $0x778] sm:$0xff]  ;;  %v2323_v10 = vld [vmem:[#allocation3 + $0x760] sm:$0xff] }
 0x535   :  { %2477 = vmatprep.subr.bf16.mxu0 %v2268_v6  ;;  %2649 = vmatprep.subr.bf16.mxu1 %v2270_v11  ;;  %v2325_v6 = vld [vmem:[#allocation3 + $0x770] sm:$0xff]  ;;  %v2328_v11 = vld [vmem:[#allocation3 + $0x788] sm:$0xff] }
 0x538   :  { %2478 = vmatpush1.bf16.msra.mxu0 %v2267_v12  ;;  %2650 = vmatpush1.bf16.msra.mxu1 %v2269_v13  ;;  %v2330_v12 = vld [vmem:[#allocation3 + $0x798] sm:$0xff]  ;;  %v2327_v13 = vld [vmem:[#allocation3 + $0x780] sm:$0xff] }
 0x539   :  { %2479 = vmatprep.subr.bf16.mxu0 %v2272_v15  ;;  %2651 = vmatprep.subr.bf16.mxu1 %v2274_v19  ;;  %v2329_v15 = vld [vmem:[#allocation3 + $0x790] sm:$0xff]  ;;  %v2332_v19 = vld [vmem:[#allocation3 + $0x7a8] sm:$0xff] }
 0x53c   :  { %2480 = vmatpush1.bf16.msra.mxu0 %v2271_v20  ;;  %2652 = vmatpush1.bf16.msra.mxu1 %v2273_v37  ;;  %v2334_v20 = vld [vmem:[#allocation3 + $0x7b8] sm:$0xff]  ;;  %v2331_v37 = vld [vmem:[#allocation3 + $0x7a0] sm:$0xff] }
 0x53d   :  { %2481 = vmatprep.subr.bf16.mxu0 %v2276_v21  ;;  %2653 = vmatprep.subr.bf16.mxu1 %v2278_v36  ;;  %v2333_v21 = vld [vmem:[#allocation3 + $0x7b0] sm:$0xff]  ;;  %v2336_v36 = vld [vmem:[#allocation3 + $0x7c8] sm:$0xff] }
 0x540   :  { %2482 = vmatpush1.bf16.msra.mxu0 %v2275_v22  ;;  %2654 = vmatpush1.bf16.msra.mxu1 %v2277_v23  ;;  %v2338_v22 = vld [vmem:[#allocation3 + $0x7d8] sm:$0xff]  ;;  %v2335_v23 = vld [vmem:[#allocation3 + $0x7c0] sm:$0xff] }
 0x541   :  { %2494 = vmatprep.subr.bf16.mxu0 %v2280_v24  ;;  %2666 = vmatprep.subr.bf16.mxu1 %v2282_v40  ;;  %v2337_v24 = vld [vmem:[#allocation3 + $0x7d0] sm:$0xff]  ;;  %v2340_v40 = vld [vmem:[#allocation3 + $0x7e8] sm:$0xff] }
 0x543   :  { %2484 = vmatmul.mubr.bf16.vlgmr.msra.gmra.mrb[16].mxu0 %v3809_v51  ;;  %2656 = vmatmul.mubr.bf16.vlgmr.msra.gmra.mrb[16].mxu1 %v3809_v51  ;;  %v2294_v51 = vld [vmem:[#allocation3 + $0x678] sm:$0xff] }
 0x544   :  { %2495 = vmatpush1.bf16.msra.mxu0 %v2279_v47  ;;  %2667 = vmatpush1.bf16.msra.mxu1 %v2281_v25  ;;  %v2342_v47 = vld [vmem:[#allocation3 + $0x7f8] sm:$0xff]  ;;  %v2339_v25 = vld [vmem:[#allocation3 + $0x7e0] sm:$0xff] }
 0x545   :  { %2496 = vmatprep.subr.bf16.mxu0 %v2284_v26  ;;  %2668 = vmatprep.subr.bf16.mxu1 %v2286_v27  ;;  %v2341_v26 = vld [vmem:[#allocation3 + $0x7f0] sm:$0xff]  ;;  %v2343_v27 = vld [vmem:[#allocation14] sm:$0xf] }
 0x546   :  { %2526 = vmatprep.mubr.bf16.mxu0 %v3815_v18  ;;  %2698 = vmatprep.mubr.bf16.mxu1 %v3815_v18  ;;  %v2295_v18 = vld [vmem:[#allocation3 + $0x680] sm:$0xff] }
 0x548   :  { %2497 = vmatpush1.bf16.msra.mxu0 %v2283_v17  ;;  %2669 = vmatpush1.bf16.msra.mxu1 %v2285_v28  ;;  %v2348_v17 = vrot.slane %v2343_v27, %v3704_v5  ;;  %v2356_v28 = vrot.slane %v2343_v27, %v3707_v7 }
 0x549   :  { %2498 = vmatprep.subr.bf16.mxu0 %v2288_v16  ;;  %2670 = vmatprep.subr.bf16.mxu1 %v2290_v29  ;;  %v2352_v16 = vrot.slane %v2343_v27, %v3710_v8  ;;  %v2360_v29 = vrot.slane %v2343_v27, %v3713_v9 }
 0x54c   :  { %2499 = vmatpush1.bf16.msra.mxu0 %v2287_v30  ;;  %2671 = vmatpush1.bf16.msra.mxu1 %v2289_v53 }
 0x54d   :  { %2500 = vmatprep.subr.bf16.mxu0 %v2292_v31  ;;  %2672 = vmatprep.subr.bf16.mxu1 %v2294_v51 }
 0x550   :  { %2501 = vmatpush1.bf16.msra.mxu0 %v2291_v41  ;;  %2673 = vmatpush1.bf16.msra.mxu1 %v2293_v32 }
 0x551   :  { %2502 = vmatprep.subr.bf16.mxu0 %v2296_v39  ;;  %2674 = vmatprep.subr.bf16.mxu1 %v2298_v33 }
 0x554   :  { %2503 = vmatpush1.bf16.msra.mxu0 %v2295_v18  ;;  %2675 = vmatpush1.bf16.msra.mxu1 %v2297_v42 }
 0x555   :  { %2504 = vmatprep.subr.bf16.mxu0 %v2300_v34  ;;  %2676 = vmatprep.subr.bf16.mxu1 %v2302_v35 }
 0x558   :  { %2505 = vmatpush1.bf16.msra.mxu0 %v2299_v38  ;;  %2677 = vmatpush1.bf16.msra.mxu1 %v2301_v43 }
 0x559   :  { %2506 = vmatprep.subr.bf16.mxu0 %v2304_v45  ;;  %2678 = vmatprep.subr.bf16.mxu1 %v2306_v4 }
 0x55c   :  { %2507 = vmatpush1.bf16.msra.mxu0 %v2303_v48  ;;  %2679 = vmatpush1.bf16.msra.mxu1 %v2305_v44 }
 0x55d   :  { %2508 = vmatprep.subr.bf16.mxu0 %v2308_v54  ;;  %2680 = vmatprep.subr.bf16.mxu1 %v2310_v49 }
 0x560   :  { %2509 = vmatpush1.bf16.msra.mxu0 %v2307_v14  ;;  %2681 = vmatpush1.bf16.msra.mxu1 %v2309_v50 }
 0x561   :  { %2510 = vmatprep.subr.bf16.mxu0 %v2312_v55  ;;  %2682 = vmatprep.subr.bf16.mxu1 %v2314_v56 }
 0x564   :  { %2511 = vmatpush1.bf16.msra.mxu0 %v2311_v57  ;;  %2683 = vmatpush1.bf16.msra.mxu1 %v2313_v58 }
 0x565   :  { %2512 = vmatprep.subr.bf16.mxu0 %v2316_v59  ;;  %2684 = vmatprep.subr.bf16.mxu1 %v2318_v60 }
 0x568   :  { %2513 = vmatpush1.bf16.msra.mxu0 %v2315_v61  ;;  %2685 = vmatpush1.bf16.msra.mxu1 %v2317_v62 }
 0x569   :  { %2514 = vmatprep.subr.bf16.mxu0 %v2320_v63  ;;  %2686 = vmatprep.subr.bf16.mxu1 %v2322_v1 }
 0x56c   :  { %2515 = vmatpush1.bf16.msra.mxu0 %v2319_v46  ;;  %2687 = vmatpush1.bf16.msra.mxu1 %v2321_v0 }
 0x56d   :  { %2516 = vmatprep.subr.bf16.mxu0 %v2324_v2  ;;  %2688 = vmatprep.subr.bf16.mxu1 %v2326_v3 }
 0x570   :  { %2517 = vmatpush1.bf16.msra.mxu0 %v2323_v10  ;;  %2689 = vmatpush1.bf16.msra.mxu1 %v2325_v6 }
 0x571   :  { %2518 = vmatprep.subr.bf16.mxu0 %v2328_v11  ;;  %2690 = vmatprep.subr.bf16.mxu1 %v2330_v12 }
 0x574   :  { %2519 = vmatpush1.bf16.msra.mxu0 %v2327_v13  ;;  %2691 = vmatpush1.bf16.msra.mxu1 %v2329_v15 }
 0x575   :  { %2520 = vmatprep.subr.bf16.mxu0 %v2332_v19  ;;  %2692 = vmatprep.subr.bf16.mxu1 %v2334_v20 }
 0x578   :  { %2521 = vmatpush1.bf16.msra.mxu0 %v2331_v37  ;;  %2693 = vmatpush1.bf16.msra.mxu1 %v2333_v21 }
 0x579   :  { %2522 = vmatprep.subr.bf16.mxu0 %v2336_v36  ;;  %2694 = vmatprep.subr.bf16.mxu1 %v2338_v22 }
 0x57c   :  { %2523 = vmatpush1.bf16.msra.mxu0 %v2335_v23  ;;  %2695 = vmatpush1.bf16.msra.mxu1 %v2337_v24 }
 0x57d   :  { %2524 = vmatprep.subr.bf16.mxu0 %v2340_v40  ;;  %2696 = vmatprep.subr.bf16.mxu1 %v2342_v47 }
 0x580   :  { %2525 = vmatpush1.bf16.msra.mxu0 %v2339_v25  ;;  %2697 = vmatpush1.bf16.msra.mxu1 %v2341_v26 }
 0x583   :  { %2527 = vmatmul.mubr.bf16.vlgmr.msra.gmra.mrb[16].mxu0 %v3811_v52  ;;  %2699 = vmatmul.mubr.bf16.vlgmr.msra.gmra.mrb[16].mxu1 %v3811_v52 }
 0x656   :  { %v2528_v30 = vpop.f32.mrb[16].mxu0  ;;  %v2700_v53 = vpop.f32.mrb[16].mxu1 }
 0x657   :  { %v3837_v31 = vadd.f32 %v2528_v30, %v2348_v17  ;;  %v3839_v51 = vadd.f32 %v2700_v53, %v2356_v28  ;;  %v2530_v41 = vpop.f32.mrb[17].mxu0  ;;  %v2702_v32 = vpop.f32.mrb[17].mxu1 }
 0x658   :  { %v3213_v39 = vadd.f32 %v2530_v41, %v2352_v16  ;;  %v3217_v33 = vadd.f32 %v2702_v32, %v2360_v29  ;;  %v2532_v52 = vpop.f32.mrb[18].mxu0  ;;  %v2704_v18 = vpop.f32.mrb[18].mxu1 }
 0x659   :  { %v2709_v5 = vmax.f32 %v3837_v31, 0.0  ;;  %v2711_v7 = vmax.f32 %v3839_v51, 0.0  ;;  %v3843_v42 = vadd.f32 %v2532_v52, %v2348_v17  ;;  %v3845_v8 = vadd.f32 %v2704_v18, %v2356_v28  ;;  %v2534_v9 = vpop.f32.mrb[19].mxu0  ;;  %v2706_v34 = vpop.f32.mrb[19].mxu1 }
 0x65a   :  { %v2710_v35 = vmax.f32 %v3213_v39, 0.0  ;;  %v2712_v38 = vmax.f32 %v3217_v33, 0.0  ;;  %v3847_v43 = vadd.f32 %v2534_v9, %v2352_v16  ;;  %v3849_v45 = vadd.f32 %v2706_v34, %v2360_v29 }
 0x65b   :  { %v2713_v4 = vmax.f32 %v3843_v42, 0.0  ;;  %v2715_v48 = vmax.f32 %v3845_v8, 0.0 }
 0x65c   :  { %v2714_v44 = vmax.f32 %v3847_v43, 0.0  ;;  %v2716_v54 = vmax.f32 %v3849_v45, 0.0 }
 0x65d   :  { %3505 = dma.done.wait [#allocation5 + $0x2], 8192 }
 0x65e   :  { %3506 = vsyncadd [#allocation5 + $0x2], 4294959104  ;;  %2855 = vmatprep.mubr.f32.mxu0 %v2710_v35  ;;  %2930 = vmatprep.mubr.f32.mxu1 %v2712_v38  ;;  %v2736_v49 = vld [vmem:[#allocation4 + $0x80] sm:$0xff]  ;;  %v2737_v14 = vld [vmem:[#allocation4 + $0x88] sm:$0xff]  ;;  %s3532_s8 = smov [#allocation17]  }
 0x65f   :  { %v2720_v50 = vld [vmem:[#allocation4] sm:$0xff]  ;;  %v3132_v55 = vpack.c.bf16 %v2737_v14, %v2736_v49  ;;  %v2721_v56 = vld [vmem:[#allocation4 + $0x8] sm:$0xff]  ;;  %v2738_v63 = vld [vmem:[#allocation4 + $0x90] sm:$0xff]  ;;  %s2948_s22 = sshll.u32 %s3532_s8, 4  ;;  %s2949_s22 = int_to_ptr.vmem [resolvable:$true] %s2948_s22 }
 0x660   :  { %v2768_v57 = vld [vmem:[#allocation4 + $0x180] sm:$0xff]  ;;  %v2769_v58 = vld [vmem:[#allocation4 + $0x188] sm:$0xff]  ;;  %v3134_v59 = vpack.c.bf16 %v2721_v56, %v2720_v50  ;;  %v2739_v46 = vld [vmem:[#allocation4 + $0x98] sm:$0xff]  ;;  %s3471_s23 = scalar_lea.vmem %s2949_s22, 256  ;;  %p3476_p1 = scmp.lt.s32.totalorder %s2949_s22, %s2949_s22 }
 0x661   :  { %v3164_v60 = vpack.c.bf16 %v2769_v58, %v2768_v57  ;;  %v2752_v61 = vld [vmem:[#allocation4 + $0x100] sm:$0xff]  ;;  %v2753_v62 = vld [vmem:[#allocation4 + $0x108] sm:$0xff]  ;;  %3133 = vmatprep.subr.bf16.mxu0 %v3132_v55  ;;  %v2722_v0 = vld [vmem:[#allocation4 + $0x10] sm:$0xff]  ;;  %v3136_v3 = vpack.c.bf16 %v2739_v46, %v2738_v63  ;;  %p3472_p0 = scmp.ne.s32.totalorder %s2949_s22, %s3471_s23  ;;  %p3477_p2 = scmp.lt.s32.totalorder %s3471_s23, %s3471_s23 }
 0x662   :  { %v3166_v1 = vpack.c.bf16 %v2753_v62, %v2752_v61  ;;  %v2723_v2 = vld [vmem:[#allocation4 + $0x18] sm:$0xff]  ;;  %3135 = vmatpush3.bf16.msra.mxu0 %v3134_v59  ;;  %v2770_v6 = vld [vmem:[#allocation4 + $0x190] sm:$0xff]  ;;  %v2740_v19 = vld [vmem:[#allocation4 + $0xa0] sm:$0xff] }
 0x663   :  { %3165 = vmatprep.subr.bf16.mxu1 %v3164_v60  ;;  %v3138_v10 = vpack.c.bf16 %v2723_v2, %v2722_v0  ;;  %v2771_v11 = vld [vmem:[#allocation4 + $0x198] sm:$0xff]  ;;  %v2754_v12 = vld [vmem:[#allocation4 + $0x110] sm:$0xff]  ;;  %v2741_v20 = vld [vmem:[#allocation4 + $0xa8] sm:$0xff]  ;;  %3137 = vmatprep.subr.bf16.mxu0 %v3136_v3  ;;  %p3478_p3 = por %p3477_p2, %p3476_p1 }
 0x664   :  { %3167 = vmatpush3.bf16.msra.mxu1 %v3166_v1  ;;  %v3168_v13 = vpack.c.bf16 %v2771_v11, %v2770_v6  ;;  %v2755_v15 = vld [vmem:[#allocation4 + $0x118] sm:$0xff]  ;;  %v3140_v21 = vpack.c.bf16 %v2741_v20, %v2740_v19  ;;  %v2724_v36 = vld [vmem:[#allocation4 + $0x20] sm:$0xff]  ;;  %v2725_v22 = vld [vmem:[#allocation4 + $0x28] sm:$0xff] }
 0x665   :  { %v3170_v37 = vpack.c.bf16 %v2755_v15, %v2754_v12  ;;  %v2772_v23 = vld [vmem:[#allocation4 + $0x1a0] sm:$0xff]  ;;  %v2773_v24 = vld [vmem:[#allocation4 + $0x1a8] sm:$0xff]  ;;  %v3142_v25 = vpack.c.bf16 %v2725_v22, %v2724_v36  ;;  %v2742_v27 = vld [vmem:[#allocation4 + $0xb0] sm:$0xff]  ;;  %p3479_p4 = pnand %p3478_p3, %p3472_p0 }
 0x666   :  { %3169 = vmatprep.subr.bf16.mxu1 %v3168_v13  ;;  %v2756_v40 = vld [vmem:[#allocation4 + $0x120] sm:$0xff]  ;;  %v2757_v47 = vld [vmem:[#allocation4 + $0x128] sm:$0xff]  ;;  %3139 = vmatpush3.bf16.msra.mxu0 %v3138_v10  ;;  %v3172_v26 = vpack.c.bf16 %v2773_v24, %v2772_v23  ;;  %v2743_v17 = vld [vmem:[#allocation4 + $0xb8] sm:$0xff] }
 0x667   :  { %v2726_v28 = vld [vmem:[#allocation4 + $0x30] sm:$0xff]  ;;  %3141 = vmatprep.subr.bf16.mxu0 %v3140_v21  ;;  %v3174_v16 = vpack.c.bf16 %v2757_v47, %v2756_v40  ;;  %v3144_v29 = vpack.c.bf16 %v2743_v17, %v2742_v27  ;;  %v2727_v30 = vld [vmem:[#allocation4 + $0x38] sm:$0xff]  ;;  %v2744_v52 = vld [vmem:[#allocation4 + $0xc0] sm:$0xff] }
 0x668   :  { %3171 = vmatpush3.bf16.msra.mxu1 %v3170_v37  ;;  %v2774_v53 = vld [vmem:[#allocation4 + $0x1b0] sm:$0xff]  ;;  %v2775_v41 = vld [vmem:[#allocation4 + $0x1b8] sm:$0xff]  ;;  %v2745_v18 = vld [vmem:[#allocation4 + $0xc8] sm:$0xff]  ;;  %v3146_v9 = vpack.c.bf16 %v2727_v30, %v2726_v28 }
 0x669   :  { %3173 = vmatprep.subr.bf16.mxu1 %v3172_v26  ;;  %v3176_v32 = vpack.c.bf16 %v2775_v41, %v2774_v53  ;;  %v2758_v39 = vld [vmem:[#allocation4 + $0x130] sm:$0xff]  ;;  %v2759_v33 = vld [vmem:[#allocation4 + $0x138] sm:$0xff]  ;;  %v2776_v34 = vld [vmem:[#allocation4 + $0x1c0] sm:$0xff]  ;;  %v3148_v49 = vpack.c.bf16 %v2745_v18, %v2744_v52 }
 0x66a   :  { %3143 = vmatpush3.bf16.msra.mxu0 %v3142_v25  ;;  %v2777_v35 = vld [vmem:[#allocation4 + $0x1c8] sm:$0xff]  ;;  %v3178_v38 = vpack.c.bf16 %v2759_v33, %v2758_v39  ;;  %v2728_v14 = vld [vmem:[#allocation4 + $0x40] sm:$0xff]  ;;  %v2746_v58 = vld [vmem:[#allocation4 + $0xd0] sm:$0xff] }
 0x66b   :  { %3145 = vmatprep.subr.bf16.mxu0 %v3144_v29  ;;  %v2729_v50 = vld [vmem:[#allocation4 + $0x48] sm:$0xff]  ;;  %v2760_v55 = vld [vmem:[#allocation4 + $0x140] sm:$0xff]  ;;  %v3180_v56 = vpack.c.bf16 %v2777_v35, %v2776_v34  ;;  %v2747_v59 = vld [vmem:[#allocation4 + $0xd8] sm:$0xff] }
 0x66c   :  { %3175 = vmatpush3.bf16.msra.mxu1 %v3174_v16  ;;  %v2761_v57 = vld [vmem:[#allocation4 + $0x148] sm:$0xff]  ;;  %v2778_v60 = vld [vmem:[#allocation4 + $0x1d0] sm:$0xff]  ;;  %v2779_v61 = vld [vmem:[#allocation4 + $0x1d8] sm:$0xff]  ;;  %v3150_v62 = vpack.c.bf16 %v2729_v50, %v2728_v14  ;;  %v3152_v1 = vpack.c.bf16 %v2747_v59, %v2746_v58 }
 0x66d   :  { %3177 = vmatprep.subr.bf16.mxu1 %v3176_v32  ;;  %v3182_v63 = vpack.c.bf16 %v2761_v57, %v2760_v55  ;;  %v2730_v46 = vld [vmem:[#allocation4 + $0x50] sm:$0xff]  ;;  %v2731_v0 = vld [vmem:[#allocation4 + $0x58] sm:$0xff]  ;;  %v3184_v3 = vpack.c.bf16 %v2779_v61, %v2778_v60  ;;  %v2748_v6 = vld [vmem:[#allocation4 + $0xe0] sm:$0xff] }
 0x66e   :  { %3147 = vmatpush3.bf16.msra.mxu0 %v3146_v9  ;;  %v2762_v2 = vld [vmem:[#allocation4 + $0x150] sm:$0xff]  ;;  %v2763_v10 = vld [vmem:[#allocation4 + $0x158] sm:$0xff]  ;;  %v2749_v11 = vld [vmem:[#allocation4 + $0xe8] sm:$0xff]  ;;  %v3154_v15 = vpack.c.bf16 %v2731_v0, %v2730_v46 }
 0x66f   :  { %3149 = vmatprep.subr.bf16.mxu0 %v3148_v49  ;;  %v2780_v12 = vld [vmem:[#allocation4 + $0x1e0] sm:$0xff]  ;;  %v2781_v13 = vld [vmem:[#allocation4 + $0x1e8] sm:$0xff]  ;;  %v3186_v19 = vpack.c.bf16 %v2763_v10, %v2762_v2  ;;  %v3156_v20 = vpack.c.bf16 %v2749_v11, %v2748_v6  ;;  %v2750_v24 = vld [vmem:[#allocation4 + $0xf0] sm:$0xff] }
 0x670   :  { %3179 = vmatpush3.bf16.msra.mxu1 %v3178_v38  ;;  %v2732_v37 = vld [vmem:[#allocation4 + $0x60] sm:$0xff]  ;;  %v2733_v21 = vld [vmem:[#allocation4 + $0x68] sm:$0xff]  ;;  %v3188_v22 = vpack.c.bf16 %v2781_v13, %v2780_v12  ;;  %v2751_v40 = vld [vmem:[#allocation4 + $0xf8] sm:$0xff] }
 0x671   :  { %3181 = vmatprep.subr.bf16.mxu1 %v3180_v56  ;;  %v2764_v36 = vld [vmem:[#allocation4 + $0x160] sm:$0xff]  ;;  %v2765_v23 = vld [vmem:[#allocation4 + $0x168] sm:$0xff]  ;;  %v2782_v47 = vld [vmem:[#allocation4 + $0x1f0] sm:$0xff]  ;;  %v3158_v26 = vpack.c.bf16 %v2733_v21, %v2732_v37  ;;  %v3160_v17 = vpack.c.bf16 %v2751_v40, %v2750_v24 }
 0x672   :  { %3151 = vmatpush3.bf16.msra.mxu0 %v3150_v62  ;;  %v2783_v25 = vld [vmem:[#allocation4 + $0x1f8] sm:$0xff]  ;;  %v3190_v27 = vpack.c.bf16 %v2765_v23, %v2764_v36  ;;  %v2734_v28 = vld [vmem:[#allocation4 + $0x70] sm:$0xff] }
 0x673   :  { %3153 = vmatprep.subr.bf16.mxu0 %v3152_v1  ;;  %v2735_v16 = vld [vmem:[#allocation4 + $0x78] sm:$0xff]  ;;  %v3192_v29 = vpack.c.bf16 %v2783_v25, %v2782_v47  ;;  %v2766_v30 = vld [vmem:[#allocation4 + $0x170] sm:$0xff] }
 0x674   :  { %3183 = vmatpush3.bf16.msra.mxu1 %v3182_v63  ;;  %v2767_v53 = vld [vmem:[#allocation4 + $0x178] sm:$0xff]  ;;  %v3162_v41 = vpack.c.bf16 %v2735_v16, %v2734_v28 }
 0x675   :  { %3185 = vmatprep.subr.bf16.mxu1 %v3184_v3  ;;  %v3194_v32 = vpack.c.bf16 %v2767_v53, %v2766_v30  ;;  %v3052_v33 = vld [vmem:[#allocation15] ss:$0 sm:$0xff] }
 0x676   :  { %3155 = vmatpush3.bf16.msra.mxu0 %v3154_v15 }
 0x677   :  { %3157 = vmatprep.subr.bf16.mxu0 %v3156_v20 }
 0x678   :  { %3187 = vmatpush3.bf16.msra.mxu1 %v3186_v19 }
 0x679   :  { %3189 = vmatprep.subr.bf16.mxu1 %v3188_v22 }
 0x67a   :  { %3159 = vmatpush3.bf16.msra.mxu0 %v3158_v26 }
 0x67b   :  { %3161 = vmatprep.subr.bf16.mxu0 %v3160_v17 }
 0x67c   :  { %3191 = vmatpush3.bf16.msra.mxu1 %v3190_v27 }
 0x67d   :  { %3193 = vmatprep.subr.bf16.mxu1 %v3192_v29 }
 0x67e   :  { %3163 = vmatpush3.bf16.msra.mxu0 %v3162_v41 }
 0x680   :  { %3195 = vmatpush3.bf16.msra.mxu1 %v3194_v32 }
 0x681   :  { %2856 = vmatmul.mubr.f32.vlgmr.msra.gmra.mrb[20].mxu0 %v2709_v5 }
 0x682   :  { %2860 = vmatprep.mubr.f32.mxu0 %v2714_v44 }
 0x683   :  { %2931 = vmatmul.mubr.f32.vlgmr.msra.gmra.mrb[20].mxu1 %v2711_v7 }
 0x684   :  { %2935 = vmatprep.mubr.f32.mxu1 %v2716_v54 }
 0x685   :  { %2861 = vmatmul.mubr.f32.gmra.mrb[22].mxu0 %v2713_v4 }
 0x687   :  { %2936 = vmatmul.mubr.f32.gmra.mrb[22].mxu1 %v2715_v48 }
 0x754   :  { %v3088_v39 = vpop.f32.mrb[20].mxu0 }
 0x755   :  { %v3089_v52 = vpop.f32.mrb[21].mxu0 }
 0x756   :  { %v3126_v31 = vpop.f32.mrb[20].mxu1  ;;  %v3090_v5 = vadd.f32 %v3089_v52, %v3088_v39 }
 0x757   :  { %v3127_v18 = vpop.f32.mrb[21].mxu1 }
 0x758   :  { %v3128_v51 = vadd.f32 %v3127_v18, %v3126_v31  ;;  %v2858_v7 = vadd.f32 %v3090_v5, %v3052_v33  ;;  %v3091_v9 = vpop.f32.mrb[22].mxu0 }
 0x759   :  { %v3092_v43 = vpop.f32.mrb[23].mxu0 }
 0x75a   :  { %v3129_v44 = vpop.f32.mrb[22].mxu1  ;;  %v2933_v34 = vadd.f32 %v3128_v51, %v2858_v7  ;;  %v3093_v45 = vadd.f32 %v3092_v43, %v3091_v9 }
 0x75b   :  { %v3130_v54 = vpop.f32.mrb[23].mxu1 }
 0x75c   :  { %v3131_v35 = vadd.f32 %v3130_v54, %v3129_v44  ;;  %2941 = vst [vmem:[#allocation17] sm:$0xff] %v2933_v34  ;;  %v2863_v42 = vadd.f32 %v3093_v45, %v3052_v33 }
 0x75e   :  { %v2938_v8 = vadd.f32 %v3131_v35, %v2863_v42 }
 0x760   :  { %2942 = vst [vmem:[#allocation17 + $0x8] sm:$0xff] %v2938_v8 }
 0x761   :  { %3482 = shalt.err (!%p3479_p4)
}
 0x762   :  { %s3483_s2 = scalar_lea.hbm %s3891_s9, 256 }
 0x763   :  { %p3484_p5 = scmp.ne.s32.totalorder %s3891_s9, %s3483_s2  ;;  %p3487_p6 = scmp.lt.u32.totalorder %s3483_s2, %s3891_s9 }
 0x765   :  { %p3489_p7 = pnand %p3487_p6, %p3484_p5 }
 0x767   :  { %3492 = shalt.err (!%p3489_p7)
}
 0x768   :  { %2954 = dma.vmem_to_hbm [thread:$0]  %s2949_s22, 256, %s3891_s9, [#allocation8], %s3523_s27, %s3523_s27, %s3521_s21  }
 0x769   :  { %3507 = dma.done.wait [#allocation8], 256  }
 0x76a   :  { %3508 = vsyncadd [#allocation8], 4294967040 }
 0x76b   :  { %2958 = vsyncpa [#allocation7], 1 }
 0x76c   :  { %2959 = vsyncpa [#allocation10], 1 }
 0x76d   :  { %2960 = vsyncpa [#allocation13], 1 }
 0x76e   :  { %2961 = vsyncpa [#allocation16], 1 }
 0x76f   :  { %2962 = vsyncpa [#allocation8], 1 }
 0x770   :  { %2963 = vsyncmov [#allocation5] }
 0x773   :  { %s2964_s6 = vpop.sfrf %2963 }
 0x774   :  { %p3053_p8 = scmp.ne.s32.totalorder %s2964_s6, 0 }
 0x776   :  { %2968 = shalt.err (%p3053_p8)  }
 0x777   :  { %2970 = vsyncmov [#allocation5 + $0x1] }
 0x77a   :  { %s2971_s14 = vpop.sfrf %2970 }
 0x77b   :  { %p3054_p9 = scmp.ne.s32.totalorder %s2971_s14, 0 }
 0x77d   :  { %2975 = shalt.err (%p3054_p9)  }
 0x77e   :  { %2977 = vsyncmov [#allocation5 + $0x2] }
 0x781   :  { %s2978_s15 = vpop.sfrf %2977 }
 0x782   :  { %p3055_p10 = scmp.ne.s32.totalorder %s2978_s15, 0 }
 0x784   :  { %2982 = shalt.err (%p3055_p10)  }

</bundles_post_ra>
